<compile_context>
chip_gen: v6e
topology: v6e:2x2x1
jax: 0.10.0
libtpu: 0.0.40
codegen_flags: <defaults>
</compile_context>

<pallas_src>
import functools

import numpy as np
import jax
import jax.numpy as jnp
from jax.experimental import pallas as pl
from jax.experimental.pallas import tpu as pltpu


# -----------------------------------------------------------------------------
# In-kernel helpers
# -----------------------------------------------------------------------------
def _channel_fold(row, co):
    """row: (1, L) f32 with columns laid out (wo, c).  Returns (1, L) where every
    column j holds sum_wo row[wo*co + (j % co)] -- i.e. the per-channel reduction
    already broadcast back into the (wo, c) column layout.  Only log2(L/co) XLU
    rolls + VPU adds on 2-vreg rows: no MXU work, no extra DMA'd operands."""
    t = row
    shift = row.shape[-1] // 2
    while shift >= co:
        t = t + pltpu.roll(t, shift, axis=1)
        shift //= 2
    return t


# -----------------------------------------------------------------------------
# The fused Pallas kernel: whole DCGAN discriminator forward
# -----------------------------------------------------------------------------
def _dcgan_disc_kernel(a0_ref, sh1_ref, sh2_ref, sh3_ref, sh4_ref, bnp_ref,
                       head_w_ref, head_fold_ref, tw_hbm_ref,
                       out_ref, tw_vmem, dma_sems,
                       *, layer_meta, leaky_slope=0.2, eps=1e-5):
    # Kick off all four banded-weight DMAs immediately; each layer waits on its
    # own slice just before its big matmul, so later-layer HBM transfers hide
    # under earlier-layer compute instead of serializing ahead of the body.
    copies = []
    for li in range(4):
        cp = pltpu.make_async_copy(tw_hbm_ref.at[li], tw_vmem.at[li], dma_sems.at[li])
        cp.start()
        copies.append(cp)

    sh_refs = (sh1_ref, sh2_ref, sh3_ref, sh4_ref)
    a = a0_ref[...]                                            # (N*H, W*Ci)  bf16
    y = None
    for li, (m_rows, use_bn, m_cnt, co) in enumerate(layer_meta):
        # H-axis patch gather (+ zero padding folded in): rows of b are (kh, n, ho).
        b = jnp.dot(sh_refs[li][...], a, preferred_element_type=jnp.float32)
        # Merge the four kh blocks along lanes (vreg-aligned 256-column boundaries):
        # rows (n, ho), cols (kh, w, ci)  ->  a single K=1024 matmul per layer.
        b_cat = jnp.concatenate(
            [b[kh * m_rows:(kh + 1) * m_rows, :] for kh in range(4)],
            axis=1).astype(jnp.bfloat16)
        copies[li].wait()
        y = jnp.dot(b_cat, tw_vmem[li],
                    preferred_element_type=jnp.float32)        # (M, Wo*Co) f32

        if use_bn:
            bi = li - 1
            g_cols = bnp_ref[2 * bi:2 * bi + 1, :]             # (1, Wo*Co) f32: gamma[col % Co]
            b_cols = bnp_ref[2 * bi + 1:2 * bi + 2, :]         # (1, Wo*Co) f32: beta[col % Co]
            inv_m = 1.0 / m_cnt
            # Row-reduce first (cheap sublane reduction), then fold per channel.
            rs = jnp.sum(y, axis=0, keepdims=True)             # (1, Wo*Co)
            rs2 = jnp.sum(y * y, axis=0, keepdims=True)        # (1, Wo*Co)
            s1 = _channel_fold(rs, co) * inv_m                 # E[x]   per column
            s2 = _channel_fold(rs2, co) * inv_m                # E[x^2] per column
            var = jnp.maximum(s2 - s1 * s1, 0.0)               # biased batch variance
            y = (y - s1) * (g_cols * jax.lax.rsqrt(var + eps)) + b_cols

        y = jnp.maximum(y, leaky_slope * y)                    # LeakyReLU(0.2)
        a = y.astype(jnp.bfloat16)

    # conv5 (4x4 valid conv -> 1x1) + sigmoid, vectorized over the batch.
    p = y * head_w_ref[...]                                    # (N*4, 4*Ci) f32
    s = jnp.dot(head_fold_ref[...], p,
                preferred_element_type=jnp.float32)            # (N, 4*Ci): sum over kh
    logits = jnp.sum(s, axis=1, keepdims=True)                 # (N, 1): sum over (kw, ci)
    sig = 1.0 / (1.0 + jnp.exp(-logits))
    out_ref[...] = jnp.broadcast_to(sig, out_ref.shape)        # lane-dense (N, 128) store


# -----------------------------------------------------------------------------
# Host-side construction of gather / banded-weight operands (layout plumbing only)
# -----------------------------------------------------------------------------
def _row_gather_matrix(n, h_in, h_out, k, stride, pad):
    """SH[(kh, n, ho), (n', h)] = 1  iff  n' == n and h == stride*ho + kh - pad."""
    rows = k * n * h_out
    r = np.arange(rows)
    kh = r // (n * h_out)
    rem = r % (n * h_out)
    nn = rem // h_out
    ho = rem % h_out
    h = stride * ho + kh - pad
    valid = (h >= 0) & (h < h_in)
    sh = np.zeros((rows, n * h_in), np.float32)
    sh[r[valid], (nn * h_in + h)[valid]] = 1.0
    return sh


def _banded_weight_matrix(w_oihw, w_in, w_out, k, stride, pad):
    """TW[(kh*Win + w)*Ci + ci, wo*Co + co] = W[co, ci, kh, w - stride*wo + pad] (0 outside)."""
    co, ci = w_oihw.shape[0], w_oihw.shape[1]
    w_idx = np.arange(w_in)[:, None, None]
    wo_idx = np.arange(w_out)[None, :, None]
    kw_idx = np.arange(k)[None, None, :]
    mask = (w_idx == stride * wo_idx + kw_idx - pad).astype(np.float32)   # (Win, Wo, k)
    r = jnp.einsum('wuk,ochk->hwcuo', jnp.asarray(mask), w_oihw)          # (k, Win, Ci, Wo, Co)
    return r.reshape(k * w_in * ci, w_out * co)


def pack_operands(params, batch, image_size=64):
    """Build every weight-derived / constant kernel operand once.
    (Hoisted out of the per-step forward: repack on weight update, not per call.)"""
    n = batch
    layer_names = ("conv1", "conv2", "conv3", "conv4")
    sh_list, tw_list, bn_rows = [], [], []
    cur = image_size
    for li, name in enumerate(layer_names):
        w = params[name + "_w"]                                # (Co, Ci, 4, 4)
        co, ci = w.shape[0], w.shape[1]
        if li == 0 and ci < 4:                                 # pad conv1 Ci 3 -> 4 (lane alignment)
            w = jnp.pad(w, ((0, 0), (0, 4 - ci), (0, 0), (0, 0)))
        ho = cur // 2
        sh_list.append(jnp.asarray(
            _row_gather_matrix(n, cur, ho, k=4, stride=2, pad=1), jnp.bfloat16))
        tw_list.append(_banded_weight_matrix(w, cur, ho, k=4, stride=2, pad=1)
                       .astype(jnp.bfloat16))
        if li > 0:                                             # conv2..conv4 carry BatchNorm
            gamma = params[name + "_gamma"].astype(jnp.float32).reshape(1, co)
            beta = params[name + "_beta"].astype(jnp.float32).reshape(1, co)
            bn_rows.append(jnp.tile(gamma, (1, ho)))           # (1, Wo*Co)
            bn_rows.append(jnp.tile(beta, (1, ho)))            # (1, Wo*Co)
        cur = ho

    assert cur == 4, "DCGAN head expects a 4x4 feature map (64x64 input)"
    ci5 = params["conv5_w"].shape[1]
    # conv5 weights (1, Ci, 4, 4) -> (kh, kw*Ci), matching the (w, ci) column layout.
    tw5 = jnp.transpose(params["conv5_w"], (2, 3, 1, 0)).reshape(4, 4 * ci5).astype(jnp.float32)

    return {
        "sh": tuple(sh_list),                                  # four 0/1 H-gather matrices (bf16)
        "tw_all": jnp.stack(tw_list),                          # (4, 1024, 256) bf16, stays in HBM
        "bnp": jnp.concatenate(bn_rows, axis=0),               # (6, 256) f32: [g2,b2,g3,b3,g4,b4]
        "head_w": jnp.tile(tw5, (n, 1)),                       # (N*4, 4*Ci5) f32
        "head_fold": jnp.asarray(
            np.repeat(np.eye(n, dtype=np.float32), 4, axis=1)),  # (N, N*4) 0/1
    }


# -----------------------------------------------------------------------------
# Full module forward (NCHW in, NCHW out, matching the PyTorch module)
# -----------------------------------------------------------------------------
def dcgan_discriminator_forward(x_nchw, ops):
    n, c, h, w = x_nchw.shape
    tw_all = ops["tw_all"]
    ci_pad = tw_all.shape[1] // (4 * w)                        # conv1 input channels after padding
    lanes = tw_all.shape[2]                                    # Wo*Co of every layer (256)

    # Input packing: NCHW -> NHWC -> zero-pad C -> rows=(n,h), cols=(w,ci); bf16 for the MXU.
    a0 = jnp.transpose(x_nchw, (0, 2, 3, 1))
    a0 = jnp.pad(a0, ((0, 0), (0, 0), (0, 0), (0, ci_pad - c)))
    a0 = a0.reshape(n * h, w * ci_pad).astype(jnp.bfloat16)

    # Static per-layer metadata (all derived from static shapes).
    layer_meta, cur = [], h
    for li in range(4):
        ho = cur // 2
        layer_meta.append((n * ho, li > 0, n * ho * ho, lanes // ho))
        cur = ho

    kernel = functools.partial(_dcgan_disc_kernel, layer_meta=tuple(layer_meta))
    out = pl.pallas_call(
        kernel,
        out_shape=jax.ShapeDtypeStruct((n, 128), jnp.float32),  # lane-dense; col 0 holds the result
        in_specs=[pl.BlockSpec(memory_space=pltpu.MemorySpace.VMEM)] * 8
                 + [pl.BlockSpec(memory_space=pl.ANY)],          # banded weights stay in HBM
        out_specs=pl.BlockSpec(memory_space=pltpu.MemorySpace.VMEM),
        scratch_shapes=[
            pltpu.VMEM(tw_all.shape, jnp.bfloat16),              # prefetch target for TW1..TW4
            pltpu.SemaphoreType.DMA((4,)),
        ],
        compiler_params=pltpu.CompilerParams(vmem_limit_bytes=32 * 1024 * 1024),
    )(a0, *ops["sh"], ops["bnp"], ops["head_w"], ops["head_fold"], tw_all)
    return out[:, :1].reshape(n, 1, 1, 1)


# -----------------------------------------------------------------------------
# Deterministic parameter init (shapes follow the PyTorch module __init__)
# -----------------------------------------------------------------------------
def init_params(key, num_channels=3, num_filters=8):
    nf = num_filters
    shapes = {
        "conv1_w": (nf, num_channels, 4, 4),
        "conv2_w": (nf * 2, nf, 4, 4),
        "conv3_w": (nf * 4, nf * 2, 4, 4),
        "conv4_w": (nf * 8, nf * 4, 4, 4),
        "conv5_w": (1, nf * 8, 4, 4),
    }
    params = {}
    for name, shp in shapes.items():
        key, sub = jax.random.split(key)
        params[name] = 0.05 * jax.random.normal(sub, shp, jnp.float32)
    for i, ch in zip((2, 3, 4), (nf * 2, nf * 4, nf * 8)):
        key, g_key, b_key = jax.random.split(key, 3)
        params[f"conv{i}_gamma"] = 1.0 + 0.1 * jax.random.normal(g_key, (ch,), jnp.float32)
        params[f"conv{i}_beta"] = 0.1 * jax.random.normal(b_key, (ch,), jnp.float32)
    return params


if __name__ == "__main__":
    key = jax.random.PRNGKey(0)
    key, p_key, x_key = jax.random.split(key, 3)

    # Small config: batch=2, num_channels=3, num_filters=8, 64x64 images
    # (64x64 is what the architecture implies: 4 stride-2 convs -> 4x4, then the
    #  final 4x4 valid conv -> 1x1).
    params = init_params(p_key, num_channels=3, num_filters=8)
    x = jax.random.normal(x_key, (2, 3, 64, 64), jnp.float32)  # NCHW input

    # Weight-dependent operand packing hoisted out of the per-step forward.
    ops = jax.block_until_ready(pack_operands(params, batch=2))

    fwd = jax.jit(dcgan_discriminator_forward)
    out = jax.block_until_ready(fwd(x, ops))

    assert out.shape == (2, 1, 1, 1), out.shape
    assert bool(jnp.all((out >= 0.0) & (out <= 1.0)))
    print("KERNEL_OK")
</pallas_src>

<mosaic_0001>
module attributes {stable_mosaic.version = 11 : i64} {
  func.func @_dcgan_disc_kernel(%arg0: memref<128x256xbf16, #tpu.memory_space<vmem>>, %arg1: memref<256x128xbf16, #tpu.memory_space<vmem>>, %arg2: memref<128x64xbf16, #tpu.memory_space<vmem>>, %arg3: memref<64x32xbf16, #tpu.memory_space<vmem>>, %arg4: memref<32x16xbf16, #tpu.memory_space<vmem>>, %arg5: memref<6x256xf32, #tpu.memory_space<vmem>>, %arg6: memref<8x256xf32, #tpu.memory_space<vmem>>, %arg7: memref<2x8xf32, #tpu.memory_space<vmem>>, %arg8: memref<4x1024x256xbf16, #tpu.memory_space<any>>, %arg9: memref<2x128xf32, #tpu.memory_space<vmem>>, %arg10: memref<4x1024x256xbf16, #tpu.memory_space<vmem>>, %arg11: memref<4x!tpu.dma_semaphore, #tpu.memory_space<semaphore_mem>>) attributes {dimension_semantics = [], scalar_prefetch = 0 : i64, scratch_operands = 2 : i64, tpu.core_type = #tpu.core_type<tc>} {
    %c0_i32 = arith.constant 0 : i32
    %c0_i32_0 = arith.constant 0 : i32
    %c0_i32_1 = arith.constant 0 : i32
    %c0_i32_2 = arith.constant 0 : i32
    %c0_i32_3 = arith.constant 0 : i32
    %0 = tpu.memref_slice %arg8[%c0_i32, %c0_i32_2, %c0_i32_3] : memref<4x1024x256xbf16, #tpu.memory_space<any>> -> memref<1x1024x256xbf16, #tpu.memory_space<any>>
    %1 = tpu.memref_squeeze %0 : memref<1x1024x256xbf16, #tpu.memory_space<any>> -> memref<1024x256xbf16, #tpu.memory_space<any>>
    %c0_i32_4 = arith.constant 0 : i32
    %c0_i32_5 = arith.constant 0 : i32
    %2 = tpu.memref_slice %arg10[%c0_i32_0, %c0_i32_4, %c0_i32_5] : memref<4x1024x256xbf16, #tpu.memory_space<vmem>> -> memref<1x1024x256xbf16, #tpu.memory_space<vmem>>
    %3 = tpu.memref_squeeze %2 : memref<1x1024x256xbf16, #tpu.memory_space<vmem>> -> memref<1024x256xbf16, #tpu.memory_space<vmem>>
    %4 = tpu.memref_slice %arg11[%c0_i32_1] : memref<4x!tpu.dma_semaphore, #tpu.memory_space<semaphore_mem>> -> memref<1x!tpu.dma_semaphore, #tpu.memory_space<semaphore_mem>>
    %5 = tpu.memref_squeeze %4 : memref<1x!tpu.dma_semaphore, #tpu.memory_space<semaphore_mem>> -> memref<!tpu.dma_semaphore, #tpu.memory_space<semaphore_mem>>
    tpu.enqueue_dma source(%1 : memref<1024x256xbf16, #tpu.memory_space<any>>) target(%3 : memref<1024x256xbf16, #tpu.memory_space<vmem>>) target_semaphore(%5 : memref<!tpu.dma_semaphore, #tpu.memory_space<semaphore_mem>>)
    %c1_i32 = arith.constant 1 : i32
    %c1_i32_6 = arith.constant 1 : i32
    %c1_i32_7 = arith.constant 1 : i32
    %c0_i32_8 = arith.constant 0 : i32
    %c0_i32_9 = arith.constant 0 : i32
    %6 = tpu.memref_slice %arg8[%c1_i32, %c0_i32_8, %c0_i32_9] : memref<4x1024x256xbf16, #tpu.memory_space<any>> -> memref<1x1024x256xbf16, #tpu.memory_space<any>>
    %7 = tpu.memref_squeeze %6 : memref<1x1024x256xbf16, #tpu.memory_space<any>> -> memref<1024x256xbf16, #tpu.memory_space<any>>
    %c0_i32_10 = arith.constant 0 : i32
    %c0_i32_11 = arith.constant 0 : i32
    %8 = tpu.memref_slice %arg10[%c1_i32_6, %c0_i32_10, %c0_i32_11] : memref<4x1024x256xbf16, #tpu.memory_space<vmem>> -> memref<1x1024x256xbf16, #tpu.memory_space<vmem>>
    %9 = tpu.memref_squeeze %8 : memref<1x1024x256xbf16, #tpu.memory_space<vmem>> -> memref<1024x256xbf16, #tpu.memory_space<vmem>>
    %10 = tpu.memref_slice %arg11[%c1_i32_7] : memref<4x!tpu.dma_semaphore, #tpu.memory_space<semaphore_mem>> -> memref<1x!tpu.dma_semaphore, #tpu.memory_space<semaphore_mem>>
    %11 = tpu.memref_squeeze %10 : memref<1x!tpu.dma_semaphore, #tpu.memory_space<semaphore_mem>> -> memref<!tpu.dma_semaphore, #tpu.memory_space<semaphore_mem>>
    tpu.enqueue_dma source(%7 : memref<1024x256xbf16, #tpu.memory_space<any>>) target(%9 : memref<1024x256xbf16, #tpu.memory_space<vmem>>) target_semaphore(%11 : memref<!tpu.dma_semaphore, #tpu.memory_space<semaphore_mem>>)
    %c2_i32 = arith.constant 2 : i32
    %c2_i32_12 = arith.constant 2 : i32
    %c2_i32_13 = arith.constant 2 : i32
    %c0_i32_14 = arith.constant 0 : i32
    %c0_i32_15 = arith.constant 0 : i32
    %12 = tpu.memref_slice %arg8[%c2_i32, %c0_i32_14, %c0_i32_15] : memref<4x1024x256xbf16, #tpu.memory_space<any>> -> memref<1x1024x256xbf16, #tpu.memory_space<any>>
    %13 = tpu.memref_squeeze %12 : memref<1x1024x256xbf16, #tpu.memory_space<any>> -> memref<1024x256xbf16, #tpu.memory_space<any>>
    %c0_i32_16 = arith.constant 0 : i32
    %c0_i32_17 = arith.constant 0 : i32
    %14 = tpu.memref_slice %arg10[%c2_i32_12, %c0_i32_16, %c0_i32_17] : memref<4x1024x256xbf16, #tpu.memory_space<vmem>> -> memref<1x1024x256xbf16, #tpu.memory_space<vmem>>
    %15 = tpu.memref_squeeze %14 : memref<1x1024x256xbf16, #tpu.memory_space<vmem>> -> memref<1024x256xbf16, #tpu.memory_space<vmem>>
    %16 = tpu.memref_slice %arg11[%c2_i32_13] : memref<4x!tpu.dma_semaphore, #tpu.memory_space<semaphore_mem>> -> memref<1x!tpu.dma_semaphore, #tpu.memory_space<semaphore_mem>>
    %17 = tpu.memref_squeeze %16 : memref<1x!tpu.dma_semaphore, #tpu.memory_space<semaphore_mem>> -> memref<!tpu.dma_semaphore, #tpu.memory_space<semaphore_mem>>
    tpu.enqueue_dma source(%13 : memref<1024x256xbf16, #tpu.memory_space<any>>) target(%15 : memref<1024x256xbf16, #tpu.memory_space<vmem>>) target_semaphore(%17 : memref<!tpu.dma_semaphore, #tpu.memory_space<semaphore_mem>>)
    %c3_i32 = arith.constant 3 : i32
    %c3_i32_18 = arith.constant 3 : i32
    %c3_i32_19 = arith.constant 3 : i32
    %c0_i32_20 = arith.constant 0 : i32
    %c0_i32_21 = arith.constant 0 : i32
    %18 = tpu.memref_slice %arg8[%c3_i32, %c0_i32_20, %c0_i32_21] : memref<4x1024x256xbf16, #tpu.memory_space<any>> -> memref<1x1024x256xbf16, #tpu.memory_space<any>>
    %19 = tpu.memref_squeeze %18 : memref<1x1024x256xbf16, #tpu.memory_space<any>> -> memref<1024x256xbf16, #tpu.memory_space<any>>
    %c0_i32_22 = arith.constant 0 : i32
    %c0_i32_23 = arith.constant 0 : i32
    %20 = tpu.memref_slice %arg10[%c3_i32_18, %c0_i32_22, %c0_i32_23] : memref<4x1024x256xbf16, #tpu.memory_space<vmem>> -> memref<1x1024x256xbf16, #tpu.memory_space<vmem>>
    %21 = tpu.memref_squeeze %20 : memref<1x1024x256xbf16, #tpu.memory_space<vmem>> -> memref<1024x256xbf16, #tpu.memory_space<vmem>>
    %22 = tpu.memref_slice %arg11[%c3_i32_19] : memref<4x!tpu.dma_semaphore, #tpu.memory_space<semaphore_mem>> -> memref<1x!tpu.dma_semaphore, #tpu.memory_space<semaphore_mem>>
    %23 = tpu.memref_squeeze %22 : memref<1x!tpu.dma_semaphore, #tpu.memory_space<semaphore_mem>> -> memref<!tpu.dma_semaphore, #tpu.memory_space<semaphore_mem>>
    tpu.enqueue_dma source(%19 : memref<1024x256xbf16, #tpu.memory_space<any>>) target(%21 : memref<1024x256xbf16, #tpu.memory_space<vmem>>) target_semaphore(%23 : memref<!tpu.dma_semaphore, #tpu.memory_space<semaphore_mem>>)
    %c0 = arith.constant 0 : index
    %c0_24 = arith.constant 0 : index
    %24 = vector.load %arg0[%c0, %c0_24] : memref<128x256xbf16, #tpu.memory_space<vmem>>, vector<128x256xbf16>
    %c0_25 = arith.constant 0 : index
    %c0_26 = arith.constant 0 : index
    %25 = vector.load %arg1[%c0_25, %c0_26] : memref<256x128xbf16, #tpu.memory_space<vmem>>, vector<256x128xbf16>
    %cst = arith.constant dense<0.000000e+00> : vector<256x256xf32>
    %26 = tpu.matmul %25, %24, %cst {dimension_numbers = #tpu.dot_dimension_numbers<[1], [0], [0], [1], [0, 0, 1, 1], [], []>} : vector<256x128xbf16>, vector<128x256xbf16>, vector<256x256xf32> -> vector<256x256xf32>
    %27 = vector.extract_strided_slice %26 {offsets = [0, 0], sizes = [64, 256], strides = [1, 1]} : vector<256x256xf32> to vector<64x256xf32>
    %28 = vector.extract_strided_slice %26 {offsets = [64, 0], sizes = [64, 256], strides = [1, 1]} : vector<256x256xf32> to vector<64x256xf32>
    %29 = vector.extract_strided_slice %26 {offsets = [128, 0], sizes = [64, 256], strides = [1, 1]} : vector<256x256xf32> to vector<64x256xf32>
    %30 = vector.extract_strided_slice %26 {offsets = [192, 0], sizes = [64, 256], strides = [1, 1]} : vector<256x256xf32> to vector<64x256xf32>
    %31 = tpu.concatenate %27, %28, %29, %30 in 1 : vector<64x256xf32>, vector<64x256xf32>, vector<64x256xf32>, vector<64x256xf32> -> vector<64x1024xf32>
    %32 = arith.truncf %31 : vector<64x1024xf32> to vector<64x1024xbf16>
    %c0_i32_27 = arith.constant 0 : i32
    %c0_i32_28 = arith.constant 0 : i32
    %c0_i32_29 = arith.constant 0 : i32
    %c0_i32_30 = arith.constant 0 : i32
    %c0_i32_31 = arith.constant 0 : i32
    %33 = tpu.memref_slice %arg8[%c0_i32_27, %c0_i32_30, %c0_i32_31] : memref<4x1024x256xbf16, #tpu.memory_space<any>> -> memref<1x1024x256xbf16, #tpu.memory_space<any>>
    %34 = tpu.memref_squeeze %33 : memref<1x1024x256xbf16, #tpu.memory_space<any>> -> memref<1024x256xbf16, #tpu.memory_space<any>>
    %c0_i32_32 = arith.constant 0 : i32
    %c0_i32_33 = arith.constant 0 : i32
    %35 = tpu.memref_slice %arg10[%c0_i32_28, %c0_i32_32, %c0_i32_33] : memref<4x1024x256xbf16, #tpu.memory_space<vmem>> -> memref<1x1024x256xbf16, #tpu.memory_space<vmem>>
    %36 = tpu.memref_squeeze %35 : memref<1x1024x256xbf16, #tpu.memory_space<vmem>> -> memref<1024x256xbf16, #tpu.memory_space<vmem>>
    %37 = tpu.memref_slice %arg11[%c0_i32_29] : memref<4x!tpu.dma_semaphore, #tpu.memory_space<semaphore_mem>> -> memref<1x!tpu.dma_semaphore, #tpu.memory_space<semaphore_mem>>
    %38 = tpu.memref_squeeze %37 : memref<1x!tpu.dma_semaphore, #tpu.memory_space<semaphore_mem>> -> memref<!tpu.dma_semaphore, #tpu.memory_space<semaphore_mem>>
    tpu.wait_dma2 semaphore(%38 : memref<!tpu.dma_semaphore, #tpu.memory_space<semaphore_mem>>) src(%34 : memref<1024x256xbf16, #tpu.memory_space<any>>) dst(%36 : memref<1024x256xbf16, #tpu.memory_space<vmem>>)
    %c0_34 = arith.constant 0 : index
    %c0_35 = arith.constant 0 : index
    %c0_36 = arith.constant 0 : index
    %39 = vector.load %arg10[%c0_34, %c0_35, %c0_36] : memref<4x1024x256xbf16, #tpu.memory_space<vmem>>, vector<1x1024x256xbf16>
    %40 = vector.shape_cast %39 : vector<1x1024x256xbf16> to vector<1024x256xbf16>
    %cst_37 = arith.constant dense<0.000000e+00> : vector<64x256xf32>
    %41 = tpu.matmul %32, %40, %cst_37 {dimension_numbers = #tpu.dot_dimension_numbers<[1], [0], [0], [1], [0, 0, 1, 1], [], []>} : vector<64x1024xbf16>, vector<1024x256xbf16>, vector<64x256xf32> -> vector<64x256xf32>
    %cst_38 = arith.constant 2.000000e-01 : f32
    %42 = vector.broadcast %cst_38 : f32 to vector<64x256xf32>
    %43 = arith.mulf %42, %41 : vector<64x256xf32>
    %44 = arith.maximumf %41, %43 : vector<64x256xf32>
    %45 = arith.truncf %44 : vector<64x256xf32> to vector<64x256xbf16>
    %c0_39 = arith.constant 0 : index
    %c0_40 = arith.constant 0 : index
    %46 = vector.load %arg2[%c0_39, %c0_40] : memref<128x64xbf16, #tpu.memory_space<vmem>>, vector<128x64xbf16>
    %cst_41 = arith.constant dense<0.000000e+00> : vector<128x256xf32>
    %47 = tpu.matmul %46, %45, %cst_41 {dimension_numbers = #tpu.dot_dimension_numbers<[1], [0], [0], [1], [0, 0, 1, 1], [], []>} : vector<128x64xbf16>, vector<64x256xbf16>, vector<128x256xf32> -> vector<128x256xf32>
    %48 = vector.extract_strided_slice %47 {offsets = [0, 0], sizes = [32, 256], strides = [1, 1]} : vector<128x256xf32> to vector<32x256xf32>
    %49 = vector.extract_strided_slice %47 {offsets = [32, 0], sizes = [32, 256], strides = [1, 1]} : vector<128x256xf32> to vector<32x256xf32>
    %50 = vector.extract_strided_slice %47 {offsets = [64, 0], sizes = [32, 256], strides = [1, 1]} : vector<128x256xf32> to vector<32x256xf32>
    %51 = vector.extract_strided_slice %47 {offsets = [96, 0], sizes = [32, 256], strides = [1, 1]} : vector<128x256xf32> to vector<32x256xf32>
    %52 = tpu.concatenate %48, %49, %50, %51 in 1 : vector<32x256xf32>, vector<32x256xf32>, vector<32x256xf32>, vector<32x256xf32> -> vector<32x1024xf32>
    %53 = arith.truncf %52 : vector<32x1024xf32> to vector<32x1024xbf16>
    %c1_i32_42 = arith.constant 1 : i32
    %c1_i32_43 = arith.constant 1 : i32
    %c1_i32_44 = arith.constant 1 : i32
    %c0_i32_45 = arith.constant 0 : i32
    %c0_i32_46 = arith.constant 0 : i32
    %54 = tpu.memref_slice %arg8[%c1_i32_42, %c0_i32_45, %c0_i32_46] : memref<4x1024x256xbf16, #tpu.memory_space<any>> -> memref<1x1024x256xbf16, #tpu.memory_space<any>>
    %55 = tpu.memref_squeeze %54 : memref<1x1024x256xbf16, #tpu.memory_space<any>> -> memref<1024x256xbf16, #tpu.memory_space<any>>
    %c0_i32_47 = arith.constant 0 : i32
    %c0_i32_48 = arith.constant 0 : i32
    %56 = tpu.memref_slice %arg10[%c1_i32_43, %c0_i32_47, %c0_i32_48] : memref<4x1024x256xbf16, #tpu.memory_space<vmem>> -> memref<1x1024x256xbf16, #tpu.memory_space<vmem>>
    %57 = tpu.memref_squeeze %56 : memref<1x1024x256xbf16, #tpu.memory_space<vmem>> -> memref<1024x256xbf16, #tpu.memory_space<vmem>>
    %58 = tpu.memref_slice %arg11[%c1_i32_44] : memref<4x!tpu.dma_semaphore, #tpu.memory_space<semaphore_mem>> -> memref<1x!tpu.dma_semaphore, #tpu.memory_space<semaphore_mem>>
    %59 = tpu.memref_squeeze %58 : memref<1x!tpu.dma_semaphore, #tpu.memory_space<semaphore_mem>> -> memref<!tpu.dma_semaphore, #tpu.memory_space<semaphore_mem>>
    tpu.wait_dma2 semaphore(%59 : memref<!tpu.dma_semaphore, #tpu.memory_space<semaphore_mem>>) src(%55 : memref<1024x256xbf16, #tpu.memory_space<any>>) dst(%57 : memref<1024x256xbf16, #tpu.memory_space<vmem>>)
    %c1 = arith.constant 1 : index
    %c0_49 = arith.constant 0 : index
    %c0_50 = arith.constant 0 : index
    %60 = vector.load %arg10[%c1, %c0_49, %c0_50] : memref<4x1024x256xbf16, #tpu.memory_space<vmem>>, vector<1x1024x256xbf16>
    %61 = vector.shape_cast %60 : vector<1x1024x256xbf16> to vector<1024x256xbf16>
    %cst_51 = arith.constant dense<0.000000e+00> : vector<32x256xf32>
    %62 = tpu.matmul %53, %61, %cst_51 {dimension_numbers = #tpu.dot_dimension_numbers<[1], [0], [0], [1], [0, 0, 1, 1], [], []>} : vector<32x1024xbf16>, vector<1024x256xbf16>, vector<32x256xf32> -> vector<32x256xf32>
    %c0_52 = arith.constant 0 : index
    %c0_53 = arith.constant 0 : index
    %63 = vector.load %arg5[%c0_52, %c0_53] : memref<6x256xf32, #tpu.memory_space<vmem>>, vector<1x256xf32>
    %c1_54 = arith.constant 1 : index
    %c0_55 = arith.constant 0 : index
    %64 = vector.load %arg5[%c1_54, %c0_55] : memref<6x256xf32, #tpu.memory_space<vmem>>, vector<1x256xf32>
    %cst_56 = arith.constant dense<0.000000e+00> : vector<256xf32>
    %65 = vector.multi_reduction <add>, %62, %cst_56 [0] : vector<32x256xf32> to vector<256xf32>
    %66 = vector.shape_cast %65 : vector<256xf32> to vector<1x256xf32>
    %67 = arith.mulf %62, %62 : vector<32x256xf32>
    %cst_57 = arith.constant dense<0.000000e+00> : vector<256xf32>
    %68 = vector.multi_reduction <add>, %67, %cst_57 [0] : vector<32x256xf32> to vector<256xf32>
    %69 = vector.shape_cast %68 : vector<256xf32> to vector<1x256xf32>
    %c128_i32 = arith.constant 128 : i32
    %70 = tpu.dynamic_rotate %66 by %c128_i32 dim 1 : vector<1x256xf32>, i32 -> vector<1x256xf32>
    %71 = arith.addf %66, %70 : vector<1x256xf32>
    %c64_i32 = arith.constant 64 : i32
    %72 = tpu.dynamic_rotate %71 by %c64_i32 dim 1 : vector<1x256xf32>, i32 -> vector<1x256xf32>
    %73 = arith.addf %71, %72 : vector<1x256xf32>
    %c32_i32 = arith.constant 32 : i32
    %74 = tpu.dynamic_rotate %73 by %c32_i32 dim 1 : vector<1x256xf32>, i32 -> vector<1x256xf32>
    %75 = arith.addf %73, %74 : vector<1x256xf32>
    %c16_i32 = arith.constant 16 : i32
    %76 = tpu.dynamic_rotate %75 by %c16_i32 dim 1 : vector<1x256xf32>, i32 -> vector<1x256xf32>
    %77 = arith.addf %75, %76 : vector<1x256xf32>
    %cst_58 = arith.constant 0.001953125 : f32
    %78 = vector.broadcast %cst_58 : f32 to vector<1x256xf32>
    %79 = arith.mulf %77, %78 : vector<1x256xf32>
    %c128_i32_59 = arith.constant 128 : i32
    %80 = tpu.dynamic_rotate %69 by %c128_i32_59 dim 1 : vector<1x256xf32>, i32 -> vector<1x256xf32>
    %81 = arith.addf %69, %80 : vector<1x256xf32>
    %c64_i32_60 = arith.constant 64 : i32
    %82 = tpu.dynamic_rotate %81 by %c64_i32_60 dim 1 : vector<1x256xf32>, i32 -> vector<1x256xf32>
    %83 = arith.addf %81, %82 : vector<1x256xf32>
    %c32_i32_61 = arith.constant 32 : i32
    %84 = tpu.dynamic_rotate %83 by %c32_i32_61 dim 1 : vector<1x256xf32>, i32 -> vector<1x256xf32>
    %85 = arith.addf %83, %84 : vector<1x256xf32>
    %c16_i32_62 = arith.constant 16 : i32
    %86 = tpu.dynamic_rotate %85 by %c16_i32_62 dim 1 : vector<1x256xf32>, i32 -> vector<1x256xf32>
    %87 = arith.addf %85, %86 : vector<1x256xf32>
    %cst_63 = arith.constant 0.001953125 : f32
    %88 = vector.broadcast %cst_63 : f32 to vector<1x256xf32>
    %89 = arith.mulf %87, %88 : vector<1x256xf32>
    %90 = arith.mulf %79, %79 : vector<1x256xf32>
    %91 = arith.subf %89, %90 : vector<1x256xf32>
    %cst_64 = arith.constant 0.000000e+00 : f32
    %92 = vector.broadcast %cst_64 : f32 to vector<1x256xf32>
    %93 = arith.maximumf %91, %92 : vector<1x256xf32>
    %94 = vector.broadcast %79 : vector<1x256xf32> to vector<32x256xf32>
    %95 = arith.subf %62, %94 : vector<32x256xf32>
    %cst_65 = arith.constant 9.99999974E-6 : f32
    %96 = vector.broadcast %cst_65 : f32 to vector<1x256xf32>
    %97 = arith.addf %93, %96 : vector<1x256xf32>
    %98 = math.rsqrt %97 : vector<1x256xf32>
    %99 = arith.mulf %63, %98 : vector<1x256xf32>
    %100 = vector.broadcast %99 : vector<1x256xf32> to vector<32x256xf32>
    %101 = arith.mulf %95, %100 : vector<32x256xf32>
    %102 = vector.broadcast %64 : vector<1x256xf32> to vector<32x256xf32>
    %103 = arith.addf %101, %102 : vector<32x256xf32>
    %cst_66 = arith.constant 2.000000e-01 : f32
    %104 = vector.broadcast %cst_66 : f32 to vector<32x256xf32>
    %105 = arith.mulf %104, %103 : vector<32x256xf32>
    %106 = arith.maximumf %103, %105 : vector<32x256xf32>
    %107 = arith.truncf %106 : vector<32x256xf32> to vector<32x256xbf16>
    %c0_67 = arith.constant 0 : index
    %c0_68 = arith.constant 0 : index
    %108 = vector.load %arg3[%c0_67, %c0_68] : memref<64x32xbf16, #tpu.memory_space<vmem>>, vector<64x32xbf16>
    %cst_69 = arith.constant dense<0.000000e+00> : vector<64x256xf32>
    %109 = tpu.matmul %108, %107, %cst_69 {dimension_numbers = #tpu.dot_dimension_numbers<[1], [0], [0], [1], [0, 0, 1, 1], [], []>} : vector<64x32xbf16>, vector<32x256xbf16>, vector<64x256xf32> -> vector<64x256xf32>
    %110 = vector.extract_strided_slice %109 {offsets = [0, 0], sizes = [16, 256], strides = [1, 1]} : vector<64x256xf32> to vector<16x256xf32>
    %111 = vector.extract_strided_slice %109 {offsets = [16, 0], sizes = [16, 256], strides = [1, 1]} : vector<64x256xf32> to vector<16x256xf32>
    %112 = vector.extract_strided_slice %109 {offsets = [32, 0], sizes = [16, 256], strides = [1, 1]} : vector<64x256xf32> to vector<16x256xf32>
    %113 = vector.extract_strided_slice %109 {offsets = [48, 0], sizes = [16, 256], strides = [1, 1]} : vector<64x256xf32> to vector<16x256xf32>
    %114 = tpu.concatenate %110, %111, %112, %113 in 1 : vector<16x256xf32>, vector<16x256xf32>, vector<16x256xf32>, vector<16x256xf32> -> vector<16x1024xf32>
    %115 = arith.truncf %114 : vector<16x1024xf32> to vector<16x1024xbf16>
    %c2_i32_70 = arith.constant 2 : i32
    %c2_i32_71 = arith.constant 2 : i32
    %c2_i32_72 = arith.constant 2 : i32
    %c0_i32_73 = arith.constant 0 : i32
    %c0_i32_74 = arith.constant 0 : i32
    %116 = tpu.memref_slice %arg8[%c2_i32_70, %c0_i32_73, %c0_i32_74] : memref<4x1024x256xbf16, #tpu.memory_space<any>> -> memref<1x1024x256xbf16, #tpu.memory_space<any>>
    %117 = tpu.memref_squeeze %116 : memref<1x1024x256xbf16, #tpu.memory_space<any>> -> memref<1024x256xbf16, #tpu.memory_space<any>>
    %c0_i32_75 = arith.constant 0 : i32
    %c0_i32_76 = arith.constant 0 : i32
    %118 = tpu.memref_slice %arg10[%c2_i32_71, %c0_i32_75, %c0_i32_76] : memref<4x1024x256xbf16, #tpu.memory_space<vmem>> -> memref<1x1024x256xbf16, #tpu.memory_space<vmem>>
    %119 = tpu.memref_squeeze %118 : memref<1x1024x256xbf16, #tpu.memory_space<vmem>> -> memref<1024x256xbf16, #tpu.memory_space<vmem>>
    %120 = tpu.memref_slice %arg11[%c2_i32_72] : memref<4x!tpu.dma_semaphore, #tpu.memory_space<semaphore_mem>> -> memref<1x!tpu.dma_semaphore, #tpu.memory_space<semaphore_mem>>
    %121 = tpu.memref_squeeze %120 : memref<1x!tpu.dma_semaphore, #tpu.memory_space<semaphore_mem>> -> memref<!tpu.dma_semaphore, #tpu.memory_space<semaphore_mem>>
    tpu.wait_dma2 semaphore(%121 : memref<!tpu.dma_semaphore, #tpu.memory_space<semaphore_mem>>) src(%117 : memref<1024x256xbf16, #tpu.memory_space<any>>) dst(%119 : memref<1024x256xbf16, #tpu.memory_space<vmem>>)
    %c2 = arith.constant 2 : index
    %c0_77 = arith.constant 0 : index
    %c0_78 = arith.constant 0 : index
    %122 = vector.load %arg10[%c2, %c0_77, %c0_78] : memref<4x1024x256xbf16, #tpu.memory_space<vmem>>, vector<1x1024x256xbf16>
    %123 = vector.shape_cast %122 : vector<1x1024x256xbf16> to vector<1024x256xbf16>
    %cst_79 = arith.constant dense<0.000000e+00> : vector<16x256xf32>
    %124 = tpu.matmul %115, %123, %cst_79 {dimension_numbers = #tpu.dot_dimension_numbers<[1], [0], [0], [1], [0, 0, 1, 1], [], []>} : vector<16x1024xbf16>, vector<1024x256xbf16>, vector<16x256xf32> -> vector<16x256xf32>
    %c2_80 = arith.constant 2 : index
    %c0_81 = arith.constant 0 : index
    %125 = vector.load %arg5[%c2_80, %c0_81] : memref<6x256xf32, #tpu.memory_space<vmem>>, vector<1x256xf32>
    %c3 = arith.constant 3 : index
    %c0_82 = arith.constant 0 : index
    %126 = vector.load %arg5[%c3, %c0_82] : memref<6x256xf32, #tpu.memory_space<vmem>>, vector<1x256xf32>
    %cst_83 = arith.constant dense<0.000000e+00> : vector<256xf32>
    %127 = vector.multi_reduction <add>, %124, %cst_83 [0] : vector<16x256xf32> to vector<256xf32>
    %128 = vector.shape_cast %127 : vector<256xf32> to vector<1x256xf32>
    %129 = arith.mulf %124, %124 : vector<16x256xf32>
    %cst_84 = arith.constant dense<0.000000e+00> : vector<256xf32>
    %130 = vector.multi_reduction <add>, %129, %cst_84 [0] : vector<16x256xf32> to vector<256xf32>
    %131 = vector.shape_cast %130 : vector<256xf32> to vector<1x256xf32>
    %c128_i32_85 = arith.constant 128 : i32
    %132 = tpu.dynamic_rotate %128 by %c128_i32_85 dim 1 : vector<1x256xf32>, i32 -> vector<1x256xf32>
    %133 = arith.addf %128, %132 : vector<1x256xf32>
    %c64_i32_86 = arith.constant 64 : i32
    %134 = tpu.dynamic_rotate %133 by %c64_i32_86 dim 1 : vector<1x256xf32>, i32 -> vector<1x256xf32>
    %135 = arith.addf %133, %134 : vector<1x256xf32>
    %c32_i32_87 = arith.constant 32 : i32
    %136 = tpu.dynamic_rotate %135 by %c32_i32_87 dim 1 : vector<1x256xf32>, i32 -> vector<1x256xf32>
    %137 = arith.addf %135, %136 : vector<1x256xf32>
    %cst_88 = arith.constant 7.812500e-03 : f32
    %138 = vector.broadcast %cst_88 : f32 to vector<1x256xf32>
    %139 = arith.mulf %137, %138 : vector<1x256xf32>
    %c128_i32_89 = arith.constant 128 : i32
    %140 = tpu.dynamic_rotate %131 by %c128_i32_89 dim 1 : vector<1x256xf32>, i32 -> vector<1x256xf32>
    %141 = arith.addf %131, %140 : vector<1x256xf32>
    %c64_i32_90 = arith.constant 64 : i32
    %142 = tpu.dynamic_rotate %141 by %c64_i32_90 dim 1 : vector<1x256xf32>, i32 -> vector<1x256xf32>
    %143 = arith.addf %141, %142 : vector<1x256xf32>
    %c32_i32_91 = arith.constant 32 : i32
    %144 = tpu.dynamic_rotate %143 by %c32_i32_91 dim 1 : vector<1x256xf32>, i32 -> vector<1x256xf32>
    %145 = arith.addf %143, %144 : vector<1x256xf32>
    %cst_92 = arith.constant 7.812500e-03 : f32
    %146 = vector.broadcast %cst_92 : f32 to vector<1x256xf32>
    %147 = arith.mulf %145, %146 : vector<1x256xf32>
    %148 = arith.mulf %139, %139 : vector<1x256xf32>
    %149 = arith.subf %147, %148 : vector<1x256xf32>
    %cst_93 = arith.constant 0.000000e+00 : f32
    %150 = vector.broadcast %cst_93 : f32 to vector<1x256xf32>
    %151 = arith.maximumf %149, %150 : vector<1x256xf32>
    %152 = vector.broadcast %139 : vector<1x256xf32> to vector<16x256xf32>
    %153 = arith.subf %124, %152 : vector<16x256xf32>
    %cst_94 = arith.constant 9.99999974E-6 : f32
    %154 = vector.broadcast %cst_94 : f32 to vector<1x256xf32>
    %155 = arith.addf %151, %154 : vector<1x256xf32>
    %156 = math.rsqrt %155 : vector<1x256xf32>
    %157 = arith.mulf %125, %156 : vector<1x256xf32>
    %158 = vector.broadcast %157 : vector<1x256xf32> to vector<16x256xf32>
    %159 = arith.mulf %153, %158 : vector<16x256xf32>
    %160 = vector.broadcast %126 : vector<1x256xf32> to vector<16x256xf32>
    %161 = arith.addf %159, %160 : vector<16x256xf32>
    %cst_95 = arith.constant 2.000000e-01 : f32
    %162 = vector.broadcast %cst_95 : f32 to vector<16x256xf32>
    %163 = arith.mulf %162, %161 : vector<16x256xf32>
    %164 = arith.maximumf %161, %163 : vector<16x256xf32>
    %165 = arith.truncf %164 : vector<16x256xf32> to vector<16x256xbf16>
    %c0_96 = arith.constant 0 : index
    %c0_97 = arith.constant 0 : index
    %166 = vector.load %arg4[%c0_96, %c0_97] : memref<32x16xbf16, #tpu.memory_space<vmem>>, vector<32x16xbf16>
    %cst_98 = arith.constant dense<0.000000e+00> : vector<32x256xf32>
    %167 = tpu.matmul %166, %165, %cst_98 {dimension_numbers = #tpu.dot_dimension_numbers<[1], [0], [0], [1], [0, 0, 1, 1], [], []>} : vector<32x16xbf16>, vector<16x256xbf16>, vector<32x256xf32> -> vector<32x256xf32>
    %168 = vector.extract_strided_slice %167 {offsets = [0, 0], sizes = [8, 256], strides = [1, 1]} : vector<32x256xf32> to vector<8x256xf32>
    %169 = vector.extract_strided_slice %167 {offsets = [8, 0], sizes = [8, 256], strides = [1, 1]} : vector<32x256xf32> to vector<8x256xf32>
    %170 = vector.extract_strided_slice %167 {offsets = [16, 0], sizes = [8, 256], strides = [1, 1]} : vector<32x256xf32> to vector<8x256xf32>
    %171 = vector.extract_strided_slice %167 {offsets = [24, 0], sizes = [8, 256], strides = [1, 1]} : vector<32x256xf32> to vector<8x256xf32>
    %172 = tpu.concatenate %168, %169, %170, %171 in 1 : vector<8x256xf32>, vector<8x256xf32>, vector<8x256xf32>, vector<8x256xf32> -> vector<8x1024xf32>
    %173 = arith.truncf %172 : vector<8x1024xf32> to vector<8x1024xbf16>
    %c3_i32_99 = arith.constant 3 : i32
    %c3_i32_100 = arith.constant 3 : i32
    %c3_i32_101 = arith.constant 3 : i32
    %c0_i32_102 = arith.constant 0 : i32
    %c0_i32_103 = arith.constant 0 : i32
    %174 = tpu.memref_slice %arg8[%c3_i32_99, %c0_i32_102, %c0_i32_103] : memref<4x1024x256xbf16, #tpu.memory_space<any>> -> memref<1x1024x256xbf16, #tpu.memory_space<any>>
    %175 = tpu.memref_squeeze %174 : memref<1x1024x256xbf16, #tpu.memory_space<any>> -> memref<1024x256xbf16, #tpu.memory_space<any>>
    %c0_i32_104 = arith.constant 0 : i32
    %c0_i32_105 = arith.constant 0 : i32
    %176 = tpu.memref_slice %arg10[%c3_i32_100, %c0_i32_104, %c0_i32_105] : memref<4x1024x256xbf16, #tpu.memory_space<vmem>> -> memref<1x1024x256xbf16, #tpu.memory_space<vmem>>
    %177 = tpu.memref_squeeze %176 : memref<1x1024x256xbf16, #tpu.memory_space<vmem>> -> memref<1024x256xbf16, #tpu.memory_space<vmem>>
    %178 = tpu.memref_slice %arg11[%c3_i32_101] : memref<4x!tpu.dma_semaphore, #tpu.memory_space<semaphore_mem>> -> memref<1x!tpu.dma_semaphore, #tpu.memory_space<semaphore_mem>>
    %179 = tpu.memref_squeeze %178 : memref<1x!tpu.dma_semaphore, #tpu.memory_space<semaphore_mem>> -> memref<!tpu.dma_semaphore, #tpu.memory_space<semaphore_mem>>
    tpu.wait_dma2 semaphore(%179 : memref<!tpu.dma_semaphore, #tpu.memory_space<semaphore_mem>>) src(%175 : memref<1024x256xbf16, #tpu.memory_space<any>>) dst(%177 : memref<1024x256xbf16, #tpu.memory_space<vmem>>)
    %c3_106 = arith.constant 3 : index
    %c0_107 = arith.constant 0 : index
    %c0_108 = arith.constant 0 : index
    %180 = vector.load %arg10[%c3_106, %c0_107, %c0_108] : memref<4x1024x256xbf16, #tpu.memory_space<vmem>>, vector<1x1024x256xbf16>
    %181 = vector.shape_cast %180 : vector<1x1024x256xbf16> to vector<1024x256xbf16>
    %cst_109 = arith.constant dense<0.000000e+00> : vector<8x256xf32>
    %182 = tpu.matmul %173, %181, %cst_109 {dimension_numbers = #tpu.dot_dimension_numbers<[1], [0], [0], [1], [0, 0, 1, 1], [], []>} : vector<8x1024xbf16>, vector<1024x256xbf16>, vector<8x256xf32> -> vector<8x256xf32>
    %c4 = arith.constant 4 : index
    %c0_110 = arith.constant 0 : index
    %183 = vector.load %arg5[%c4, %c0_110] : memref<6x256xf32, #tpu.memory_space<vmem>>, vector<1x256xf32>
    %c5 = arith.constant 5 : index
    %c0_111 = arith.constant 0 : index
    %184 = vector.load %arg5[%c5, %c0_111] : memref<6x256xf32, #tpu.memory_space<vmem>>, vector<1x256xf32>
    %cst_112 = arith.constant dense<0.000000e+00> : vector<256xf32>
    %185 = vector.multi_reduction <add>, %182, %cst_112 [0] : vector<8x256xf32> to vector<256xf32>
    %186 = vector.shape_cast %185 : vector<256xf32> to vector<1x256xf32>
    %187 = arith.mulf %182, %182 : vector<8x256xf32>
    %cst_113 = arith.constant dense<0.000000e+00> : vector<256xf32>
    %188 = vector.multi_reduction <add>, %187, %cst_113 [0] : vector<8x256xf32> to vector<256xf32>
    %189 = vector.shape_cast %188 : vector<256xf32> to vector<1x256xf32>
    %c128_i32_114 = arith.constant 128 : i32
    %190 = tpu.dynamic_rotate %186 by %c128_i32_114 dim 1 : vector<1x256xf32>, i32 -> vector<1x256xf32>
    %191 = arith.addf %186, %190 : vector<1x256xf32>
    %c64_i32_115 = arith.constant 64 : i32
    %192 = tpu.dynamic_rotate %191 by %c64_i32_115 dim 1 : vector<1x256xf32>, i32 -> vector<1x256xf32>
    %193 = arith.addf %191, %192 : vector<1x256xf32>
    %cst_116 = arith.constant 3.125000e-02 : f32
    %194 = vector.broadcast %cst_116 : f32 to vector<1x256xf32>
    %195 = arith.mulf %193, %194 : vector<1x256xf32>
    %c128_i32_117 = arith.constant 128 : i32
    %196 = tpu.dynamic_rotate %189 by %c128_i32_117 dim 1 : vector<1x256xf32>, i32 -> vector<1x256xf32>
    %197 = arith.addf %189, %196 : vector<1x256xf32>
    %c64_i32_118 = arith.constant 64 : i32
    %198 = tpu.dynamic_rotate %197 by %c64_i32_118 dim 1 : vector<1x256xf32>, i32 -> vector<1x256xf32>
    %199 = arith.addf %197, %198 : vector<1x256xf32>
    %cst_119 = arith.constant 3.125000e-02 : f32
    %200 = vector.broadcast %cst_119 : f32 to vector<1x256xf32>
    %201 = arith.mulf %199, %200 : vector<1x256xf32>
    %202 = arith.mulf %195, %195 : vector<1x256xf32>
    %203 = arith.subf %201, %202 : vector<1x256xf32>
    %cst_120 = arith.constant 0.000000e+00 : f32
    %204 = vector.broadcast %cst_120 : f32 to vector<1x256xf32>
    %205 = arith.maximumf %203, %204 : vector<1x256xf32>
    %206 = vector.broadcast %195 : vector<1x256xf32> to vector<8x256xf32>
    %207 = arith.subf %182, %206 : vector<8x256xf32>
    %cst_121 = arith.constant 9.99999974E-6 : f32
    %208 = vector.broadcast %cst_121 : f32 to vector<1x256xf32>
    %209 = arith.addf %205, %208 : vector<1x256xf32>
    %210 = math.rsqrt %209 : vector<1x256xf32>
    %211 = arith.mulf %183, %210 : vector<1x256xf32>
    %212 = vector.broadcast %211 : vector<1x256xf32> to vector<8x256xf32>
    %213 = arith.mulf %207, %212 : vector<8x256xf32>
    %214 = vector.broadcast %184 : vector<1x256xf32> to vector<8x256xf32>
    %215 = arith.addf %213, %214 : vector<8x256xf32>
    %cst_122 = arith.constant 2.000000e-01 : f32
    %216 = vector.broadcast %cst_122 : f32 to vector<8x256xf32>
    %217 = arith.mulf %216, %215 : vector<8x256xf32>
    %218 = arith.maximumf %215, %217 : vector<8x256xf32>
    %c0_123 = arith.constant 0 : index
    %c0_124 = arith.constant 0 : index
    %219 = vector.load %arg6[%c0_123, %c0_124] : memref<8x256xf32, #tpu.memory_space<vmem>>, vector<8x256xf32>
    %220 = arith.mulf %218, %219 : vector<8x256xf32>
    %c0_125 = arith.constant 0 : index
    %c0_126 = arith.constant 0 : index
    %221 = vector.load %arg7[%c0_125, %c0_126] : memref<2x8xf32, #tpu.memory_space<vmem>>, vector<2x8xf32>
    %cst_127 = arith.constant dense<0.000000e+00> : vector<2x256xf32>
    %222 = tpu.matmul %221, %220, %cst_127 {dimension_numbers = #tpu.dot_dimension_numbers<[1], [0], [0], [1], [0, 0, 1, 1], [], []>} : vector<2x8xf32>, vector<8x256xf32>, vector<2x256xf32> -> vector<2x256xf32>
    %cst_128 = arith.constant dense<0.000000e+00> : vector<2xf32>
    %223 = vector.multi_reduction <add>, %222, %cst_128 [1] : vector<2x256xf32> to vector<2xf32>
    %224 = vector.shape_cast %223 : vector<2xf32> to vector<2x1xf32>
    %cst_129 = arith.constant 0.000000e+00 : f32
    %225 = vector.broadcast %cst_129 : f32 to vector<2x1xf32>
    %226 = arith.subf %225, %224 : vector<2x1xf32>
    %227 = math.exp %226 : vector<2x1xf32>
    %cst_130 = arith.constant 1.000000e+00 : f32
    %228 = vector.broadcast %cst_130 : f32 to vector<2x1xf32>
    %229 = arith.addf %228, %227 : vector<2x1xf32>
    %cst_131 = arith.constant 1.000000e+00 : f32
    %230 = vector.broadcast %cst_131 : f32 to vector<2x1xf32>
    %231 = arith.divf %230, %229 : vector<2x1xf32>
    %232 = vector.shape_cast %231 : vector<2x1xf32> to vector<2x1xf32>
    %233 = vector.broadcast %232 : vector<2x1xf32> to vector<2x128xf32>
    %c0_132 = arith.constant 0 : index
    %c0_133 = arith.constant 0 : index
    %234 = vector.load %arg9[%c0_132, %c0_133] : memref<2x128xf32, #tpu.memory_space<vmem>>, vector<2x128xf32>
    tpu.vector_store %arg9[%c0_132, %c0_133], %233 {strides = array<i32>} : memref<2x128xf32, #tpu.memory_space<vmem>>, vector<2x128xf32>,
    return
  }
}

</mosaic_0001>

<bundles_post_ra>
// kernel: dcgan_discriminator_forward.1
= control target key start
LH: loop header
LB: loop body
LE: loop exit
PB: predicated region body
PF: predicated region fallthrough
CT: control target
= control target key end

     0   :  { %14 = vsyncpa [#allocation5], 0  ;;  %s7976_s0 = inlined_call_operand.vmem [shape: bf16[128,256], index: 0, kind: input, shape index: {}]   ;;  %s7977_s1 = inlined_call_operand.hbm [shape: bf16[256,128], index: 1, kind: input, shape index: {}]   ;;  %s7978_s2 = inlined_call_operand.vmem [shape: bf16[128,64], index: 2, kind: input, shape index: {}]   ;;  %s7979_s3 = inlined_call_operand.vmem [shape: bf16[64,32], index: 3, kind: input, shape index: {}]   ;;  %s7980_s4 = inlined_call_operand.vmem [shape: bf16[32,16], index: 4, kind: input, shape index: {}]   ;;  %s7981_s5 = inlined_call_operand.hbm [shape: f32[6,256], index: 5, kind: input, shape index: {}]   ;;  %s7982_s6 = inlined_call_operand.hbm [shape: f32[8,256], index: 6, kind: input, shape index: {}]   ;;  %s7983_s7 = inlined_call_operand.hbm [shape: f32[2,8], index: 7, kind: input, shape index: {}]   ;;  %s7984_s8 = inlined_call_operand.hbm [shape: bf16[4,1024,256], index: 8, kind: input, shape index: {}]   ;;  %s7985_s9 = inlined_call_operand.vmem [shape: f32[2,128], index: 9, kind: output, shape index: {}]  }
   0x1   :  { %15 = vsyncpa [#allocation7], 0 }
   0x2   :  { %16 = vsyncpa [#allocation10], 0  ;;  %s7078_s30 = smov [#allocation6]   ;;  %s7079_s11 = smov [#allocation4]  }
   0x3   :  { %s43_s10 = sshll.u32 %s7078_s30, 4  ;;  %s24_s12 = sshll.u32 %s7079_s11, 4  ;;  %s44_s10 = int_to_ptr.vmem [resolvable:$true] %s43_s10  ;;  %s25_s12 = int_to_ptr.vmem [resolvable:$true] %s24_s12 }
   0x4   :  { %s6903_s13 = scalar_lea.vmem %s44_s10, 256  ;;  %p6908_p1 = scmp.lt.s32.totalorder %s44_s10, %s44_s10 }
   0x5   :  { %p6904_p0 = scmp.ne.s32.totalorder %s44_s10, %s6903_s13  ;;  %p6909_p2 = scmp.lt.s32.totalorder %s6903_s13, %s6903_s13 }
   0x7   :  { %p6910_p3 = por %p6909_p2, %p6908_p1 }
   0x9   :  { %p6911_p4 = pnand %p6910_p3, %p6904_p0 }
   0xb   :  { %6914 = shalt.err (!%p6911_p4)
}
   0xc   :  { %46 = dma.hbm_to_vmem [thread:$0]  %s7981_s5, 256, %s44_s10, [#allocation7]  }
   0xd   :  { %s6923_s16 = scalar_lea.vmem %s25_s12, 2048  ;;  %p6928_p6 = scmp.lt.s32.totalorder %s25_s12, %s25_s12 }
   0xe   :  { %p6924_p5 = scmp.ne.s32.totalorder %s25_s12, %s6923_s16  ;;  %p6929_p7 = scmp.lt.s32.totalorder %s6923_s16, %s6923_s16 }
  0x10   :  { %p6930_p8 = por %p6929_p7, %p6928_p6 }
  0x12   :  { %p6931_p9 = pnand %p6930_p8, %p6924_p5 }
  0x14   :  { %6934 = shalt.err (!%p6931_p9)
}
  0x15   :  { %s7080_s17 = smov 64   ;;  %s7081_s18 = smov 4  }
  0x16   :  { %30 = dma.hbm_to_vmem [thread:$0]  %s7977_s1, 2048, %s25_s12, [#allocation5], %s7080_s17, %s7080_s17, %s7081_s18  }
  0x17   :  { %s7082_s21 = smov [#allocation8]   ;;  %s7083_s23 = smov [#allocation9]  }
  0x18   :  { %s53_s22 = sshll.u32 %s7082_s21, 4  ;;  %s63_s24 = sshll.u32 %s7083_s23, 4  ;;  %s54_s22 = int_to_ptr.vmem [resolvable:$true] %s53_s22  ;;  %s64_s24 = int_to_ptr.vmem [resolvable:$true] %s63_s24 }
  0x19   :  { %s6943_s5 = scalar_lea.vmem %s54_s22, 256  ;;  %p6948_p11 = scmp.lt.s32.totalorder %s54_s22, %s54_s22 }
  0x1a   :  { %p6944_p10 = scmp.ne.s32.totalorder %s54_s22, %s6943_s5  ;;  %p6949_p12 = scmp.lt.s32.totalorder %s6943_s5, %s6943_s5 }
  0x1c   :  { %p6950_p13 = por %p6949_p12, %p6948_p11 }
  0x1e   :  { %p6951_p0 = pnand %p6950_p13, %p6944_p10 }
  0x20   :  { %6954 = shalt.err (!%p6951_p0)
}
  0x21   :  { %56 = dma.hbm_to_vmem [thread:$0]  %s7982_s6, 256, %s54_s22, [#allocation7]  }
  0x22   :  { %s6963_s27 = scalar_lea.vmem %s64_s24, 32  ;;  %p6968_p2 = scmp.lt.s32.totalorder %s64_s24, %s64_s24 }
  0x23   :  { %p6964_p1 = scmp.ne.s32.totalorder %s64_s24, %s6963_s27  ;;  %p6969_p3 = scmp.lt.s32.totalorder %s6963_s27, %s6963_s27 }
  0x25   :  { %p6970_p4 = por %p6969_p3, %p6968_p2 }
  0x27   :  { %p6971_p5 = pnand %p6970_p4, %p6964_p1 }
  0x29   :  { %6974 = shalt.err (!%p6971_p5)
}
  0x2a   :  { %66 = dma.hbm_to_vmem [thread:$0]  %s7983_s7, 32, %s64_s24, [#allocation10]  }
  0x2b   :  { %7064 = dma.done.wait [#allocation5], 2048  }
  0x2c   :  { %7065 = vsyncadd [#allocation5], 4294965248 }
  0x2d   :  { %7066 = dma.done.wait [#allocation7], 512  }
  0x2e   :  { %7067 = vsyncadd [#allocation7], 4294966784 }
  0x2f   :  { %7068 = dma.done.wait [#allocation10], 32  }
  0x30   :  { %7069 = vsyncadd [#allocation10], 4294967264  ;;  %v7986_v0 = vmov 0   ;;  %v6063_v1 = vld [vmem:[%s7976_s0 + $0x74] ss:$8 sps:$4 sm:$0xff]   ;;  %v6087_v17 = vld [vmem:[#allocation4] sm:$0xff]  }
  0x31   :  { %389 = vmatprep.mubr.bf16.mxu0 %v7986_v0  ;;  %v6065_v2 = vld [vmem:[%s7976_s0 + $0x70] ss:$8 sps:$4 sm:$0xff]   ;;  %357 = vmatprep.subr.bf16.mxu0 %v6063_v1  ;;  %v6066_v3 = vld [vmem:[%s7976_s0 + $0x64] ss:$8 sps:$4 sm:$0xff]   ;;  %v6068_v4 = vld [vmem:[%s7976_s0 + $0x60] ss:$8 sps:$4 sm:$0xff]  }
  0x32   :  { %358 = vmatpush1.bf16.msra.mxu0 %v6065_v2  ;;  %v6069_v5 = vld [vmem:[%s7976_s0 + $0x54] ss:$8 sps:$4 sm:$0xff]   ;;  %v6071_v6 = vld [vmem:[%s7976_s0 + $0x50] ss:$8 sps:$4 sm:$0xff]   ;;  %v6072_v7 = vld [vmem:[%s7976_s0 + $0x44] ss:$8 sps:$4 sm:$0xff]  }
  0x33   :  { %359 = vmatprep.subr.bf16.mxu0 %v6066_v3  ;;  %v6074_v8 = vld [vmem:[%s7976_s0 + $0x40] ss:$8 sps:$4 sm:$0xff]   ;;  %v6075_v9 = vld [vmem:[%s7976_s0 + $0x34] ss:$8 sps:$4 sm:$0xff]   ;;  %v6077_v10 = vld [vmem:[%s7976_s0 + $0x30] ss:$8 sps:$4 sm:$0xff]  }
  0x34   :  { %v6078_v11 = vld [vmem:[%s7976_s0 + $0x24] ss:$8 sps:$4 sm:$0xff]   ;;  %v6080_v12 = vld [vmem:[%s7976_s0 + $0x20] ss:$8 sps:$4 sm:$0xff]   ;;  %v6081_v13 = vld [vmem:[%s7976_s0 + $0x14] ss:$8 sps:$4 sm:$0xff]  }
  0x35   :  { %v6083_v14 = vld [vmem:[%s7976_s0 + $0x10] ss:$8 sps:$4 sm:$0xff]   ;;  %v6084_v15 = vld [vmem:[%s7976_s0 + $0x4] ss:$8 sps:$4 sm:$0xff]   ;;  %v6086_v16 = vld [vmem:[%s7976_s0] ss:$8 sps:$4 sm:$0xff]  }
  0x36   :  { %360 = vmatpush1.bf16.msra.mxu0 %v6068_v4  ;;  %v6088_v18 = vld [vmem:[#allocation4 + $0x8] sm:$0xff]   ;;  %v6089_v19 = vld [vmem:[#allocation4 + $0x10] sm:$0xff]   ;;  %v6090_v20 = vld [vmem:[#allocation4 + $0x18] sm:$0xff]   ;;  %s7085_s0 = smov [#allocation2]   ;;  %s7086_s15 = smov [#allocation2 + $0x400]  }
  0x37   :  { %361 = vmatprep.subr.bf16.mxu0 %v6069_v5  ;;  %v6091_v21 = vld [vmem:[#allocation4 + $0x20] sm:$0xff]   ;;  %v6092_v22 = vld [vmem:[#allocation4 + $0x28] sm:$0xff]   ;;  %v6093_v23 = vld [vmem:[#allocation4 + $0x30] sm:$0xff]   ;;  %s87_s14 = sshll.u32 %s7085_s0, 4  ;;  %s101_s16 = sshll.u32 %s7086_s15, 4  ;;  %s7221_s14 = int_to_ptr.vmem [resolvable:$true] %s87_s14  ;;  %s102_s16 = int_to_ptr.vmem [resolvable:$true] %s101_s16 }
  0x38   :  { %v6094_v24 = vld [vmem:[#allocation4 + $0x38] sm:$0xff]   ;;  %v6095_v25 = vld [vmem:[#allocation4 + $0x40] sm:$0xff]   ;;  %v6096_v26 = vld [vmem:[#allocation4 + $0x48] sm:$0xff]   ;;  %s6983_s18 = scalar_lea.vmem %s7221_s14, 16384  ;;  %s7226_s19 = scalar_lea.vmem %s7221_s14, 65536 }
  0x39   :  { %v6097_v27 = vld [vmem:[#allocation4 + $0x50] sm:$0xff]   ;;  %v6098_v28 = vld [vmem:[#allocation4 + $0x58] sm:$0xff]   ;;  %v6099_v29 = vld [vmem:[#allocation4 + $0x60] sm:$0xff]   ;;  %p6984_p6 = scmp.ne.s32.totalorder %s7221_s14, %s6983_s18  ;;  %p6988_p7 = scmp.lt.s32.totalorder %s7221_s14, %s7221_s14 }
  0x3a   :  { %362 = vmatpush1.bf16.msra.mxu0 %v6071_v6  ;;  %v6100_v30 = vld [vmem:[#allocation4 + $0x68] sm:$0xff]   ;;  %v6101_v31 = vld [vmem:[#allocation4 + $0x70] sm:$0xff]   ;;  %v6102_v32 = vld [vmem:[#allocation4 + $0x78] sm:$0xff]   ;;  %p6989_p8 = scmp.lt.s32.totalorder %s7226_s19, %s6983_s18 }
  0x3b   :  { %363 = vmatprep.subr.bf16.mxu0 %v6072_v7 }
  0x3c   :  { %p6990_p9 = por %p6989_p8, %p6988_p7 }
  0x3e   :  { %364 = vmatpush1.bf16.msra.mxu0 %v6074_v8  ;;  %p6991_p10 = pnand %p6990_p9, %p6984_p6 }
  0x3f   :  { %365 = vmatprep.subr.bf16.mxu0 %v6075_v9 }
  0x42   :  { %366 = vmatpush1.bf16.msra.mxu0 %v6077_v10 }
  0x43   :  { %367 = vmatprep.subr.bf16.mxu0 %v6078_v11 }
  0x46   :  { %368 = vmatpush1.bf16.msra.mxu0 %v6080_v12 }
  0x47   :  { %369 = vmatprep.subr.bf16.mxu0 %v6081_v13 }
  0x4a   :  { %370 = vmatpush1.bf16.msra.mxu0 %v6083_v14 }
  0x4b   :  { %371 = vmatprep.subr.bf16.mxu0 %v6084_v15 }
  0x4e   :  { %372 = vmatpush1.bf16.msra.mxu0 %v6086_v16 }
  0x51   :  { %390 = vmatmul.mubr.bf16.vlgmr.msra.gmra.mxu0 %v6087_v17 }
  0x52   :  { %399 = vmatprep.mubr.bf16.mxu0 %v7986_v0 }
  0x59   :  { %400 = vmatmul.mubr.bf16.gmra.mxu0 %v6088_v18 }
  0x5a   :  { %409 = vmatprep.mubr.bf16.mxu0 %v7986_v0 }
  0x61   :  { %410 = vmatmul.mubr.bf16.gmra.mxu0 %v6089_v19 }
  0x62   :  { %419 = vmatprep.mubr.bf16.mxu0 %v7986_v0 }
  0x69   :  { %420 = vmatmul.mubr.bf16.gmra.mxu0 %v6090_v20 }
  0x6a   :  { %429 = vmatprep.mubr.bf16.mxu0 %v7986_v0 }
  0x71   :  { %430 = vmatmul.mubr.bf16.gmra.mxu0 %v6091_v21 }
  0x72   :  { %439 = vmatprep.mubr.bf16.mxu0 %v7986_v0 }
  0x79   :  { %440 = vmatmul.mubr.bf16.gmra.mxu0 %v6092_v22 }
  0x7a   :  { %449 = vmatprep.mubr.bf16.mxu0 %v7986_v0 }
  0x81   :  { %450 = vmatmul.mubr.bf16.gmra.mxu0 %v6093_v23 }
  0x82   :  { %459 = vmatprep.mubr.bf16.mxu0 %v7986_v0 }
  0x89   :  { %460 = vmatmul.mubr.bf16.gmra.mxu0 %v6094_v24 }
  0x8a   :  { %469 = vmatprep.mubr.bf16.mxu0 %v7986_v0 }
  0x91   :  { %470 = vmatmul.mubr.bf16.gmra.mxu0 %v6095_v25 }
  0x92   :  { %479 = vmatprep.mubr.bf16.mxu0 %v7986_v0 }
  0x99   :  { %480 = vmatmul.mubr.bf16.gmra.mxu0 %v6096_v26 }
  0x9a   :  { %489 = vmatprep.mubr.bf16.mxu0 %v7986_v0 }
  0xa1   :  { %490 = vmatmul.mubr.bf16.gmra.mxu0 %v6097_v27 }
  0xa2   :  { %499 = vmatprep.mubr.bf16.mxu0 %v7986_v0 }
  0xa9   :  { %500 = vmatmul.mubr.bf16.gmra.mxu0 %v6098_v28 }
  0xaa   :  { %509 = vmatprep.mubr.bf16.mxu0 %v7986_v0 }
  0xb1   :  { %510 = vmatmul.mubr.bf16.gmra.mxu0 %v6099_v29 }
  0xb2   :  { %519 = vmatprep.mubr.bf16.mxu0 %v7986_v0 }
  0xb9   :  { %520 = vmatmul.mubr.bf16.gmra.mxu0 %v6100_v30 }
  0xba   :  { %529 = vmatprep.mubr.bf16.mxu0 %v7986_v0 }
  0xc1   :  { %530 = vmatmul.mubr.bf16.gmra.mxu0 %v6101_v31 }
  0xc2   :  { %539 = vmatprep.mubr.bf16.mxu0 %v7986_v0 }
  0xc9   :  { %540 = vmatmul.mubr.bf16.gmra.mxu0 %v6102_v32 }
  0xca   :  { %6994 = shalt.err (!%p6991_p10)  }
  0xcb   :  { %90 = dma.hbm_to_vmem [thread:$0]  %s7984_s8, 16384, %s7221_s14, [#allocation3] }
  0xcc   :  { %s91_s24 = scalar_lea.hbm %s7984_s8, 16384  ;;  %s7005_s5 = scalar_lea.vmem %s102_s16, 16384 }
  0xcd   :  { %p7006_p11 = scmp.ne.s32.totalorder %s102_s16, %s7005_s5  ;;  %p7010_p12 = scmp.lt.s32.totalorder %s102_s16, %s7221_s14 }
  0xce   :  { %p7011_p13 = scmp.lt.s32.totalorder %s7226_s19, %s7005_s5 }
  0xd0   :  { %p7012_p0 = por %p7011_p13, %p7010_p12 }
  0xd2   :  { %p7013_p1 = pnand %p7012_p0, %p7006_p11 }
  0xd4   :  { %7016 = shalt.err (!%p7013_p1)  }
  0xd5   :  { %104 = dma.hbm_to_vmem [thread:$0]  %s91_s24, 16384, %s102_s16, [#allocation3 + $0x1] }
  0xd6   :  { %s105_s27 = scalar_lea.hbm %s7984_s8, 32768  ;;  %s7087_s1 = smov [#allocation2 + $0x800]  }
  0xd7   :  { %s115_s28 = sshll.u32 %s7087_s1, 4  ;;  %s119_s30 = scalar_lea.hbm %s7984_s8, 49152  ;;  %s116_s28 = int_to_ptr.vmem [resolvable:$true] %s115_s28 }
  0xd8   :  { %s7028_s10 = scalar_lea.vmem %s116_s28, 16384  ;;  %p7033_p3 = scmp.lt.s32.totalorder %s116_s28, %s7221_s14 }
  0xd9   :  { %p7029_p2 = scmp.ne.s32.totalorder %s116_s28, %s7028_s10  ;;  %p7034_p4 = scmp.lt.s32.totalorder %s7226_s19, %s7028_s10 }
  0xdb   :  { %p7035_p5 = por %p7034_p4, %p7033_p3 }
  0xdd   :  { %p7036_p6 = pnand %p7035_p5, %p7029_p2 }
 0x111   :  { %v7243_v33 = vpop.f32.mrf.mxu0 }
 0x113   :  { %v7248_v34 = vpop.f32.mrf.mxu0 }
 0x114   :  { %7039 = shalt.err (!%p7036_p6)  }
 0x115   :  { %118 = dma.hbm_to_vmem [thread:$0]  %s105_s27, 16384, %s116_s28, [#allocation3 + $0x2]  ;;  %v7252_v35 = vpop.f32.mrf.mxu0 }
 0x116   :  { %s7088_s11 = smov [#allocation2 + $0xc00]  }
 0x117   :  { %s129_s7 = sshll.u32 %s7088_s11, 4  ;;  %s130_s7 = int_to_ptr.vmem [resolvable:$true] %s129_s7 }
 0x118   :  { %s7051_s8 = scalar_lea.vmem %s130_s7, 16384  ;;  %p7056_p8 = scmp.lt.s32.totalorder %s130_s7, %s7221_s14 }
 0x119   :  { %p7052_p7 = scmp.ne.s32.totalorder %s130_s7, %s7051_s8  ;;  %p7057_p9 = scmp.lt.s32.totalorder %s7226_s19, %s7051_s8 }
 0x11b   :  { %p7058_p10 = por %p7057_p9, %p7056_p8 }
 0x11d   :  { %p7059_p11 = pnand %p7058_p10, %p7052_p7 }
 0x11f   :  { %7062 = shalt.err (!%p7059_p11)  }
 0x120   :  { %132 = dma.hbm_to_vmem [thread:$0]  %s119_s30, 16384, %s130_s7, [#allocation3 + $0x3]  ;;  %v7258_v37 = vpop.f32.mrf.mxu0 }
 0x122   :  { %v7262_v39 = vpop.f32.mrf.mxu0 }
 0x124   :  { %v7264_v40 = vpop.f32.mrf.mxu0 }
 0x126   :  { %v7266_v41 = vpop.f32.mrf.mxu0 }
 0x128   :  { %v7270_v43 = vpop.f32.mrf.mxu0 }
 0x12a   :  { %v7274_v45 = vpop.f32.mrf.mxu0 }
 0x12c   :  { %v7276_v46 = vpop.f32.mrf.mxu0 }
 0x12e   :  { %v7278_v47 = vpop.f32.mrf.mxu0 }
 0x130   :  { %v7282_v49 = vpop.f32.mrf.mxu0 }
 0x132   :  { %v7286_v51 = vpop.f32.mrf.mxu0 }
 0x134   :  { %v7288_v52 = vpop.f32.mrf.mxu0 }
 0x136   :  { %v7290_v53 = vpop.f32.mrf.mxu0 }
 0x138   :  { %v7294_v55 = vpop.f32.mrf.mxu0 }
 0x13a   :  { %v7298_v57 = vpop.f32.mrf.mxu0 }
 0x13c   :  { %v7300_v58 = vpop.f32.mrf.mxu0 }
 0x13e   :  { %v7302_v59 = vpop.f32.mrf.mxu0 }
 0x140   :  { %v7306_v61 = vpop.f32.mrf.mxu0 }
 0x142   :  { %v7310_v63 = vpop.f32.mrf.mxu0 }
 0x144   :  { %v7312_v1 = vpop.f32.mrf.mxu0 }
 0x146   :  { %v7314_v2 = vpop.f32.mrf.mxu0 }
 0x148   :  { %v7318_v4 = vpop.f32.mrf.mxu0 }
 0x14a   :  { %v7322_v6 = vpop.f32.mrf.mxu0 }
 0x14c   :  { %v7324_v7 = vpop.f32.mrf.mxu0 }
 0x14e   :  { %v7326_v8 = vpop.f32.mrf.mxu0 }
 0x150   :  { %v7330_v10 = vpop.f32.mrf.mxu0 }
 0x152   :  { %v7334_v12 = vpop.f32.mrf.mxu0 }
 0x154   :  { %v7336_v13 = vpop.f32.mrf.mxu0 }
 0x156   :  { %v7338_v14 = vpop.f32.mrf.mxu0 }
 0x158   :  { %v7342_v16 = vpop.f32.mrf.mxu0 }
 0x15a   :  { %v7346_v18 = vpop.f32.mrf.mxu0 }
 0x15c   :  { %v473_v19 = vpop.f32.mrf.mxu0 }
 0x15e   :  { %v7348_v20 = vpop.f32.mrf.mxu0 }
 0x160   :  { %v477_v22 = vpop.f32.mrf.mxu0 }
 0x161   :  { %v555_v23 = vpack.c.bf16 %v477_v22, %v473_v19 }
 0x162   :  { %v7352_v24 = vpop.f32.mrf.mxu0 }
 0x164   :  { %v7354_v25 = vpop.f32.mrf.mxu0 }
 0x166   :  { %v7356_v26 = vpop.f32.mrf.mxu0 }
 0x168   :  { %v7360_v28 = vpop.f32.mrf.mxu0 }
 0x16a   :  { %v7364_v30 = vpop.f32.mrf.mxu0 }
 0x16c   :  { %v7366_v31 = vpop.f32.mrf.mxu0 }
 0x16e   :  { %v7368_v32 = vpop.f32.mrf.mxu0 }
 0x170   :  { %v7372_v22 = vpop.f32.mrf.mxu0 }
 0x172   :  { %v7376_v17 = vpop.f32.mrf.mxu0 }
 0x174   :  { %v7378_v9 = vpop.f32.mrf.mxu0 }
 0x176   :  { %v7380_v11 = vpop.f32.mrf.mxu0 }
 0x178   :  { %v7384_v5 = vpop.f32.mrf.mxu0 }
 0x17a   :  { %v7388_v0 = vpop.f32.mrf.mxu0 }
 0x17c   :  { %v7390_v19 = vpop.f32.mrf.mxu0 }
 0x17e   :  { %v7392_v27 = vpop.f32.mrf.mxu0 }
 0x180   :  { %v7396_v62 = vpop.f32.mrf.mxu0 }
 0x182   :  { %v7400_v3 = vpop.f32.mrf.mxu0 }
 0x183   :  { %7998 = vst [vmem:[#allocation28_spill] sm:$0xff] %v7400_v3 }
 0x184   :  { %v7402_v54 = vpop.f32.mrf.mxu0 }
 0x185   :  { %7999 = vst [vmem:[#allocation29_spill] sm:$0xff] %v7402_v54 }
 0x186   :  { %v7404_v21 = vpop.f32.mrf.mxu0 }
 0x187   :  { %8000 = vst [vmem:[#allocation30_spill] sm:$0xff] %v7404_v21 }
 0x188   :  { %v7408_v56 = vpop.f32.mrf.mxu0 }
 0x18a   :  { %v7412_v15 = vpop.f32.mrf.mxu0 }
 0x18b   :  { %8001 = vst [vmem:[#allocation31_spill] sm:$0xff] %v7412_v15 }
 0x18c   :  { %v7414_v50 = vpop.f32.mrf.mxu0 }
 0x18d   :  { %8002 = vst [vmem:[#allocation32_spill] sm:$0xff] %v7414_v50 }
 0x18e   :  { %v7416_v42 = vpop.f32.mrf.mxu0 }
 0x18f   :  { %8003 = vst [vmem:[#allocation33_spill] sm:$0xff] %v7416_v42 }
 0x190   :  { %v7420_v44 = vpop.f32.mrf.mxu0 }
 0x192   :  { %v7424_v60 = vpop.f32.mrf.mxu0 }
 0x193   :  { %8004 = vst [vmem:[#allocation34_spill] sm:$0xff] %v7424_v60 }
 0x194   :  { %v7426_v38 = vpop.f32.mrf.mxu0 }
 0x195   :  { %8005 = vst [vmem:[#allocation35_spill] sm:$0xff] %v7426_v38 }
 0x196   :  { %v7428_v3 = vpop.f32.mrf.mxu0 }
 0x197   :  { %8006 = vst [vmem:[#allocation36_spill] sm:$0xff] %v7428_v3 }
 0x198   :  { %v7432_v21 = vpop.f32.mrf.mxu0 }
 0x199   :  { %8007 = vst [vmem:[#allocation37_spill] sm:$0xff] %v7432_v21 }
 0x19a   :  { %7070 = dma.done.wait [#allocation3], 16384 }
 0x19b   :  { %7071 = vsyncadd [#allocation3], 4294950912  ;;  %v8008_v29 = vpack.c.bf16 %v7258_v37, %v7248_v34  ;;  %1532 = vmatprep.mubr.bf16.mxu0 %v555_v23  ;;  %v6103_v36 = vld [vmem:[#allocation2 + $0x74] ss:$8 sps:$4 sm:$0xff]   ;;  %v6105_v15 = vld [vmem:[#allocation2 + $0x70] ss:$8 sps:$4 sm:$0xff]  }
 0x19c   :  { %1354 = vmatprep.subr.bf16.mxu1 %v6103_v36  ;;  %v6106_v42 = vld [vmem:[#allocation2 + $0x64] ss:$8 sps:$4 sm:$0xff]   ;;  %v6108_v50 = vld [vmem:[#allocation2 + $0x60] ss:$8 sps:$4 sm:$0xff]   ;;  %v6109_v48 = vld [vmem:[#allocation2 + $0x54] ss:$8 sps:$4 sm:$0xff]  }
 0x19d   :  { %1386 = vmatprep.mubr.bf16.mxu1 %v8008_v29  ;;  %1355 = vmatpush1.bf16.msra.mxu1 %v6105_v15  ;;  %v6111_v60 = vld [vmem:[#allocation2 + $0x50] ss:$8 sps:$4 sm:$0xff]   ;;  %v6112_v3 = vld [vmem:[#allocation2 + $0x44] ss:$8 sps:$4 sm:$0xff]   ;;  %v6114_v54 = vld [vmem:[#allocation2 + $0x40] ss:$8 sps:$4 sm:$0xff]  }
 0x19e   :  { %1356 = vmatprep.subr.bf16.mxu1 %v6106_v42  ;;  %v6115_v38 = vld [vmem:[#allocation2 + $0x34] ss:$8 sps:$4 sm:$0xff]   ;;  %v6117_v34 = vld [vmem:[#allocation2 + $0x30] ss:$8 sps:$4 sm:$0xff]   ;;  %v6118_v37 = vld [vmem:[#allocation2 + $0x24] ss:$8 sps:$4 sm:$0xff]  }
 0x19f   :  { %v6120_v23 = vld [vmem:[#allocation2 + $0x20] ss:$8 sps:$4 sm:$0xff]   ;;  %v6121_v36 = vld [vmem:[#allocation2 + $0x14] ss:$8 sps:$4 sm:$0xff]   ;;  %v6123_v15 = vld [vmem:[#allocation2 + $0x10] ss:$8 sps:$4 sm:$0xff]  }
 0x1a0   :  { %v6154_v42 = vld [vmem:[#allocation2 + $0x274] ss:$8 sps:$4 sm:$0xff]   ;;  %v6156_v29 = vld [vmem:[#allocation2 + $0x270] ss:$8 sps:$4 sm:$0xff]   ;;  %v6130_v21 = vld [vmem:[#allocation2 + $0xe4] ss:$8 sps:$4 sm:$0xff]  }
 0x1a1   :  { %1357 = vmatpush1.bf16.msra.mxu1 %v6108_v50  ;;  %v6124_v50 = vld [vmem:[#allocation2 + $0x4] ss:$8 sps:$4 sm:$0xff]   ;;  %1500 = vmatprep.subr.bf16.mxu0 %v6154_v42  ;;  %v6132_v42 = vld [vmem:[#allocation2 + $0xe0] ss:$8 sps:$4 sm:$0xff]   ;;  %vm1742_vm0 = vcmask 523264  }
 0x1a2   :  { %1358 = vmatprep.subr.bf16.mxu1 %v6109_v48  ;;  %1501 = vmatpush1.bf16.msra.mxu0 %v6156_v29  ;;  %v6160_v48 = vld [vmem:[#allocation2 + $0x264] ss:$8 sps:$4 sm:$0xff]   ;;  %v6178_v29 = vld [vmem:[#allocation2 + $0x234] ss:$8 sps:$4 sm:$0xff]  }
 0x1a3   :  { %1502 = vmatprep.subr.bf16.mxu0 %v6160_v48  ;;  %v6135_v48 = vld [vmem:[#allocation2 + $0xd0] ss:$8 sps:$4 sm:$0xff]  }
 0x1a5   :  { %1359 = vmatpush1.bf16.msra.mxu1 %v6111_v60  ;;  %v6162_v60 = vld [vmem:[#allocation2 + $0x260] ss:$8 sps:$4 sm:$0xff]  }
 0x1a6   :  { %1360 = vmatprep.subr.bf16.mxu1 %v6112_v3  ;;  %v6126_v3 = vld [vmem:[#allocation2] ss:$8 sps:$4 sm:$0xff]   ;;  %1503 = vmatpush1.bf16.msra.mxu0 %v6162_v60  ;;  %v6184_v60 = vld [vmem:[#allocation2 + $0x224] ss:$8 sps:$4 sm:$0xff]  }
 0x1a9   :  { %1361 = vmatpush1.bf16.msra.mxu1 %v6114_v54  ;;  %v6127_v54 = vld [vmem:[#allocation2 + $0xf4] ss:$8 sps:$4 sm:$0xff]  }
 0x1aa   :  { %1362 = vmatprep.subr.bf16.mxu1 %v6115_v38  ;;  %v6166_v38 = vld [vmem:[#allocation2 + $0x254] ss:$8 sps:$4 sm:$0xff]  }
 0x1ab   :  { %1504 = vmatprep.subr.bf16.mxu0 %v6166_v38  ;;  %v6186_v38 = vld [vmem:[#allocation2 + $0x220] ss:$8 sps:$4 sm:$0xff]  }
 0x1ad   :  { %1363 = vmatpush1.bf16.msra.mxu1 %v6117_v34  ;;  %v6168_v34 = vld [vmem:[#allocation2 + $0x250] ss:$8 sps:$4 sm:$0xff]  }
 0x1ae   :  { %1364 = vmatprep.subr.bf16.mxu1 %v6118_v37  ;;  %v6129_v37 = vld [vmem:[#allocation2 + $0xf0] ss:$8 sps:$4 sm:$0xff]   ;;  %1505 = vmatpush1.bf16.msra.mxu0 %v6168_v34  ;;  %v6190_v34 = vld [vmem:[#allocation2 + $0x214] ss:$8 sps:$4 sm:$0xff]  }
 0x1b1   :  { %1365 = vmatpush1.bf16.msra.mxu1 %v6120_v23  ;;  %v6172_v23 = vld [vmem:[#allocation2 + $0x244] ss:$8 sps:$4 sm:$0xff]  }
 0x1b2   :  { %1366 = vmatprep.subr.bf16.mxu1 %v6121_v36  ;;  %v6174_v36 = vld [vmem:[#allocation2 + $0x240] ss:$8 sps:$4 sm:$0xff]   ;;  %1506 = vmatprep.subr.bf16.mxu0 %v6172_v23  ;;  %v6192_v23 = vld [vmem:[#allocation2 + $0x210] ss:$8 sps:$4 sm:$0xff]  }
 0x1b3   :  { %1507 = vmatpush1.bf16.msra.mxu0 %v6174_v36  ;;  %v6196_v36 = vld [vmem:[#allocation2 + $0x204] ss:$8 sps:$4 sm:$0xff]  }
 0x1b4   :  { %1508 = vmatprep.subr.bf16.mxu0 %v6178_v29  ;;  %v6198_v29 = vld [vmem:[#allocation2 + $0x200] ss:$8 sps:$4 sm:$0xff]  }
 0x1b5   :  { %1367 = vmatpush1.bf16.msra.mxu1 %v6123_v15  ;;  %v6133_v15 = vld [vmem:[#allocation2 + $0xd4] ss:$8 sps:$4 sm:$0xff]  }
 0x1b6   :  { %1368 = vmatprep.subr.bf16.mxu1 %v6124_v50  ;;  %v6180_v50 = vld [vmem:[#allocation2 + $0x230] ss:$8 sps:$4 sm:$0xff]  }
 0x1b7   :  { %1509 = vmatpush1.bf16.msra.mxu0 %v6180_v50  ;;  %v6202_v50 = vld [vmem:[#allocation2 + $0x2f4] ss:$8 sps:$4 sm:$0xff]  }
 0x1b8   :  { %1510 = vmatprep.subr.bf16.mxu0 %v6184_v60  ;;  %v6204_v60 = vld [vmem:[#allocation2 + $0x2f0] ss:$8 sps:$4 sm:$0xff]  }
 0x1b9   :  { %1369 = vmatpush1.bf16.msra.mxu1 %v6126_v3  ;;  %v6136_v3 = vld [vmem:[#allocation2 + $0xc4] ss:$8 sps:$4 sm:$0xff]  }
 0x1ba   :  { %1370 = vmatprep.subr.bf16.mxu1 %v6127_v54  ;;  %v6138_v54 = vld [vmem:[#allocation2 + $0xc0] ss:$8 sps:$4 sm:$0xff]  }
 0x1bb   :  { %1511 = vmatpush1.bf16.msra.mxu0 %v6186_v38  ;;  %v6208_v38 = vld [vmem:[#allocation2 + $0x2e4] ss:$8 sps:$4 sm:$0xff]  }
 0x1bc   :  { %1512 = vmatprep.subr.bf16.mxu0 %v6190_v34  ;;  %v6210_v34 = vld [vmem:[#allocation2 + $0x2e0] ss:$8 sps:$4 sm:$0xff]  }
 0x1bd   :  { %1371 = vmatpush2.bf16.msra.mxu1 %v6129_v37  ;;  %v6139_v37 = vld [vmem:[#allocation2 + $0xb4] ss:$8 sps:$4 sm:$0xff]  }
 0x1be   :  { %1372 = vmatprep.subr.bf16.mxu1 %v6130_v21  ;;  %v6141_v21 = vld [vmem:[#allocation2 + $0xb0] ss:$8 sps:$4 sm:$0xff]  }
 0x1bf   :  { %1513 = vmatpush1.bf16.msra.mxu0 %v6192_v23  ;;  %v6214_v23 = vld [vmem:[#allocation2 + $0x2d4] ss:$8 sps:$4 sm:$0xff]  }
 0x1c0   :  { %1514 = vmatprep.subr.bf16.mxu0 %v6196_v36  ;;  %v6216_v36 = vld [vmem:[#allocation2 + $0x2d0] ss:$8 sps:$4 sm:$0xff]  }
 0x1c1   :  { %1373 = vmatpush2.bf16.msra.mxu1 %v6132_v42  ;;  %v6142_v42 = vld [vmem:[#allocation2 + $0xa4] ss:$8 sps:$4 sm:$0xff]  }
 0x1c2   :  { %1374 = vmatprep.subr.bf16.mxu1 %v6133_v15  ;;  %v6144_v15 = vld [vmem:[#allocation2 + $0xa0] ss:$8 sps:$4 sm:$0xff]  }
 0x1c3   :  { %1515 = vmatpush1.bf16.msra.mxu0 %v6198_v29  ;;  %v6159_v29 = vld [vmem:[#allocation2 + $0x164] ss:$8 sps:$4 sm:$0xff]  }
 0x1c4   :  { %1516 = vmatprep.subr.bf16.mxu0 %v6202_v50  ;;  %v8009_v50 = vpack.c.bf16 %v7252_v35, %v7243_v33  ;;  %v6232_v33 = vld [vmem:[#allocation2 + $0x2a4] ss:$8 sps:$4 sm:$0xff]   ;;  %v8011_v35 = vpack.c.bf16 %v7266_v41, %v7262_v39  ;;  %v8013_v41 = vpack.c.bf16 %v7278_v47, %v7274_v45  ;;  %v8015_v45 = vpack.c.bf16 %v7348_v20, %v7346_v18  ;;  %v6205_v20 = vld [vmem:[#allocation2 + $0x1e0] ss:$8 sps:$4 sm:$0xff]  }
 0x1c5   :  { %1375 = vmatpush2.bf16.msra.mxu1 %v6135_v48  ;;  %v6145_v48 = vld [vmem:[#allocation2 + $0x94] ss:$8 sps:$4 sm:$0xff]   ;;  %v6244_v39 = vld [vmem:[#allocation2 + $0x284] ss:$8 sps:$4 sm:$0xff]   ;;  %v8016_v47 = vpack.c.bf16 %v7290_v53, %v7286_v51  ;;  %v8019_v51 = vpack.c.bf16 %v7356_v26, %v7352_v24  ;;  %v8020_v53 = vpack.c.bf16 %v7372_v22, %v7366_v31  ;;  %v8022_v24 = vpack.c.bf16 %v7384_v5, %v7378_v9  ;;  %v6217_v26 = vld [vmem:[#allocation2 + $0x1c0] ss:$8 sps:$4 sm:$0xff]  }
 0x1c6   :  { %1376 = vmatprep.subr.bf16.mxu1 %v6136_v3  ;;  %v6147_v3 = vld [vmem:[#allocation2 + $0x90] ss:$8 sps:$4 sm:$0xff]   ;;  %v6207_v18 = vld [vmem:[#allocation2 + $0x1e4] ss:$8 sps:$4 sm:$0xff]   ;;  %v6225_v31 = vld [vmem:[#allocation2 + $0x1b4] ss:$8 sps:$4 sm:$0xff]  }
 0x1c7   :  { %1517 = vmatpush2.bf16.msra.mxu0 %v6204_v60  ;;  %v6157_v60 = vld [vmem:[#allocation2 + $0x160] ss:$8 sps:$4 sm:$0xff]   ;;  %v6223_v22 = vld [vmem:[#allocation2 + $0x1b0] ss:$8 sps:$4 sm:$0xff]   ;;  %v6243_v9 = vld [vmem:[#allocation2 + $0x184] ss:$8 sps:$4 sm:$0xff]  }
 0x1c8   :  { %1518 = vmatprep.subr.bf16.mxu0 %v6208_v38  ;;  %v6226_v38 = vld [vmem:[#allocation2 + $0x2b4] ss:$8 sps:$4 sm:$0xff]   ;;  %v6235_v5 = vld [vmem:[#allocation2 + $0x190] ss:$8 sps:$4 sm:$0xff]  }
 0x1c9   :  { %1377 = vmatpush2.bf16.msra.mxu1 %v6138_v54  ;;  %v6148_v54 = vld [vmem:[#allocation2 + $0x84] ss:$8 sps:$4 sm:$0xff]  }
 0x1ca   :  { %1378 = vmatprep.subr.bf16.mxu1 %v6139_v37  ;;  %v6150_v37 = vld [vmem:[#allocation2 + $0x80] ss:$8 sps:$4 sm:$0xff]  }
 0x1cb   :  { %1519 = vmatpush2.bf16.msra.mxu0 %v6210_v34  ;;  %v6228_v34 = vld [vmem:[#allocation2 + $0x2b0] ss:$8 sps:$4 sm:$0xff]  }
 0x1cc   :  { %1520 = vmatprep.subr.bf16.mxu0 %v6214_v23  ;;  %v6171_v23 = vld [vmem:[#allocation2 + $0x144] ss:$8 sps:$4 sm:$0xff]  }
 0x1cd   :  { %1379 = vmatpush2.bf16.msra.mxu1 %v6141_v21  ;;  %v6153_v21 = vld [vmem:[#allocation2 + $0x174] ss:$8 sps:$4 sm:$0xff]  }
 0x1ce   :  { %1380 = vmatprep.subr.bf16.mxu1 %v6142_v42  ;;  %v6151_v42 = vld [vmem:[#allocation2 + $0x170] ss:$8 sps:$4 sm:$0xff]  }
 0x1cf   :  { %1521 = vmatpush2.bf16.msra.mxu0 %v6216_v36  ;;  %v6238_v36 = vld [vmem:[#allocation2 + $0x294] ss:$8 sps:$4 sm:$0xff]  }
 0x1d1   :  { %1381 = vmatpush2.bf16.msra.mxu1 %v6144_v15  ;;  %v6220_v15 = vld [vmem:[#allocation2 + $0x2c4] ss:$8 sps:$4 sm:$0xff]  }
 0x1d2   :  { %1382 = vmatprep.subr.bf16.mxu1 %v6145_v48  ;;  %v6222_v48 = vld [vmem:[#allocation2 + $0x2c0] ss:$8 sps:$4 sm:$0xff]   ;;  %1522 = vmatprep.subr.bf16.mxu0 %v6220_v15  ;;  %v6175_v15 = vld [vmem:[#allocation2 + $0x130] ss:$8 sps:$4 sm:$0xff]  }
 0x1d3   :  { %1523 = vmatpush2.bf16.msra.mxu0 %v6222_v48  ;;  %v6246_v48 = vld [vmem:[#allocation2 + $0x280] ss:$8 sps:$4 sm:$0xff]  }
 0x1d4   :  { %1524 = vmatprep.subr.bf16.mxu0 %v6226_v38  ;;  %v6195_v38 = vld [vmem:[#allocation2 + $0x104] ss:$8 sps:$4 sm:$0xff]  }
 0x1d5   :  { %1383 = vmatpush2.bf16.msra.mxu1 %v6147_v3  ;;  %v8010_v3 = vpack.c.bf16 %v7270_v43, %v7264_v40  ;;  %v6169_v40 = vld [vmem:[#allocation2 + $0x140] ss:$8 sps:$4 sm:$0xff]   ;;  %v8012_v43 = vpack.c.bf16 %v7282_v49, %v7276_v46  ;;  %v8014_v49 = vpack.c.bf16 %v7294_v55, %v7288_v52  ;;  %v8017_v52 = vpack.c.bf16 %v7360_v28, %v7354_v25  ;;  %v6213_v25 = vld [vmem:[#allocation2 + $0x1d4] ss:$8 sps:$4 sm:$0xff]  }
 0x1d6   :  { %1384 = vmatprep.subr.bf16.mxu1 %v6148_v54  ;;  %v6165_v54 = vld [vmem:[#allocation2 + $0x154] ss:$8 sps:$4 sm:$0xff]   ;;  %v6181_v46 = vld [vmem:[#allocation2 + $0x120] ss:$8 sps:$4 sm:$0xff]   ;;  %v8021_v28 = vpack.c.bf16 %v7368_v32, %v7364_v30 }
 0x1d7   :  { %1525 = vmatpush2.bf16.msra.mxu0 %v6228_v34  ;;  %v6193_v55 = vld [vmem:[#allocation2 + $0x100] ss:$8 sps:$4 sm:$0xff]   ;;  %v6201_v34 = vld [vmem:[#allocation2 + $0x1f4] ss:$8 sps:$4 sm:$0xff]  }
 0x1d8   :  { %1526 = vmatprep.subr.bf16.mxu0 %v6232_v33  ;;  %v8023_v33 = vpack.c.bf16 %v7380_v11, %v7376_v17  ;;  %v6229_v30 = vld [vmem:[#allocation2 + $0x1a0] ss:$8 sps:$4 sm:$0xff]   ;;  %v6237_v32 = vld [vmem:[#allocation2 + $0x194] ss:$8 sps:$4 sm:$0xff]   ;;  %v8025_v11 = vpack.c.bf16 %v7302_v59, %v7298_v57  ;;  %v8028_v57 = vpack.c.bf16 %v7330_v10, %v7324_v7  ;;  %v6265_v7 = vld [vmem:[#allocation2 + $0x310] ss:$8 sps:$4 sm:$0xff]  }
 0x1d9   :  { %1385 = vmatpush2.bf16.msra.mxu1 %v6150_v37  ;;  %v6163_v37 = vld [vmem:[#allocation2 + $0x150] ss:$8 sps:$4 sm:$0xff]   ;;  %v6250_v17 = vld [vmem:[#allocation2 + $0x360] ss:$8 sps:$4 sm:$0xff]   ;;  %v6261_v59 = vld [vmem:[#allocation2 + $0x334] ss:$8 sps:$4 sm:$0xff]  }
 0x1da   :  { %1427 = vmatprep.subr.bf16.mxu1 %v6153_v21  ;;  %v6234_v21 = vld [vmem:[#allocation2 + $0x2a0] ss:$8 sps:$4 sm:$0xff]   ;;  %v6270_v10 = vld [vmem:[#allocation2 + $0x304] ss:$8 sps:$4 sm:$0xff]  }
 0x1db   :  { %1527 = vmatpush2.bf16.msra.mxu0 %v6234_v21  ;;  %v6241_v21 = vld [vmem:[#allocation2 + $0x180] ss:$8 sps:$4 sm:$0xff]  }
 0x1dc   :  { %1387 = vmatmul.mubr.bf16.vlgmr.msra.gmra.mxu1 %v8009_v50  ;;  %v6183_v50 = vld [vmem:[#allocation2 + $0x124] ss:$8 sps:$4 sm:$0xff]   ;;  %1528 = vmatprep.subr.bf16.mxu0 %v6238_v36 }
 0x1dd   :  { %1428 = vmatpush1.bf16.msra.mxu1 %v6151_v42  ;;  %1396 = vmatprep.mubr.bf16.mxu1 %v8010_v3  ;;  %v6177_v42 = vld [vmem:[#allocation2 + $0x134] ss:$8 sps:$4 sm:$0xff]   ;;  %v6187_v3 = vld [vmem:[#allocation2 + $0x110] ss:$8 sps:$4 sm:$0xff]   ;;  %v6252_v36 = vld [vmem:[#allocation2 + $0x364] ss:$8 sps:$4 sm:$0xff]  }
 0x1de   :  { %1429 = vmatprep.subr.bf16.mxu1 %v6159_v29  ;;  %v6240_v29 = vld [vmem:[#allocation2 + $0x290] ss:$8 sps:$4 sm:$0xff]  }
 0x1df   :  { %1529 = vmatpush2.bf16.msra.mxu0 %v6240_v29  ;;  %v6255_v29 = vld [vmem:[#allocation2 + $0x354] ss:$8 sps:$4 sm:$0xff]  }
 0x1e0   :  { %1530 = vmatprep.subr.bf16.mxu0 %v6244_v39  ;;  %v8027_v39 = vpack.c.bf16 %v7314_v2, %v7310_v63  ;;  %v8030_v63 = vpack.c.bf16 %v7342_v16, %v7336_v13  ;;  %v6267_v2 = vld [vmem:[#allocation2 + $0x314] ss:$8 sps:$4 sm:$0xff]   ;;  %v6271_v13 = vld [vmem:[#allocation2 + $0x3f0] ss:$8 sps:$4 sm:$0xff]   ;;  %v6276_v16 = vld [vmem:[#allocation2 + $0x3e4] ss:$8 sps:$4 sm:$0xff]  }
 0x1e1   :  { %1430 = vmatpush1.bf16.msra.mxu1 %v6157_v60  ;;  %v6189_v60 = vld [vmem:[#allocation2 + $0x114] ss:$8 sps:$4 sm:$0xff]  }
 0x1e2   :  { %1431 = vmatprep.subr.bf16.mxu1 %v6165_v54  ;;  %v8018_v54 = vpack.c.bf16 %v7306_v61, %v7300_v58  ;;  %v6211_v58 = vld [vmem:[#allocation2 + $0x1d0] ss:$8 sps:$4 sm:$0xff]   ;;  %v6219_v61 = vld [vmem:[#allocation2 + $0x1c4] ss:$8 sps:$4 sm:$0xff]  }
 0x1e3   :  { %1531 = vmatpush2.bf16.msra.mxu0 %v6246_v48  ;;  %v8029_v48 = vpack.c.bf16 %v7326_v8, %v7322_v6  ;;  %v8032_v6 = vpack.c.bf16 %v7396_v62, %v7390_v19  ;;  %v6273_v8 = vld [vmem:[#allocation2 + $0x3f4] ss:$8 sps:$4 sm:$0xff]   ;;  %v6283_v62 = vld [vmem:[#allocation2 + $0x3b0] ss:$8 sps:$4 sm:$0xff]   ;;  %v6288_v19 = vld [vmem:[#allocation2 + $0x3a4] ss:$8 sps:$4 sm:$0xff]  }
 0x1e4   :  { %1397 = vmatmul.mubr.bf16.gmra.mxu1 %v8011_v35  ;;  %v8024_v35 = vmov 0  }
 0x1e5   :  { %1432 = vmatpush1.bf16.msra.mxu1 %v6163_v37  ;;  %1406 = vmatprep.mubr.bf16.mxu1 %v8012_v43  ;;  %v6199_v37 = vld [vmem:[#allocation2 + $0x1f0] ss:$8 sps:$4 sm:$0xff]  }
 0x1e6   :  { %1433 = vmatprep.subr.bf16.mxu1 %v6171_v23  ;;  %1533 = vmatmul.mubr.bf16.vlgmr.msra.gmra.mxu0 %v8015_v45  ;;  %v6231_v23 = vld [vmem:[#allocation2 + $0x1a4] ss:$8 sps:$4 sm:$0xff]   ;;  %v6247_v43 = vld [vmem:[#allocation2 + $0x370] ss:$8 sps:$4 sm:$0xff]  }
 0x1e7   :  { %1542 = vmatprep.mubr.bf16.mxu0 %v8017_v52  ;;  %v6277_v45 = vld [vmem:[#allocation2 + $0x3d0] ss:$8 sps:$4 sm:$0xff]   ;;  %v6286_v52 = vld [vmem:[#allocation2 + $0x3a0] ss:$8 sps:$4 sm:$0xff]  }
 0x1e9   :  { %1434 = vmatpush1.bf16.msra.mxu1 %v6169_v40  ;;  %v6249_v40 = vld [vmem:[#allocation2 + $0x374] ss:$8 sps:$4 sm:$0xff]  }
 0x1ea   :  { %1435 = vmatprep.subr.bf16.mxu1 %v6177_v42  ;;  %v8026_v42 = vpack.c.bf16 %v7318_v4, %v7312_v1  ;;  %v6259_v1 = vld [vmem:[#allocation2 + $0x330] ss:$8 sps:$4 sm:$0xff]   ;;  %v6264_v4 = vld [vmem:[#allocation2 + $0x324] ss:$8 sps:$4 sm:$0xff]  }
 0x1ec   :  { %1407 = vmatmul.mubr.bf16.gmra.mxu1 %v8013_v41  ;;  %v6256_v41 = vld [vmem:[#allocation2 + $0x340] ss:$8 sps:$4 sm:$0xff]  }
 0x1ed   :  { %1436 = vmatpush1.bf16.msra.mxu1 %v6175_v15  ;;  %1416 = vmatprep.mubr.bf16.mxu1 %v8014_v49  ;;  %v6253_v15 = vld [vmem:[#allocation2 + $0x350] ss:$8 sps:$4 sm:$0xff]   ;;  %v8031_v49 = vpack.c.bf16 %v7338_v14, %v7334_v12  ;;  %v6282_v12 = vld [vmem:[#allocation2 + $0x3c4] ss:$8 sps:$4 sm:$0xff]   ;;  %v6280_v14 = vld [vmem:[#allocation2 + $0x3c0] ss:$8 sps:$4 sm:$0xff]  }
 0x1ee   :  { %1437 = vmatprep.subr.bf16.mxu1 %v6183_v50  ;;  %1543 = vmatmul.mubr.bf16.gmra.mxu0 %v8019_v51  ;;  %v6258_v50 = vld [vmem:[#allocation2 + $0x344] ss:$8 sps:$4 sm:$0xff]  }
 0x1ef   :  { %1552 = vmatprep.mubr.bf16.mxu0 %v8020_v53  ;;  %v8034_v51 = vld [vmem:[#allocation29_spill] sm:$0xff] }
 0x1f0   :  { %v8035_v53 = vpack.c.bf16 %v7408_v56, %v8034_v51 }
 0x1f1   :  { %1438 = vmatpush1.bf16.msra.mxu1 %v6181_v46  ;;  %v6262_v46 = vld [vmem:[#allocation2 + $0x320] ss:$8 sps:$4 sm:$0xff]  }
 0x1f2   :  { %1439 = vmatprep.subr.bf16.mxu1 %v6189_v60  ;;  %v6268_v60 = vld [vmem:[#allocation2 + $0x300] ss:$8 sps:$4 sm:$0xff]  }
 0x1f4   :  { %1417 = vmatmul.mubr.bf16.gmra.mxu1 %v8016_v47  ;;  %v6285_v47 = vld [vmem:[#allocation2 + $0x3b4] ss:$8 sps:$4 sm:$0xff]  }
 0x1f5   :  { %1440 = vmatpush1.bf16.msra.mxu1 %v6187_v3  ;;  %1459 = vmatprep.mubr.bf16.mxu1 %v8018_v54  ;;  %v6274_v3 = vld [vmem:[#allocation2 + $0x3e0] ss:$8 sps:$4 sm:$0xff]   ;;  %v6289_v54 = vld [vmem:[#allocation2 + $0x390] ss:$8 sps:$4 sm:$0xff]  }
 0x1f6   :  { %1441 = vmatprep.subr.bf16.mxu1 %v6195_v38  ;;  %1553 = vmatmul.mubr.bf16.gmra.mxu0 %v8021_v28  ;;  %v6279_v38 = vld [vmem:[#allocation2 + $0x3d4] ss:$8 sps:$4 sm:$0xff]  }
 0x1f7   :  { %1562 = vmatprep.mubr.bf16.mxu0 %v8022_v24  ;;  %v8041_v24 = vld [vmem:[#allocation33_spill] sm:$0xff] }
 0x1f9   :  { %1442 = vmatpush1.bf16.msra.mxu1 %v6193_v55  ;;  %v6291_v55 = vld [vmem:[#allocation2 + $0x394] ss:$8 sps:$4 sm:$0xff]  }
 0x1fa   :  { %1443 = vmatprep.subr.bf16.mxu1 %v6201_v34  ;;  %v6294_v34 = vld [vmem:[#allocation2 + $0x384] ss:$8 sps:$4 sm:$0xff]  }
 0x1fd   :  { %1444 = vmatpush2.bf16.msra.mxu1 %v6199_v37  ;;  %v6292_v37 = vld [vmem:[#allocation2 + $0x380] ss:$8 sps:$4 sm:$0xff]  }
 0x1fe   :  { %1445 = vmatprep.subr.bf16.mxu1 %v6207_v18  ;;  %1563 = vmatmul.mubr.bf16.gmra.mxu0 %v8023_v33  ;;  %v8033_v18 = vpack.c.bf16 %v7392_v27, %v7388_v0  ;;  %v8047_v27 = vld [vmem:[#allocation36_spill] sm:$0xff]  ;;  %v8048_v33 = vld [vmem:[#allocation34_spill] sm:$0xff] }
 0x1ff   :  { %1799 = vmatprep.mubr.bf16.mxu0 %v8024_v35  ;;  %v8049_v56 = vpack.c.bf16 %v8047_v27, %v8048_v33 }
 0x201   :  { %1446 = vmatpush2.bf16.msra.mxu1 %v6205_v20  ;;  %v8036_v20 = vld [vmem:[#allocation30_spill] sm:$0xff] }
 0x202   :  { %1447 = vmatprep.subr.bf16.mxu1 %v6213_v25  ;;  %v8037_v25 = vld [vmem:[#allocation28_spill] sm:$0xff] }
 0x205   :  { %1448 = vmatpush2.bf16.msra.mxu1 %v6211_v58  ;;  %v8038_v58 = vpack.c.bf16 %v8036_v20, %v8037_v25 }
 0x206   :  { %1449 = vmatprep.subr.bf16.mxu1 %v6219_v61  ;;  %v8039_v61 = vld [vmem:[#allocation32_spill] sm:$0xff] }
 0x207   :  { %v8040_v28 = vpack.c.bf16 %v7420_v44, %v8039_v61 }
 0x209   :  { %1450 = vmatpush2.bf16.msra.mxu1 %v6217_v26  ;;  %v8042_v26 = vld [vmem:[#allocation31_spill] sm:$0xff] }
 0x20a   :  { %1451 = vmatprep.subr.bf16.mxu1 %v6225_v31  ;;  %v8043_v31 = vpack.c.bf16 %v8041_v24, %v8042_v26 }
 0x20d   :  { %1452 = vmatpush2.bf16.msra.mxu1 %v6223_v22  ;;  %v8044_v22 = vld [vmem:[#allocation37_spill] sm:$0xff] }
 0x20e   :  { %1453 = vmatprep.subr.bf16.mxu1 %v6231_v23  ;;  %v8045_v23 = vld [vmem:[#allocation35_spill] sm:$0xff] }
 0x20f   :  { %v8046_v0 = vpack.c.bf16 %v8044_v22, %v8045_v23 }
 0x211   :  { %1454 = vmatpush2.bf16.msra.mxu1 %v6229_v30 }
 0x212   :  { %1455 = vmatprep.subr.bf16.mxu1 %v6237_v32 }
 0x215   :  { %1456 = vmatpush2.bf16.msra.mxu1 %v6235_v5 }
 0x216   :  { %1457 = vmatprep.subr.bf16.mxu1 %v6243_v9 }
 0x219   :  { %1458 = vmatpush2.bf16.msra.mxu1 %v6241_v21 }
 0x21a   :  { %1573 = vmatprep.subr.bf16.mxu1 %v6249_v40 }
 0x21c   :  { %1460 = vmatmul.mubr.bf16.vlgmr.msra.gmra.mxu1 %v8025_v11 }
 0x21d   :  { %1574 = vmatpush1.bf16.msra.mxu1 %v6247_v43  ;;  %1469 = vmatprep.mubr.bf16.mxu1 %v8026_v42 }
 0x21e   :  { %1575 = vmatprep.subr.bf16.mxu1 %v6252_v36 }
 0x221   :  { %1576 = vmatpush1.bf16.msra.mxu1 %v6250_v17 }
 0x222   :  { %1577 = vmatprep.subr.bf16.mxu1 %v6255_v29 }
 0x224   :  { %1470 = vmatmul.mubr.bf16.gmra.mxu1 %v8027_v39 }
 0x225   :  { %1578 = vmatpush1.bf16.msra.mxu1 %v6253_v15  ;;  %1479 = vmatprep.mubr.bf16.mxu1 %v8028_v57 }
 0x226   :  { %1579 = vmatprep.subr.bf16.mxu1 %v6258_v50 }
 0x229   :  { %1580 = vmatpush1.bf16.msra.mxu1 %v6256_v41 }
 0x22a   :  { %1581 = vmatprep.subr.bf16.mxu1 %v6261_v59 }
 0x22c   :  { %1480 = vmatmul.mubr.bf16.gmra.mxu1 %v8029_v48 }
 0x22d   :  { %1582 = vmatpush1.bf16.msra.mxu1 %v6259_v1  ;;  %1489 = vmatprep.mubr.bf16.mxu1 %v8030_v63 }
 0x22e   :  { %1583 = vmatprep.subr.bf16.mxu1 %v6264_v4 }
 0x231   :  { %1584 = vmatpush1.bf16.msra.mxu1 %v6262_v46 }
 0x232   :  { %1585 = vmatprep.subr.bf16.mxu1 %v6267_v2 }
 0x234   :  { %1490 = vmatmul.mubr.bf16.gmra.mxu1 %v8031_v49 }
 0x235   :  { %1586 = vmatpush1.bf16.msra.mxu1 %v6265_v7  ;;  %1605 = vmatprep.mubr.bf16.mxu1 %v8032_v6 }
 0x236   :  { %1587 = vmatprep.subr.bf16.mxu1 %v6270_v10 }
 0x239   :  { %1588 = vmatpush1.bf16.msra.mxu1 %v6268_v60 }
 0x23a   :  { %1589 = vmatprep.subr.bf16.mxu1 %v6273_v8 }
 0x23d   :  { %1590 = vmatpush2.bf16.msra.mxu1 %v6271_v13 }
 0x23e   :  { %1591 = vmatprep.subr.bf16.mxu1 %v6276_v16 }
 0x241   :  { %1592 = vmatpush2.bf16.msra.mxu1 %v6274_v3 }
 0x242   :  { %1593 = vmatprep.subr.bf16.mxu1 %v6279_v38 }
 0x245   :  { %1594 = vmatpush2.bf16.msra.mxu1 %v6277_v45 }
 0x246   :  { %1595 = vmatprep.subr.bf16.mxu1 %v6282_v12 }
 0x249   :  { %1596 = vmatpush2.bf16.msra.mxu1 %v6280_v14 }
 0x24a   :  { %1597 = vmatprep.subr.bf16.mxu1 %v6285_v47 }
 0x24d   :  { %1598 = vmatpush2.bf16.msra.mxu1 %v6283_v62 }
 0x24e   :  { %1599 = vmatprep.subr.bf16.mxu1 %v6288_v19 }
 0x251   :  { %1600 = vmatpush2.bf16.msra.mxu1 %v6286_v52 }
 0x252   :  { %1601 = vmatprep.subr.bf16.mxu1 %v6291_v55 }
 0x255   :  { %1602 = vmatpush2.bf16.msra.mxu1 %v6289_v54 }
 0x256   :  { %1603 = vmatprep.subr.bf16.mxu1 %v6294_v34 }
 0x259   :  { %1604 = vmatpush2.bf16.msra.mxu1 %v6292_v37 }
 0x25c   :  { %1606 = vmatmul.mubr.bf16.vlgmr.msra.gmra.mxu1 %v8033_v18 }
 0x25d   :  { %1615 = vmatprep.mubr.bf16.mxu1 %v8035_v53 }
 0x264   :  { %1616 = vmatmul.mubr.bf16.gmra.mxu1 %v8038_v58 }
 0x265   :  { %1625 = vmatprep.mubr.bf16.mxu1 %v8040_v28 }
 0x26c   :  { %1626 = vmatmul.mubr.bf16.gmra.mxu1 %v8043_v31 }
 0x26d   :  { %1635 = vmatprep.mubr.bf16.mxu1 %v8046_v0 }
 0x274   :  { %1636 = vmatmul.mubr.bf16.gmra.mxu1 %v8049_v56 }
 0x29c   :  { %v1388_v30 = vpop.f32.mrf.mxu1 }
 0x29e   :  { %v1390_v32 = vpop.f32.mrf.mxu1 }
 0x2a0   :  { %v1392_v5 = vpop.f32.mrf.mxu1 }
 0x2a2   :  { %v1394_v9 = vpop.f32.mrf.mxu1 }
 0x2a4   :  { %v1398_v21 = vpop.f32.mrf.mxu1 }
 0x2a6   :  { %v1400_v40 = vpop.f32.mrf.mxu1  ;;  %v1534_v10 = vpop.f32.mrf.mxu0 }
 0x2a8   :  { %v1402_v44 = vpop.f32.mrf.mxu1  ;;  %v1536_v60 = vpop.f32.mrf.mxu0 }
 0x2aa   :  { %v1404_v43 = vpop.f32.mrf.mxu1  ;;  %v1538_v8 = vpop.f32.mrf.mxu0 }
 0x2ac   :  { %v7530_v36 = vpop.f32.mrf.mxu1  ;;  %v1540_v16 = vpop.f32.mrf.mxu0 }
 0x2ae   :  { %v7532_v11 = vpop.f32.mrf.mxu1  ;;  %v1544_v38 = vpop.f32.mrf.mxu0 }
 0x2b0   :  { %v7534_v17 = vpop.f32.mrf.mxu1  ;;  %v1546_v12 = vpop.f32.mrf.mxu0 }
 0x2b2   :  { %v7536_v42 = vpop.f32.mrf.mxu1  ;;  %v1548_v47 = vpop.f32.mrf.mxu0 }
 0x2b4   :  { %v7538_v29 = vpop.f32.mrf.mxu1  ;;  %v1550_v19 = vpop.f32.mrf.mxu0 }
 0x2b6   :  { %v7540_v15 = vpop.f32.mrf.mxu1  ;;  %v1554_v55 = vpop.f32.mrf.mxu0 }
 0x2b8   :  { %v7542_v50 = vpop.f32.mrf.mxu1  ;;  %v1556_v20 = vpop.f32.mrf.mxu0 }
 0x2ba   :  { %v7544_v39 = vpop.f32.mrf.mxu1  ;;  %v1558_v27 = vpop.f32.mrf.mxu0 }
 0x2dc   :  { %v1461_v41 = vpop.f32.mrf.mxu1 }
 0x2dd   :  { %v1462_v57 = vadd.f32 %v1461_v41, %v1388_v30 }
 0x2de   :  { %v1463_v59 = vpop.f32.mrf.mxu1 }
 0x2df   :  { %v1464_v1 = vadd.f32 %v1463_v59, %v1390_v32  ;;  %v1535_v34 = vadd.f32 %v1534_v10, %v1462_v57 }
 0x2e0   :  { %v1465_v4 = vpop.f32.mrf.mxu1 }
 0x2e1   :  { %v1466_v48 = vadd.f32 %v1465_v4, %v1392_v5  ;;  %v1537_v18 = vadd.f32 %v1536_v60, %v1464_v1 }
 0x2e2   :  { %v1467_v46 = vpop.f32.mrf.mxu1 }
 0x2e3   :  { %v1468_v51 = vadd.f32 %v1467_v46, %v1394_v9  ;;  %v1539_v58 = vadd.f32 %v1538_v8, %v1466_v48  ;;  %v1560_v46 = vpop.f32.mrf.mxu0 }
 0x2e4   :  { %v1471_v63 = vpop.f32.mrf.mxu1 }
 0x2e5   :  { %v1472_v61 = vadd.f32 %v1471_v63, %v1398_v21  ;;  %v1541_v31 = vadd.f32 %v1540_v16, %v1468_v51 }
 0x2e6   :  { %v1473_v2 = vpop.f32.mrf.mxu1 }
 0x2e7   :  { %v1474_v24 = vadd.f32 %v1473_v2, %v1400_v40  ;;  %v1545_v56 = vadd.f32 %v1544_v38, %v1472_v61 }
 0x2e8   :  { %v1475_v7 = vpop.f32.mrf.mxu1 }
 0x2e9   :  { %v1476_v0 = vadd.f32 %v1475_v7, %v1402_v44  ;;  %v1547_v41 = vadd.f32 %v1546_v12, %v1474_v24 }
 0x2ea   :  { %v1477_v49 = vpop.f32.mrf.mxu1 }
 0x2eb   :  { %v1478_v9 = vadd.f32 %v1477_v49, %v1404_v43  ;;  %v1549_v48 = vadd.f32 %v1548_v47, %v1476_v0  ;;  %v1564_v47 = vpop.f32.mrf.mxu0 }
 0x2ec   :  { %v1481_v6 = vpop.f32.mrf.mxu1 }
 0x2ed   :  { %v1482_v40 = vadd.f32 %v1481_v6, %v7530_v36  ;;  %v1551_v16 = vadd.f32 %v1550_v19, %v1478_v9 }
 0x2ee   :  { %v1483_v13 = vpop.f32.mrf.mxu1 }
 0x2ef   :  { %v1484_v60 = vadd.f32 %v1483_v13, %v7532_v11  ;;  %v1555_v36 = vadd.f32 %v1554_v55, %v1482_v40 }
 0x2f0   :  { %v1485_v3 = vpop.f32.mrf.mxu1 }
 0x2f1   :  { %v1486_v12 = vadd.f32 %v1485_v3, %v7534_v17  ;;  %v1557_v51 = vadd.f32 %v1556_v20, %v1484_v60 }
 0x2f2   :  { %v1487_v45 = vpop.f32.mrf.mxu1 }
 0x2f3   :  { %v1559_v61 = vadd.f32 %v1558_v27, %v1486_v12 }
 0x2f4   :  { %v7546_v14 = vpop.f32.mrf.mxu1 }
 0x2f6   :  { %v7548_v62 = vpop.f32.mrf.mxu1 }
 0x2f7   :  { %v1494_v55 = vadd.f32 %v7548_v62, %v7540_v15 }
 0x2f8   :  { %v7550_v52 = vpop.f32.mrf.mxu1 }
 0x2f9   :  { %v1496_v27 = vadd.f32 %v7550_v52, %v7542_v50 }
 0x2fa   :  { %v7552_v54 = vpop.f32.mrf.mxu1 }
 0x2fb   :  { %v1498_v15 = vadd.f32 %v7552_v54, %v7544_v39 }
 0x31c   :  { %v1607_v37 = vpop.f32.mrf.mxu1 }
 0x31d   :  { %v1608_v53 = vadd.f32 %v1607_v37, %v1535_v34 }
 0x31e   :  { %v1609_v25 = vpop.f32.mrf.mxu1 }
 0x31f   :  { %v1610_v28 = vadd.f32 %v1609_v25, %v1537_v18  ;;  %v1646_v22 = vmul.f32 0.2, %v1608_v53 }
 0x320   :  { %v1611_v26 = vpop.f32.mrf.mxu1 }
 0x321   :  { %v1612_v23 = vadd.f32 %v1611_v26, %v1539_v58  ;;  %v1647_v30 = vmul.f32 0.2, %v1610_v28  ;;  %v1662_v59 = vmax.f32 %v1608_v53, %v1646_v22  ;;  %v1488_v53 = vadd.f32 %v1487_v45, %v7536_v42 }
 0x322   :  { %v1613_v33 = vpop.f32.mrf.mxu1  ;;  %v1492_v45 = vadd.f32 %v7546_v14, %v7538_v29 }
 0x323   :  { %v1648_v32 = vmul.f32 0.2, %v1612_v23  ;;  %v1614_v5 = vadd.f32 %v1613_v33, %v1541_v31  ;;  %v1663_v2 = vmax.f32 %v1610_v28, %v1647_v30  ;;  %v1566_v28 = vpop.f32.mrf.mxu0 }
 0x324   :  { %v1617_v57 = vpop.f32.mrf.mxu1 }
 0x325   :  { %v1664_v1 = vmax.f32 %v1612_v23, %v1648_v32  ;;  %v1649_v4 = vmul.f32 0.2, %v1614_v5  ;;  %v1618_v21 = vadd.f32 %v1617_v57, %v1545_v56  ;;  %v1561_v23 = vadd.f32 %v1560_v46, %v1488_v53  ;;  %v1568_v33 = vpop.f32.mrf.mxu0  ;;  %v6301_v53 = vld [vmem:[%s7978_s2 + $0x30] sm:$0xff]  }
 0x326   :  { %v1619_v63 = vpop.f32.mrf.mxu1 }
 0x327   :  { %v7555_v44 = vpack.c.bf16 %v1664_v1, %v1662_v59  ;;  %v1665_v7 = vmax.f32 %v1614_v5, %v1649_v4  ;;  %v1620_v10 = vadd.f32 %v1619_v63, %v1547_v41  ;;  %v1650_v43 = vmul.f32 0.2, %v1618_v21 }
 0x328   :  { %v1621_v8 = vpop.f32.mrf.mxu1  ;;  %v1567_v41 = vadd.f32 %v1566_v28, %v1494_v55  ;;  %v1565_v1 = vadd.f32 %v1564_v47, %v1492_v45  ;;  %v1569_v4 = vadd.f32 %v1568_v33, %v1496_v27 }
 0x329   :  { %v1622_v49 = vadd.f32 %v1621_v8, %v1549_v48  ;;  %v7558_v38 = vpack.c.bf16 %v1665_v7, %v1663_v2  ;;  %v1651_v6 = vmul.f32 0.2, %v1620_v10  ;;  %v1666_v58 = vmax.f32 %v1618_v21, %v1650_v43  ;;  %v1570_v21 = vpop.f32.mrf.mxu0 }
 0x32a   :  { %v1623_v34 = vpop.f32.mrf.mxu1  ;;  %v1571_v63 = vadd.f32 %v1570_v21, %v1498_v15 }
 0x32b   :  { %v1652_v37 = vmul.f32 0.2, %v1622_v49  ;;  %v1624_v18 = vadd.f32 %v1623_v34, %v1551_v16  ;;  %v1667_v26 = vmax.f32 %v1620_v10, %v1651_v6  ;;  %v6295_v6 = vld [vmem:[%s7978_s2] sm:$0xff]  }
 0x32c   :  { %v1627_v25 = vpop.f32.mrf.mxu1 }
 0x32d   :  { %v1668_v11 = vmax.f32 %v1622_v49, %v1652_v37  ;;  %v1653_v13 = vmul.f32 0.2, %v1624_v18  ;;  %v1628_v19 = vadd.f32 %v1627_v25, %v1555_v36  ;;  %v6296_v37 = vld [vmem:[%s7978_s2 + $0x8] sm:$0xff]   ;;  %v6302_v25 = vld [vmem:[%s7978_s2 + $0x38] sm:$0xff]  }
 0x32e   :  { %v1629_v24 = vpop.f32.mrf.mxu1 }
 0x32f   :  { %v1680_v31 = vpack.c.bf16 %v1668_v11, %v1666_v58  ;;  %v1669_v17 = vmax.f32 %v1624_v18, %v1653_v13  ;;  %v1630_v3 = vadd.f32 %v1629_v24, %v1557_v51  ;;  %v1654_v20 = vmul.f32 0.2, %v1628_v19  ;;  %v6299_v18 = vld [vmem:[%s7978_s2 + $0x20] sm:$0xff]   ;;  %v6300_v51 = vld [vmem:[%s7978_s2 + $0x28] sm:$0xff]  }
 0x330   :  { %v1631_v22 = vpop.f32.mrf.mxu1 }
 0x331   :  { %v1632_v0 = vadd.f32 %v1631_v22, %v1559_v61  ;;  %v1681_v42 = vpack.c.bf16 %v1669_v17, %v1667_v26  ;;  %v1655_v30 = vmul.f32 0.2, %v1630_v3  ;;  %v1670_v62 = vmax.f32 %v1628_v19, %v1654_v20 }
 0x332   :  { %v1633_v56 = vpop.f32.mrf.mxu1 }
 0x333   :  { %v1656_v32 = vmul.f32 0.2, %v1632_v0  ;;  %v1634_v5 = vadd.f32 %v1633_v56, %v1561_v23  ;;  %v1671_v14 = vmax.f32 %v1630_v3, %v1655_v30 }
 0x334   :  { %v1637_v9 = vpop.f32.mrf.mxu1 }
 0x335   :  { %v1672_v57 = vmax.f32 %v1632_v0, %v1656_v32  ;;  %v1657_v59 = vmul.f32 0.2, %v1634_v5  ;;  %v1638_v40 = vadd.f32 %v1637_v9, %v1565_v1 }
 0x336   :  { %v1639_v29 = vpop.f32.mrf.mxu1 }
 0x337   :  { %v1682_v48 = vpack.c.bf16 %v1672_v57, %v1670_v62  ;;  %v1673_v50 = vmax.f32 %v1634_v5, %v1657_v59  ;;  %v1640_v52 = vadd.f32 %v1639_v29, %v1567_v41  ;;  %v1658_v54 = vmul.f32 0.2, %v1638_v40 }
 0x338   :  { %v1641_v46 = vpop.f32.mrf.mxu1 }
 0x339   :  { %v1642_v2 = vadd.f32 %v1641_v46, %v1569_v4  ;;  %v1683_v7 = vpack.c.bf16 %v1673_v50, %v1671_v14  ;;  %v1659_v60 = vmul.f32 0.2, %v1640_v52  ;;  %v1674_v47 = vmax.f32 %v1638_v40, %v1658_v54 }
 0x33a   :  { %v1643_v10 = vpop.f32.mrf.mxu1 }
 0x33b   :  { %v1660_v8 = vmul.f32 0.2, %v1642_v2  ;;  %v1644_v39 = vadd.f32 %v1643_v10, %v1571_v63  ;;  %v1675_v49 = vmax.f32 %v1640_v52, %v1659_v60 }
 0x33d   :  { %v1661_v16 = vmul.f32 0.2, %v1644_v39  ;;  %v1676_v43 = vmax.f32 %v1642_v2, %v1660_v8 }
 0x33f   :  { %v1677_v12 = vmax.f32 %v1644_v39, %v1661_v16  ;;  %v1684_v36 = vpack.c.bf16 %v1676_v43, %v1674_v47 }
 0x341   :  { %v1685_v34 = vpack.c.bf16 %v1677_v12, %v1675_v49 }
 0x343   :  { %1775 = vmatprep.subr.bf16.mxu0 %v1685_v34 }
 0x344   :  { %1776 = vmatpush1.bf16.msra.mxu0 %v1684_v36 }
 0x345   :  { %1777 = vmatprep.subr.bf16.mxu0 %v1683_v7 }
 0x348   :  { %1778 = vmatpush1.bf16.msra.mxu0 %v1682_v48 }
 0x349   :  { %1779 = vmatprep.subr.bf16.mxu0 %v1681_v42 }
 0x34c   :  { %1780 = vmatpush1.bf16.msra.mxu0 %v1680_v31 }
 0x34d   :  { %1781 = vmatprep.subr.bf16.mxu0 %v7558_v38  ;;  %v6297_v38 = vld [vmem:[%s7978_s2 + $0x10] sm:$0xff]  }
 0x350   :  { %1782 = vmatpush1.bf16.msra.mxu0 %v7555_v44  ;;  %v6298_v44 = vld [vmem:[%s7978_s2 + $0x18] sm:$0xff]  }
 0x353   :  { %5639 = vmatmul.mubr.msk.bf16.vlgmr.msra.gmra.mxu0 %vm1742_vm0, %v6295_v6 }
 0x354   :  { %1809 = vmatprep.mubr.bf16.mxu0 %v8024_v35 }
 0x35b   :  { %5640 = vmatmul.mubr.msk.bf16.gmra.mxu0 %vm1742_vm0, %v6296_v37 }
 0x35c   :  { %1819 = vmatprep.mubr.bf16.mxu0 %v8024_v35 }
 0x363   :  { %5641 = vmatmul.mubr.msk.bf16.gmra.mxu0 %vm1742_vm0, %v6297_v38 }
 0x364   :  { %1829 = vmatprep.mubr.bf16.mxu0 %v8024_v35 }
 0x36b   :  { %5642 = vmatmul.mubr.msk.bf16.gmra.mxu0 %vm1742_vm0, %v6298_v44 }
 0x36c   :  { %1839 = vmatprep.mubr.bf16.mxu0 %v8024_v35 }
 0x373   :  { %5643 = vmatmul.mubr.msk.bf16.gmra.mxu0 %vm1742_vm0, %v6299_v18 }
 0x374   :  { %1849 = vmatprep.mubr.bf16.mxu0 %v8024_v35 }
 0x37b   :  { %5644 = vmatmul.mubr.msk.bf16.gmra.mxu0 %vm1742_vm0, %v6300_v51 }
 0x37c   :  { %1859 = vmatprep.mubr.bf16.mxu0 %v8024_v35 }
 0x383   :  { %5645 = vmatmul.mubr.msk.bf16.gmra.mxu0 %vm1742_vm0, %v6301_v53 }
 0x384   :  { %1869 = vmatprep.mubr.bf16.mxu0 %v8024_v35 }
 0x38b   :  { %5646 = vmatmul.mubr.msk.bf16.gmra.mxu0 %vm1742_vm0, %v6302_v25 }
 0x413   :  { %v7611_v58 = vpop.f32.mrf.mxu0 }
 0x415   :  { %v1803_v11 = vpop.f32.mrf.mxu0 }
 0x417   :  { %v7613_v13 = vpop.f32.mrf.mxu0 }
 0x418   :  { %v1880_v19 = vpack.c.bf16 %v7613_v13, %v7611_v58 }
 0x419   :  { %v1807_v61 = vpop.f32.mrf.mxu0 }
 0x41a   :  { %v1881_v28 = vpack.c.bf16 %v1807_v61, %v1803_v11 }
 0x41b   :  { %v7617_v24 = vpop.f32.mrf.mxu0 }
 0x41d   :  { %v7619_v26 = vpop.f32.mrf.mxu0 }
 0x41f   :  { %v7621_v31 = vpop.f32.mrf.mxu0 }
 0x420   :  { %v1888_v17 = vpack.c.bf16 %v7621_v31, %v7617_v24 }
 0x421   :  { %v7625_v3 = vpop.f32.mrf.mxu0 }
 0x422   :  { %v1889_v55 = vpack.c.bf16 %v7625_v3, %v7619_v26 }
 0x423   :  { %v7629_v22 = vpop.f32.mrf.mxu0 }
 0x425   :  { %v1823_v23 = vpop.f32.mrf.mxu0 }
 0x427   :  { %v7631_v20 = vpop.f32.mrf.mxu0 }
 0x428   :  { %v1882_v0 = vpack.c.bf16 %v7631_v20, %v7629_v22 }
 0x429   :  { %v1827_v42 = vpop.f32.mrf.mxu0 }
 0x42a   :  { %v1883_v45 = vpack.c.bf16 %v1827_v42, %v1823_v23 }
 0x42b   :  { %v7635_v27 = vpop.f32.mrf.mxu0 }
 0x42d   :  { %v7637_v33 = vpop.f32.mrf.mxu0 }
 0x42f   :  { %v7639_v56 = vpop.f32.mrf.mxu0 }
 0x430   :  { %v1890_v30 = vpack.c.bf16 %v7639_v56, %v7635_v27 }
 0x431   :  { %v7643_v32 = vpop.f32.mrf.mxu0 }
 0x432   :  { %v1891_v5 = vpack.c.bf16 %v7643_v32, %v7637_v33 }
 0x433   :  { %v7647_v41 = vpop.f32.mrf.mxu0 }
 0x435   :  { %v7649_v9 = vpop.f32.mrf.mxu0 }
 0x437   :  { %v7651_v15 = vpop.f32.mrf.mxu0 }
 0x438   :  { %v1884_v62 = vpack.c.bf16 %v7651_v15, %v7647_v41 }
 0x439   :  { %v7655_v57 = vpop.f32.mrf.mxu0 }
 0x43a   :  { %v1885_v59 = vpack.c.bf16 %v7655_v57, %v7649_v9 }
 0x43b   :  { %v7659_v1 = vpop.f32.mrf.mxu0 }
 0x43d   :  { %v7661_v4 = vpop.f32.mrf.mxu0 }
 0x43f   :  { %v7663_v21 = vpop.f32.mrf.mxu0 }
 0x440   :  { %v1892_v29 = vpack.c.bf16 %v7663_v21, %v7659_v1 }
 0x441   :  { %v7667_v14 = vpop.f32.mrf.mxu0 }
 0x442   :  { %v1893_v48 = vpack.c.bf16 %v7667_v14, %v7661_v4 }
 0x443   :  { %v7671_v50 = vpop.f32.mrf.mxu0 }
 0x445   :  { %v7673_v52 = vpop.f32.mrf.mxu0 }
 0x447   :  { %v7675_v40 = vpop.f32.mrf.mxu0 }
 0x448   :  { %v1886_v46 = vpack.c.bf16 %v7675_v40, %v7671_v50 }
 0x449   :  { %v7679_v63 = vpop.f32.mrf.mxu0 }
 0x44a   :  { %v1887_v2 = vpack.c.bf16 %v7679_v63, %v7673_v52 }
 0x44b   :  { %v7683_v7 = vpop.f32.mrf.mxu0 }
 0x44d   :  { %v7685_v10 = vpop.f32.mrf.mxu0 }
 0x44f   :  { %v7687_v60 = vpop.f32.mrf.mxu0 }
 0x450   :  { %v1894_v8 = vpack.c.bf16 %v7687_v60, %v7683_v7 }
 0x451   :  { %v7691_v39 = vpop.f32.mrf.mxu0 }
 0x452   :  { %v1895_v54 = vpack.c.bf16 %v7691_v39, %v7685_v10 }
 0x453   :  { %7072 = dma.done.wait [#allocation3 + $0x1], 16384 }
 0x454   :  { %7073 = vsyncadd [#allocation3 + $0x1], 4294950912  ;;  %2698 = vmatprep.mubr.bf16.mxu0 %v1881_v28  ;;  %2751 = vmatprep.mubr.bf16.mxu1 %v1883_v45  ;;  %v6303_v16 = vld [vmem:[#allocation2 + $0x474] ss:$8 sps:$4 sm:$0xff]   ;;  %v6307_v49 = vld [vmem:[#allocation2 + $0x470] ss:$8 sps:$4 sm:$0xff]  }
 0x455   :  { %v6305_v43 = vld [vmem:[#allocation2 + $0x574] ss:$8 sps:$4 sm:$0xff]   ;;  %2666 = vmatprep.subr.bf16.mxu0 %v6303_v16  ;;  %v6308_v12 = vld [vmem:[#allocation2 + $0x570] ss:$8 sps:$4 sm:$0xff]   ;;  %v6309_v47 = vld [vmem:[#allocation2 + $0x464] ss:$8 sps:$4 sm:$0xff]  }
 0x456   :  { %2719 = vmatprep.subr.bf16.mxu1 %v6305_v43  ;;  %2667 = vmatpush1.bf16.msra.mxu0 %v6307_v49  ;;  %v6311_v34 = vld [vmem:[#allocation2 + $0x564] ss:$8 sps:$4 sm:$0xff]   ;;  %v6313_v36 = vld [vmem:[#allocation2 + $0x460] ss:$8 sps:$4 sm:$0xff]   ;;  %v6315_v37 = vld [vmem:[#allocation2 + $0x454] ss:$8 sps:$4 sm:$0xff]  }
 0x457   :  { %2720 = vmatpush1.bf16.msra.mxu1 %v6308_v12  ;;  %2668 = vmatprep.subr.bf16.mxu0 %v6309_v47  ;;  %v6314_v6 = vld [vmem:[#allocation2 + $0x560] ss:$8 sps:$4 sm:$0xff]   ;;  %v6317_v38 = vld [vmem:[#allocation2 + $0x554] ss:$8 sps:$4 sm:$0xff]   ;;  %v6319_v44 = vld [vmem:[#allocation2 + $0x450] ss:$8 sps:$4 sm:$0xff]  }
 0x458   :  { %2721 = vmatprep.subr.bf16.mxu1 %v6311_v34  ;;  %v6320_v18 = vld [vmem:[#allocation2 + $0x550] ss:$8 sps:$4 sm:$0xff]   ;;  %v6321_v51 = vld [vmem:[#allocation2 + $0x444] ss:$8 sps:$4 sm:$0xff]   ;;  %v6325_v25 = vld [vmem:[#allocation2 + $0x440] ss:$8 sps:$4 sm:$0xff]  }
 0x459   :  { %v6323_v53 = vld [vmem:[#allocation2 + $0x544] ss:$8 sps:$4 sm:$0xff]   ;;  %v6326_v11 = vld [vmem:[#allocation2 + $0x540] ss:$8 sps:$4 sm:$0xff]   ;;  %v6327_v61 = vld [vmem:[#allocation2 + $0x434] ss:$8 sps:$4 sm:$0xff]  }
 0x45a   :  { %2669 = vmatpush1.bf16.msra.mxu0 %v6313_v36  ;;  %v6329_v28 = vld [vmem:[#allocation2 + $0x534] ss:$8 sps:$4 sm:$0xff]   ;;  %v6331_v23 = vld [vmem:[#allocation2 + $0x430] ss:$8 sps:$4 sm:$0xff]   ;;  %v6333_v45 = vld [vmem:[#allocation2 + $0x424] ss:$8 sps:$4 sm:$0xff]  }
 0x45b   :  { %2722 = vmatpush1.bf16.msra.mxu1 %v6314_v6  ;;  %2670 = vmatprep.subr.bf16.mxu0 %v6315_v37  ;;  %v6332_v42 = vld [vmem:[#allocation2 + $0x530] ss:$8 sps:$4 sm:$0xff]   ;;  %v6335_v16 = vld [vmem:[#allocation2 + $0x524] ss:$8 sps:$4 sm:$0xff]   ;;  %v6337_v43 = vld [vmem:[#allocation2 + $0x420] ss:$8 sps:$4 sm:$0xff]  }
 0x45c   :  { %2723 = vmatprep.subr.bf16.mxu1 %v6317_v38  ;;  %v6338_v49 = vld [vmem:[#allocation2 + $0x520] ss:$8 sps:$4 sm:$0xff]   ;;  %v6339_v12 = vld [vmem:[#allocation2 + $0x414] ss:$8 sps:$4 sm:$0xff]   ;;  %v6343_v34 = vld [vmem:[#allocation2 + $0x410] ss:$8 sps:$4 sm:$0xff]  }
 0x45d   :  { %v6341_v47 = vld [vmem:[#allocation2 + $0x514] ss:$8 sps:$4 sm:$0xff]   ;;  %v6344_v36 = vld [vmem:[#allocation2 + $0x510] ss:$8 sps:$4 sm:$0xff]   ;;  %v6345_v6 = vld [vmem:[#allocation2 + $0x404] ss:$8 sps:$4 sm:$0xff]  }
 0x45e   :  { %2671 = vmatpush1.bf16.msra.mxu0 %v6319_v44  ;;  %v6347_v37 = vld [vmem:[#allocation2 + $0x504] ss:$8 sps:$4 sm:$0xff]   ;;  %v6349_v38 = vld [vmem:[#allocation2 + $0x400] ss:$8 sps:$4 sm:$0xff]   ;;  %v6411_v58 = vld [vmem:[#allocation2 + $0x650] ss:$8 sps:$4 sm:$0xff]  }
 0x45f   :  { %2724 = vmatpush1.bf16.msra.mxu1 %v6320_v18  ;;  %2672 = vmatprep.subr.bf16.mxu0 %v6321_v51  ;;  %v6350_v44 = vld [vmem:[#allocation2 + $0x500] ss:$8 sps:$4 sm:$0xff]   ;;  %v6351_v18 = vld [vmem:[#allocation2 + $0x4f4] ss:$8 sps:$4 sm:$0xff]   ;;  %v6414_v13 = vld [vmem:[#allocation2 + $0x750] ss:$8 sps:$4 sm:$0xff]  }
 0x460   :  { %2725 = vmatprep.subr.bf16.mxu1 %v6323_v53  ;;  %v6353_v51 = vld [vmem:[#allocation2 + $0x5f4] ss:$8 sps:$4 sm:$0xff]   ;;  %v6355_v53 = vld [vmem:[#allocation2 + $0x4f0] ss:$8 sps:$4 sm:$0xff]   ;;  %v6422_v22 = vld [vmem:[#allocation2 + $0x744] ss:$8 sps:$4 sm:$0xff]  }
 0x461   :  { %v6417_v20 = vld [vmem:[#allocation2 + $0x640] ss:$8 sps:$4 sm:$0xff]   ;;  %v6425_v26 = vld [vmem:[#allocation2 + $0x634] ss:$8 sps:$4 sm:$0xff]   ;;  %v6423_v24 = vld [vmem:[#allocation2 + $0x630] ss:$8 sps:$4 sm:$0xff]  }
 0x462   :  { %2673 = vmatpush1.bf16.msra.mxu0 %v6325_v25  ;;  %v6356_v25 = vld [vmem:[#allocation2 + $0x5f0] ss:$8 sps:$4 sm:$0xff]   ;;  %v6428_v3 = vld [vmem:[#allocation2 + $0x734] ss:$8 sps:$4 sm:$0xff]   ;;  %v6429_v27 = vld [vmem:[#allocation2 + $0x620] ss:$8 sps:$4 sm:$0xff]  }
 0x463   :  { %2726 = vmatpush1.bf16.msra.mxu1 %v6326_v11  ;;  %2674 = vmatprep.subr.bf16.mxu0 %v6327_v61  ;;  %v6357_v11 = vld [vmem:[#allocation2 + $0x4e4] ss:$8 sps:$4 sm:$0xff]   ;;  %v6426_v31 = vld [vmem:[#allocation2 + $0x730] ss:$8 sps:$4 sm:$0xff]   ;;  %v6432_v33 = vld [vmem:[#allocation2 + $0x720] ss:$8 sps:$4 sm:$0xff]  }
 0x464   :  { %2727 = vmatprep.subr.bf16.mxu1 %v6329_v28  ;;  %v6359_v61 = vld [vmem:[#allocation2 + $0x5e4] ss:$8 sps:$4 sm:$0xff]   ;;  %v6361_v28 = vld [vmem:[#allocation2 + $0x4e0] ss:$8 sps:$4 sm:$0xff]   ;;  %v6437_v56 = vld [vmem:[#allocation2 + $0x614] ss:$8 sps:$4 sm:$0xff]  }
 0x465   :  { %v6435_v32 = vld [vmem:[#allocation2 + $0x610] ss:$8 sps:$4 sm:$0xff]   ;;  %v6443_v9 = vld [vmem:[#allocation2 + $0x604] ss:$8 sps:$4 sm:$0xff]   ;;  %v6444_v52 = vld [vmem:[#allocation2 + $0x700] ss:$8 sps:$4 sm:$0xff]  }
 0x466   :  { %2675 = vmatpush1.bf16.msra.mxu0 %v6331_v23  ;;  %v6362_v23 = vld [vmem:[#allocation2 + $0x5e0] ss:$8 sps:$4 sm:$0xff]   ;;  %v6446_v57 = vld [vmem:[#allocation2 + $0x704] ss:$8 sps:$4 sm:$0xff]   ;;  %v6449_v63 = vld [vmem:[#allocation2 + $0x6f4] ss:$8 sps:$4 sm:$0xff]  }
 0x467   :  { %2728 = vmatpush1.bf16.msra.mxu1 %v6332_v42  ;;  %2676 = vmatprep.subr.bf16.mxu0 %v6333_v45  ;;  %v6363_v42 = vld [vmem:[#allocation2 + $0x4d4] ss:$8 sps:$4 sm:$0xff]   ;;  %s7089_s2 = smov 32   ;;  %s7090_s27 = smov 16   ;;  %vm3070_vm1 = vcmask 261120  }
 0x468   :  { %2729 = vmatprep.subr.bf16.mxu1 %v6335_v16  ;;  %v6365_v45 = vld [vmem:[#allocation2 + $0x5d4] ss:$8 sps:$4 sm:$0xff]   ;;  %v6367_v16 = vld [vmem:[#allocation2 + $0x4d0] ss:$8 sps:$4 sm:$0xff]  }
 0x46a   :  { %2677 = vmatpush1.bf16.msra.mxu0 %v6337_v43  ;;  %v6368_v43 = vld [vmem:[#allocation2 + $0x5d0] ss:$8 sps:$4 sm:$0xff]  }
 0x46b   :  { %2730 = vmatpush1.bf16.msra.mxu1 %v6338_v49  ;;  %2678 = vmatprep.subr.bf16.mxu0 %v6339_v12  ;;  %v6369_v49 = vld [vmem:[#allocation2 + $0x4c4] ss:$8 sps:$4 sm:$0xff]  }
 0x46c   :  { %2731 = vmatprep.subr.bf16.mxu1 %v6341_v47  ;;  %v6371_v12 = vld [vmem:[#allocation2 + $0x5c4] ss:$8 sps:$4 sm:$0xff]   ;;  %v6373_v47 = vld [vmem:[#allocation2 + $0x4c0] ss:$8 sps:$4 sm:$0xff]  }
 0x46e   :  { %2679 = vmatpush1.bf16.msra.mxu0 %v6343_v34  ;;  %v6374_v34 = vld [vmem:[#allocation2 + $0x5c0] ss:$8 sps:$4 sm:$0xff]  }
 0x46f   :  { %2732 = vmatpush1.bf16.msra.mxu1 %v6344_v36  ;;  %2680 = vmatprep.subr.bf16.mxu0 %v6345_v6  ;;  %v6375_v36 = vld [vmem:[#allocation2 + $0x4b4] ss:$8 sps:$4 sm:$0xff]  }
 0x470   :  { %2733 = vmatprep.subr.bf16.mxu1 %v6347_v37  ;;  %v6377_v6 = vld [vmem:[#allocation2 + $0x5b4] ss:$8 sps:$4 sm:$0xff]   ;;  %v6379_v37 = vld [vmem:[#allocation2 + $0x4b0] ss:$8 sps:$4 sm:$0xff]  }
 0x472   :  { %2681 = vmatpush1.bf16.msra.mxu0 %v6349_v38  ;;  %v6380_v38 = vld [vmem:[#allocation2 + $0x5b0] ss:$8 sps:$4 sm:$0xff]  }
 0x473   :  { %2734 = vmatpush1.bf16.msra.mxu1 %v6350_v44  ;;  %2682 = vmatprep.subr.bf16.mxu0 %v6351_v18  ;;  %v6381_v44 = vld [vmem:[#allocation2 + $0x4a4] ss:$8 sps:$4 sm:$0xff]  }
 0x474   :  { %2735 = vmatprep.subr.bf16.mxu1 %v6353_v51  ;;  %v6383_v18 = vld [vmem:[#allocation2 + $0x5a4] ss:$8 sps:$4 sm:$0xff]   ;;  %v6385_v51 = vld [vmem:[#allocation2 + $0x4a0] ss:$8 sps:$4 sm:$0xff]  }
 0x476   :  { %2683 = vmatpush2.bf16.msra.mxu0 %v6355_v53  ;;  %v6386_v53 = vld [vmem:[#allocation2 + $0x5a0] ss:$8 sps:$4 sm:$0xff]  }
 0x477   :  { %2736 = vmatpush2.bf16.msra.mxu1 %v6356_v25  ;;  %2684 = vmatprep.subr.bf16.mxu0 %v6357_v11  ;;  %v6387_v25 = vld [vmem:[#allocation2 + $0x494] ss:$8 sps:$4 sm:$0xff]  }
 0x478   :  { %2737 = vmatprep.subr.bf16.mxu1 %v6359_v61  ;;  %v6389_v11 = vld [vmem:[#allocation2 + $0x594] ss:$8 sps:$4 sm:$0xff]   ;;  %v6391_v61 = vld [vmem:[#allocation2 + $0x490] ss:$8 sps:$4 sm:$0xff]  }
 0x47a   :  { %2685 = vmatpush2.bf16.msra.mxu0 %v6361_v28  ;;  %v6392_v28 = vld [vmem:[#allocation2 + $0x590] ss:$8 sps:$4 sm:$0xff]  }
 0x47b   :  { %2738 = vmatpush2.bf16.msra.mxu1 %v6362_v23  ;;  %2686 = vmatprep.subr.bf16.mxu0 %v6363_v42  ;;  %v6393_v23 = vld [vmem:[#allocation2 + $0x484] ss:$8 sps:$4 sm:$0xff]  }
 0x47c   :  { %2739 = vmatprep.subr.bf16.mxu1 %v6365_v45  ;;  %v6395_v42 = vld [vmem:[#allocation2 + $0x584] ss:$8 sps:$4 sm:$0xff]   ;;  %v6397_v45 = vld [vmem:[#allocation2 + $0x480] ss:$8 sps:$4 sm:$0xff]  }
 0x47e   :  { %2687 = vmatpush2.bf16.msra.mxu0 %v6367_v16  ;;  %v6398_v16 = vld [vmem:[#allocation2 + $0x580] ss:$8 sps:$4 sm:$0xff]  }
 0x47f   :  { %2740 = vmatpush2.bf16.msra.mxu1 %v6368_v43  ;;  %2688 = vmatprep.subr.bf16.mxu0 %v6369_v49  ;;  %v6401_v43 = vld [vmem:[#allocation2 + $0x674] ss:$8 sps:$4 sm:$0xff]  }
 0x480   :  { %2741 = vmatprep.subr.bf16.mxu1 %v6371_v12  ;;  %v6404_v49 = vld [vmem:[#allocation2 + $0x774] ss:$8 sps:$4 sm:$0xff]   ;;  %v6399_v12 = vld [vmem:[#allocation2 + $0x670] ss:$8 sps:$4 sm:$0xff]  }
 0x482   :  { %2689 = vmatpush2.bf16.msra.mxu0 %v6373_v47  ;;  %v6402_v47 = vld [vmem:[#allocation2 + $0x770] ss:$8 sps:$4 sm:$0xff]  }
 0x483   :  { %2742 = vmatpush2.bf16.msra.mxu1 %v6374_v34  ;;  %2690 = vmatprep.subr.bf16.mxu0 %v6375_v36  ;;  %v6407_v34 = vld [vmem:[#allocation2 + $0x664] ss:$8 sps:$4 sm:$0xff]  }
 0x484   :  { %2743 = vmatprep.subr.bf16.mxu1 %v6377_v6  ;;  %v6410_v36 = vld [vmem:[#allocation2 + $0x764] ss:$8 sps:$4 sm:$0xff]   ;;  %v6405_v6 = vld [vmem:[#allocation2 + $0x660] ss:$8 sps:$4 sm:$0xff]  }
 0x486   :  { %2691 = vmatpush2.bf16.msra.mxu0 %v6379_v37  ;;  %v6408_v37 = vld [vmem:[#allocation2 + $0x760] ss:$8 sps:$4 sm:$0xff]  }
 0x487   :  { %2744 = vmatpush2.bf16.msra.mxu1 %v6380_v38  ;;  %2692 = vmatprep.subr.bf16.mxu0 %v6381_v44  ;;  %v6413_v38 = vld [vmem:[#allocation2 + $0x654] ss:$8 sps:$4 sm:$0xff]  }
 0x488   :  { %2745 = vmatprep.subr.bf16.mxu1 %v6383_v18  ;;  %v6416_v44 = vld [vmem:[#allocation2 + $0x754] ss:$8 sps:$4 sm:$0xff]   ;;  %v6447_v18 = vld [vmem:[#allocation2 + $0x6f0] ss:$8 sps:$4 sm:$0xff]  }
 0x48a   :  { %2693 = vmatpush2.bf16.msra.mxu0 %v6385_v51  ;;  %v6450_v51 = vld [vmem:[#allocation2 + $0x7f0] ss:$8 sps:$4 sm:$0xff]  }
 0x48b   :  { %2746 = vmatpush2.bf16.msra.mxu1 %v6386_v53  ;;  %2694 = vmatprep.subr.bf16.mxu0 %v6387_v25  ;;  %v6455_v53 = vld [vmem:[#allocation2 + $0x6e4] ss:$8 sps:$4 sm:$0xff]  }
 0x48c   :  { %2747 = vmatprep.subr.bf16.mxu1 %v6389_v11  ;;  %v6458_v25 = vld [vmem:[#allocation2 + $0x7e4] ss:$8 sps:$4 sm:$0xff]   ;;  %v6453_v11 = vld [vmem:[#allocation2 + $0x6e0] ss:$8 sps:$4 sm:$0xff]  }
 0x48e   :  { %2695 = vmatpush2.bf16.msra.mxu0 %v6391_v61  ;;  %v6456_v61 = vld [vmem:[#allocation2 + $0x7e0] ss:$8 sps:$4 sm:$0xff]  }
 0x48f   :  { %2748 = vmatpush2.bf16.msra.mxu1 %v6392_v28  ;;  %2696 = vmatprep.subr.bf16.mxu0 %v6393_v23  ;;  %v6461_v28 = vld [vmem:[#allocation2 + $0x6d4] ss:$8 sps:$4 sm:$0xff]  }
 0x490   :  { %2749 = vmatprep.subr.bf16.mxu1 %v6395_v42  ;;  %v6464_v23 = vld [vmem:[#allocation2 + $0x7d4] ss:$8 sps:$4 sm:$0xff]   ;;  %v6459_v42 = vld [vmem:[#allocation2 + $0x6d0] ss:$8 sps:$4 sm:$0xff]  }
 0x492   :  { %2697 = vmatpush2.bf16.msra.mxu0 %v6397_v45  ;;  %v6462_v45 = vld [vmem:[#allocation2 + $0x7d0] ss:$8 sps:$4 sm:$0xff]  }
 0x493   :  { %2750 = vmatpush2.bf16.msra.mxu1 %v6398_v16  ;;  %2772 = vmatprep.subr.bf16.mxu0 %v6401_v43  ;;  %v6467_v16 = vld [vmem:[#allocation2 + $0x6c4] ss:$8 sps:$4 sm:$0xff]  }
 0x494   :  { %2825 = vmatprep.subr.bf16.mxu1 %v6404_v49  ;;  %v6470_v43 = vld [vmem:[#allocation2 + $0x7c4] ss:$8 sps:$4 sm:$0xff]   ;;  %v6465_v49 = vld [vmem:[#allocation2 + $0x6c0] ss:$8 sps:$4 sm:$0xff]  }
 0x495   :  { %2699 = vmatmul.mubr.bf16.vlgmr.msra.gmra.mxu0 %v1880_v19  ;;  %v6419_v19 = vld [vmem:[#allocation2 + $0x644] ss:$8 sps:$4 sm:$0xff]  }
 0x496   :  { %2752 = vmatmul.mubr.bf16.vlgmr.msra.gmra.mxu1 %v1882_v0  ;;  %2773 = vmatpush1.bf16.msra.mxu0 %v6399_v12  ;;  %v6420_v0 = vld [vmem:[#allocation2 + $0x740] ss:$8 sps:$4 sm:$0xff]  }
 0x497   :  { %2826 = vmatpush1.bf16.msra.mxu1 %v6402_v47  ;;  %2774 = vmatprep.subr.bf16.mxu0 %v6407_v34  ;;  %v6468_v12 = vld [vmem:[#allocation2 + $0x7c0] ss:$8 sps:$4 sm:$0xff]   ;;  %v6473_v47 = vld [vmem:[#allocation2 + $0x6b4] ss:$8 sps:$4 sm:$0xff]  }
 0x498   :  { %2827 = vmatprep.subr.bf16.mxu1 %v6410_v36  ;;  %2708 = vmatprep.mubr.bf16.mxu0 %v1889_v55  ;;  %v6434_v55 = vld [vmem:[#allocation2 + $0x724] ss:$8 sps:$4 sm:$0xff]   ;;  %v6476_v34 = vld [vmem:[#allocation2 + $0x7b4] ss:$8 sps:$4 sm:$0xff]   ;;  %v6471_v36 = vld [vmem:[#allocation2 + $0x6b0] ss:$8 sps:$4 sm:$0xff]  }
 0x499   :  { %2761 = vmatprep.mubr.bf16.mxu1 %v1891_v5  ;;  %v6438_v5 = vld [vmem:[#allocation2 + $0x710] ss:$8 sps:$4 sm:$0xff]  }
 0x49a   :  { %2775 = vmatpush1.bf16.msra.mxu0 %v6405_v6  ;;  %v6474_v6 = vld [vmem:[#allocation2 + $0x7b0] ss:$8 sps:$4 sm:$0xff]  }
 0x49b   :  { %2828 = vmatpush1.bf16.msra.mxu1 %v6408_v37  ;;  %2776 = vmatprep.subr.bf16.mxu0 %v6413_v38  ;;  %v6479_v37 = vld [vmem:[#allocation2 + $0x6a4] ss:$8 sps:$4 sm:$0xff]  }
 0x49c   :  { %2829 = vmatprep.subr.bf16.mxu1 %v6416_v44  ;;  %v6482_v38 = vld [vmem:[#allocation2 + $0x7a4] ss:$8 sps:$4 sm:$0xff]   ;;  %v6477_v44 = vld [vmem:[#allocation2 + $0x6a0] ss:$8 sps:$4 sm:$0xff]  }
 0x49d   :  { %2709 = vmatmul.mubr.bf16.gmra.mxu0 %v1888_v17  ;;  %v6431_v17 = vld [vmem:[#allocation2 + $0x624] ss:$8 sps:$4 sm:$0xff]  }
 0x49e   :  { %2762 = vmatmul.mubr.bf16.gmra.mxu1 %v1890_v30  ;;  %2777 = vmatpush1.bf16.msra.mxu0 %v6411_v58  ;;  %v6440_v30 = vld [vmem:[#allocation2 + $0x714] ss:$8 sps:$4 sm:$0xff]   ;;  %v6480_v58 = vld [vmem:[#allocation2 + $0x7a0] ss:$8 sps:$4 sm:$0xff]  }
 0x49f   :  { %2830 = vmatpush1.bf16.msra.mxu1 %v6414_v13  ;;  %2778 = vmatprep.subr.bf16.mxu0 %v6419_v19  ;;  %v6485_v13 = vld [vmem:[#allocation2 + $0x694] ss:$8 sps:$4 sm:$0xff]  }
 0x4a0   :  { %2831 = vmatprep.subr.bf16.mxu1 %v6422_v22  ;;  %2804 = vmatprep.mubr.bf16.mxu0 %v1885_v59  ;;  %v6441_v59 = vld [vmem:[#allocation2 + $0x600] ss:$8 sps:$4 sm:$0xff]   ;;  %v6488_v19 = vld [vmem:[#allocation2 + $0x794] ss:$8 sps:$4 sm:$0xff]   ;;  %v6483_v22 = vld [vmem:[#allocation2 + $0x690] ss:$8 sps:$4 sm:$0xff]  }
 0x4a1   :  { %2857 = vmatprep.mubr.bf16.mxu1 %v1887_v2  ;;  %v6452_v2 = vld [vmem:[#allocation2 + $0x7f4] ss:$8 sps:$4 sm:$0xff]  }
 0x4a2   :  { %2779 = vmatpush1.bf16.msra.mxu0 %v6417_v20  ;;  %v6486_v20 = vld [vmem:[#allocation2 + $0x790] ss:$8 sps:$4 sm:$0xff]  }
 0x4a3   :  { %2832 = vmatpush1.bf16.msra.mxu1 %v6420_v0  ;;  %2780 = vmatprep.subr.bf16.mxu0 %v6425_v26  ;;  %v6491_v0 = vld [vmem:[#allocation2 + $0x684] ss:$8 sps:$4 sm:$0xff]  }
 0x4a4   :  { %2833 = vmatprep.subr.bf16.mxu1 %v6428_v3  ;;  %v6494_v26 = vld [vmem:[#allocation2 + $0x784] ss:$8 sps:$4 sm:$0xff]   ;;  %v6489_v3 = vld [vmem:[#allocation2 + $0x680] ss:$8 sps:$4 sm:$0xff]  }
 0x4a6   :  { %2781 = vmatpush1.bf16.msra.mxu0 %v6423_v24  ;;  %v6492_v24 = vld [vmem:[#allocation2 + $0x780] ss:$8 sps:$4 sm:$0xff]  }
 0x4a7   :  { %2834 = vmatpush1.bf16.msra.mxu1 %v6426_v31  ;;  %2782 = vmatprep.subr.bf16.mxu0 %v6431_v17 }
 0x4a8   :  { %2835 = vmatprep.subr.bf16.mxu1 %v6434_v55 }
 0x4aa   :  { %2783 = vmatpush1.bf16.msra.mxu0 %v6429_v27 }
 0x4ab   :  { %2836 = vmatpush1.bf16.msra.mxu1 %v6432_v33  ;;  %2784 = vmatprep.subr.bf16.mxu0 %v6437_v56 }
 0x4ac   :  { %2837 = vmatprep.subr.bf16.mxu1 %v6440_v30 }
 0x4ae   :  { %2785 = vmatpush1.bf16.msra.mxu0 %v6435_v32 }
 0x4af   :  { %2838 = vmatpush1.bf16.msra.mxu1 %v6438_v5  ;;  %2786 = vmatprep.subr.bf16.mxu0 %v6443_v9 }
 0x4b0   :  { %2839 = vmatprep.subr.bf16.mxu1 %v6446_v57 }
 0x4b2   :  { %2787 = vmatpush1.bf16.msra.mxu0 %v6441_v59 }
 0x4b3   :  { %2840 = vmatpush1.bf16.msra.mxu1 %v6444_v52  ;;  %2788 = vmatprep.subr.bf16.mxu0 %v6449_v63 }
 0x4b4   :  { %2841 = vmatprep.subr.bf16.mxu1 %v6452_v2 }
 0x4b6   :  { %2789 = vmatpush2.bf16.msra.mxu0 %v6447_v18 }
 0x4b7   :  { %2842 = vmatpush2.bf16.msra.mxu1 %v6450_v51  ;;  %2790 = vmatprep.subr.bf16.mxu0 %v6455_v53 }
 0x4b8   :  { %2843 = vmatprep.subr.bf16.mxu1 %v6458_v25 }
 0x4ba   :  { %2791 = vmatpush2.bf16.msra.mxu0 %v6453_v11 }
 0x4bb   :  { %2844 = vmatpush2.bf16.msra.mxu1 %v6456_v61  ;;  %2792 = vmatprep.subr.bf16.mxu0 %v6461_v28 }
 0x4bc   :  { %2845 = vmatprep.subr.bf16.mxu1 %v6464_v23 }
 0x4be   :  { %2793 = vmatpush2.bf16.msra.mxu0 %v6459_v42 }
 0x4bf   :  { %2846 = vmatpush2.bf16.msra.mxu1 %v6462_v45  ;;  %2794 = vmatprep.subr.bf16.mxu0 %v6467_v16 }
 0x4c0   :  { %2847 = vmatprep.subr.bf16.mxu1 %v6470_v43 }
 0x4c2   :  { %2795 = vmatpush2.bf16.msra.mxu0 %v6465_v49 }
 0x4c3   :  { %2848 = vmatpush2.bf16.msra.mxu1 %v6468_v12  ;;  %2796 = vmatprep.subr.bf16.mxu0 %v6473_v47 }
 0x4c4   :  { %2849 = vmatprep.subr.bf16.mxu1 %v6476_v34 }
 0x4c6   :  { %2797 = vmatpush2.bf16.msra.mxu0 %v6471_v36 }
 0x4c7   :  { %2850 = vmatpush2.bf16.msra.mxu1 %v6474_v6  ;;  %2798 = vmatprep.subr.bf16.mxu0 %v6479_v37 }
 0x4c8   :  { %2851 = vmatprep.subr.bf16.mxu1 %v6482_v38 }
 0x4ca   :  { %2799 = vmatpush2.bf16.msra.mxu0 %v6477_v44 }
 0x4cb   :  { %2852 = vmatpush2.bf16.msra.mxu1 %v6480_v58  ;;  %2800 = vmatprep.subr.bf16.mxu0 %v6485_v13 }
 0x4cc   :  { %2853 = vmatprep.subr.bf16.mxu1 %v6488_v19 }
 0x4ce   :  { %2801 = vmatpush2.bf16.msra.mxu0 %v6483_v22 }
 0x4cf   :  { %2854 = vmatpush2.bf16.msra.mxu1 %v6486_v20  ;;  %2802 = vmatprep.subr.bf16.mxu0 %v6491_v0 }
 0x4d0   :  { %2855 = vmatprep.subr.bf16.mxu1 %v6494_v26 }
 0x4d2   :  { %2803 = vmatpush2.bf16.msra.mxu0 %v6489_v3 }
 0x4d3   :  { %2856 = vmatpush2.bf16.msra.mxu1 %v6492_v24 }
 0x4d5   :  { %2805 = vmatmul.mubr.bf16.vlgmr.msra.gmra.mxu0 %v1884_v62 }
 0x4d6   :  { %2858 = vmatmul.mubr.bf16.vlgmr.msra.gmra.mxu1 %v1886_v46  ;;  %2814 = vmatprep.mubr.bf16.mxu0 %v1893_v48 }
 0x4d7   :  { %2867 = vmatprep.mubr.bf16.mxu1 %v1895_v54 }
 0x4dd   :  { %2815 = vmatmul.mubr.bf16.gmra.mxu0 %v1892_v29 }
 0x4de   :  { %2868 = vmatmul.mubr.bf16.gmra.mxu1 %v1894_v8  ;;  %3115 = vmatprep.mubr.bf16.mxu0 %v8024_v35 }
 0x555   :  { %v2700_v41 = vpop.f32.mrf.mxu0 }
 0x556   :  { %v2753_v15 = vpop.f32.mrf.mxu1 }
 0x557   :  { %v2702_v62 = vpop.f32.mrf.mxu0  ;;  %v2754_v8 = vadd.f32 %v2753_v15, %v2700_v41 }
 0x558   :  { %v2755_v50 = vpop.f32.mrf.mxu1 }
 0x559   :  { %v2704_v4 = vpop.f32.mrf.mxu0  ;;  %v2756_v33 = vadd.f32 %v2755_v50, %v2702_v62 }
 0x55a   :  { %v2757_v14 = vpop.f32.mrf.mxu1 }
 0x55b   :  { %v2706_v48 = vpop.f32.mrf.mxu0  ;;  %v2758_v27 = vadd.f32 %v2757_v14, %v2704_v4 }
 0x55c   :  { %v2759_v40 = vpop.f32.mrf.mxu1 }
 0x55d   :  { %v2710_v46 = vpop.f32.mrf.mxu0  ;;  %v2760_v5 = vadd.f32 %v2759_v40, %v2706_v48 }
 0x55e   :  { %v2763_v10 = vpop.f32.mrf.mxu1 }
 0x55f   :  { %v2712_v39 = vpop.f32.mrf.mxu0  ;;  %v2764_v63 = vadd.f32 %v2763_v10, %v2710_v46 }
 0x560   :  { %v2765_v54 = vpop.f32.mrf.mxu1 }
 0x561   :  { %v2714_v1 = vpop.f32.mrf.mxu0  ;;  %v2766_v28 = vadd.f32 %v2765_v54, %v2712_v39 }
 0x562   :  { %v2767_v21 = vpop.f32.mrf.mxu1 }
 0x563   :  { %v2716_v29 = vpop.f32.mrf.mxu0  ;;  %v2768_v43 = vadd.f32 %v2767_v21, %v2714_v1 }
 0x564   :  { %v2769_v31 = vpop.f32.mrf.mxu1 }
 0x565   :  { %v2770_v37 = vadd.f32 %v2769_v31, %v2716_v29 }
 0x595   :  { %v2806_v7 = vpop.f32.mrf.mxu0 }
 0x596   :  { %v2859_v60 = vpop.f32.mrf.mxu1  ;;  %v2807_v56 = vadd.f32 %v2806_v7, %v2754_v8 }
 0x597   :  { %v2808_v17 = vpop.f32.mrf.mxu0 }
 0x598   :  { %v2861_v55 = vpop.f32.mrf.mxu1  ;;  %v2809_v57 = vadd.f32 %v2808_v17, %v2756_v33  ;;  %v7740_v51 = vadd.f32 %v2859_v60, %v2807_v56 }
 0x599   :  { %v2810_v30 = vpop.f32.mrf.mxu0 }
 0x59a   :  { %v2863_v32 = vpop.f32.mrf.mxu1  ;;  %v2811_v9 = vadd.f32 %v2810_v30, %v2758_v27  ;;  %v7744_v23 = vadd.f32 %v2861_v55, %v2809_v57  ;;  %v2899_v12 = vmul.f32 %v7740_v51, %v7740_v51 }
 0x59b   :  { %v2812_v59 = vpop.f32.mrf.mxu0 }
 0x59c   :  { %v2865_v52 = vpop.f32.mrf.mxu1  ;;  %v7738_v2 = vadd.f32 %v2863_v32, %v2811_v9  ;;  %v2813_v18 = vadd.f32 %v2812_v59, %v2760_v5  ;;  %v2900_v13 = vmul.f32 %v7744_v23, %v7744_v23 }
 0x59d   :  { %v2816_v53 = vpop.f32.mrf.mxu0 }
 0x59e   :  { %v2869_v25 = vpop.f32.mrf.mxu1  ;;  %v7742_v11 = vadd.f32 %v2865_v52, %v2813_v18  ;;  %v2817_v61 = vadd.f32 %v2816_v53, %v2764_v63  ;;  %v2901_v42 = vmul.f32 %v7738_v2, %v7738_v2  ;;  %v2881_v38 = vadd.f32 %v7738_v2, %v7740_v51 }
 0x59f   :  { %v2818_v45 = vpop.f32.mrf.mxu0 }
 0x5a0   :  { %v2871_v16 = vpop.f32.mrf.mxu1  ;;  %v7748_v49 = vadd.f32 %v2869_v25, %v2817_v61  ;;  %v2902_v47 = vmul.f32 %v7742_v11, %v7742_v11  ;;  %v2819_v34 = vadd.f32 %v2818_v45, %v2766_v28  ;;  %v2907_v19 = vadd.f32 %v2901_v42, %v2899_v12 }
 0x5a1   :  { %v2820_v36 = vpop.f32.mrf.mxu0  ;;  %v2890_v0 = vadd.f32 %v7742_v11, %v7744_v23 }
 0x5a2   :  { %v2873_v6 = vpop.f32.mrf.mxu1  ;;  %v2903_v44 = vmul.f32 %v7748_v49, %v7748_v49  ;;  %v2821_v58 = vadd.f32 %v2820_v36, %v2768_v43  ;;  %v7760_v22 = vadd.f32 %v2871_v16, %v2819_v34  ;;  %v2882_v26 = vadd.f32 %v2881_v38, %v7748_v49 }
 0x5a3   :  { %v2822_v20 = vpop.f32.mrf.mxu0  ;;  %v2916_v41 = vadd.f32 %v2902_v47, %v2900_v13 }
 0x5a4   :  { %v7765_v3 = vadd.f32 %v2873_v6, %v2821_v58  ;;  %v2823_v24 = vadd.f32 %v2822_v20, %v2770_v37  ;;  %v2908_v15 = vadd.f32 %v2907_v19, %v2903_v44  ;;  %v2904_v62 = vmul.f32 %v7760_v22, %v7760_v22  ;;  %v2875_v50 = vpop.f32.mrf.mxu1 }
 0x5a5   :  { %v2891_v4 = vadd.f32 %v2890_v0, %v7760_v22 }
 0x5a6   :  { %v2883_v14 = vadd.f32 %v2882_v26, %v7765_v3  ;;  %v2905_v48 = vmul.f32 %v7765_v3, %v7765_v3  ;;  %v7773_v40 = vadd.f32 %v2875_v50, %v2823_v24  ;;  %v2917_v46 = vadd.f32 %v2916_v41, %v2904_v62 }
 0x5a7   :  { %v2952_v50 = vlaneseq }
 0x5a8   :  { %v2884_v10 = vrot.slane %v2883_v14, 4  ;;  %v2909_v39 = vadd.f32 %v2908_v15, %v2905_v48  ;;  %v2892_v54 = vadd.f32 %v2891_v4, %v7773_v40  ;;  %v2906_v1 = vmul.f32 %v7773_v40, %v7773_v40 }
 0x5a9   :  { %v7091_v15 = vmov 1966171168  }
 0x5aa   :  { %v2885_v21 = vadd.f32 %v2884_v10, %v2883_v14  ;;  %v2910_v29 = vrot.slane %v2909_v39, 4  ;;  %v2893_v31 = vrot.slane %v2892_v54, 4  ;;  %v2918_v7 = vadd.f32 %v2917_v46, %v2906_v1 }
 0x5ab   :  { %v2969_v62 = vunpack.c.l.s4 %v7091_v15  ;;  %v2953_v14 = vshrl.u32 %v2952_v50, 7  ;;  %v6496_v50 = vld [vmem:[%s7979_s3 + $0x8] sm:$0xff]  }
 0x5ac   :  { %v2894_v60 = vadd.f32 %v2893_v31, %v2892_v54  ;;  %v2919_v8 = vrot.slane %v2918_v7, 4  ;;  %v2886_v17 = vrot.slane %v2885_v21, 2  ;;  %v2911_v55 = vadd.f32 %v2910_v29, %v2909_v39  ;;  %v2880_v29 = vld [vmem:[#allocation6 + $0x1] ss:$8 sm:$0x3] }
 0x5ad   :  { %v2970_v4 = vunpack.c.0.s8 %v2969_v62  ;;  %v7784_v10 = vsub.s32 0, %v2953_v14  ;;  %v7788_v31 = vsub.s32 1, %v2953_v14  ;;  %v6495_v62 = vld [vmem:[%s7979_s3] sm:$0xff]  }
 0x5ae   :  { %v2887_v27 = vadd.f32 %v2886_v17, %v2885_v21  ;;  %v2895_v33 = vrot.slane %v2894_v60, 2  ;;  %v2912_v56 = vrot.slane %v2911_v55, 2  ;;  %v2920_v30 = vadd.f32 %v2919_v8, %v2918_v7  ;;  %v2878_v21 = vld [vmem:[#allocation6] ss:$8 sm:$0x3] }
 0x5af   :  { %v7782_v48 = vsub.s32 %v2970_v4, %v2953_v14  ;;  %v3007_v8 = vrot.slane %v2880_v29, %v7784_v10  ;;  %v3011_v17 = vrot.slane %v2880_v29, %v7788_v31  ;;  %v6497_v4 = vld [vmem:[%s7979_s3 + $0x10] sm:$0xff]   ;;  %v6498_v14 = vld [vmem:[%s7979_s3 + $0x18] sm:$0xff]  }
 0x5b0   :  { %v2888_v32 = vrot.slane %v2887_v27, 1  ;;  %v2896_v5 = vadd.f32 %v2895_v33, %v2894_v60  ;;  %v2913_v9 = vadd.f32 %v2912_v56, %v2911_v55  ;;  %v2921_v57 = vrot.slane %v2920_v30, 2 }
 0x5b2   :  { %v2897_v59 = vrot.slane %v2896_v5, 1  ;;  %v2922_v52 = vadd.f32 %v2921_v57, %v2920_v30  ;;  %v2889_v63 = vadd.f32 %v2888_v32, %v2887_v27  ;;  %v2914_v53 = vrot.slane %v2913_v9, 1 }
 0x5b4   :  { %v2898_v18 = vadd.f32 %v2897_v59, %v2896_v5  ;;  %v2923_v25 = vrot.slane %v2922_v52, 1  ;;  %v2915_v42 = vadd.f32 %v2914_v53, %v2913_v9 }
 0x5b6   :  { %v2925_v61 = vadd.f32 %v2898_v18, %v2889_v63  ;;  %v2924_v28 = vadd.f32 %v2923_v25, %v2922_v52 }
 0x5b8   :  { %2926 = vrot.lane.b32.xlu0 %v2925_v61, %s7080_s17  ;;  %v2938_v45 = vadd.f32 %v2924_v28, %v2915_v42 }
 0x5bc   :  { %2939 = vrot.lane.b32.xlu0 %v2938_v45, %s7080_s17 }
 0x62a   :  { %v2927_v16 = vpop.permute.xlu0 %2926 }
 0x62b   :  { %v2930_v43 = vadd.f32 %v2927_v16, %v2925_v61 }
 0x62d   :  { %2931 = vrot.lane.b32.xlu1 %v2930_v43, %s7089_s2 }
 0x62e   :  { %v2940_v12 = vpop.permute.xlu0 %2939 }
 0x62f   :  { %v2941_v47 = vadd.f32 %v2940_v12, %v2938_v45 }
 0x631   :  { %2942 = vrot.lane.b32.xlu1 %v2941_v47, %s7089_s2 }
 0x69f   :  { %v2932_v34 = vpop.permute.xlu1 %2931 }
 0x6a0   :  { %v2933_v36 = vadd.f32 %v2932_v34, %v2930_v43 }
 0x6a2   :  { %2934 = vrot.lane.b32.xlu0 %v2933_v36, %s7090_s27 }
 0x6a3   :  { %v2943_v6 = vpop.permute.xlu1 %2942 }
 0x6a4   :  { %v2944_v37 = vadd.f32 %v2943_v6, %v2941_v47 }
 0x6a6   :  { %2945 = vrot.lane.b32.xlu1 %v2944_v37, %s7090_s27 }
 0x714   :  { %v2935_v38 = vpop.permute.xlu0 %2934 }
 0x715   :  { %v2936_v44 = vadd.f32 %v2935_v38, %v2933_v36 }
 0x717   :  { %v2937_v58 = vmul.f32 0.001953125, %v2936_v44 }
 0x718   :  { %v2946_v13 = vpop.permute.xlu1 %2945 }
 0x719   :  { %v2947_v19 = vadd.f32 %v2946_v13, %v2944_v37  ;;  %v2949_v20 = vmul.f32 %v2937_v58, %v2937_v58  ;;  %v2955_v1 = vrot.slane %v2937_v58, %v7784_v10 }
 0x71b   :  { %v2948_v0 = vmul.f32 0.001953125, %v2947_v19  ;;  %v2961_v55 = vsub.f32 %v7760_v22, %v2955_v1  ;;  %v2963_v27 = vsub.f32 %v7773_v40, %v2955_v1  ;;  %v2960_v30 = vsub.f32 %v7748_v49, %v2955_v1 }
 0x71c   :  { %v2962_v32 = vsub.f32 %v7765_v3, %v2955_v1  ;;  %v2957_v5 = vsub.f32 %v7744_v23, %v2955_v1  ;;  %v2959_v9 = vsub.f32 %v7742_v11, %v2955_v1  ;;  %v2956_v57 = vsub.f32 %v7740_v51, %v2955_v1 }
 0x71d   :  { %v2950_v26 = vsub.f32 %v2948_v0, %v2949_v20  ;;  %v2958_v59 = vsub.f32 %v7738_v2, %v2955_v1 }
 0x71f   :  { %v2951_v24 = vmax.f32 %v2950_v26, 0.0 }
 0x721   :  { %v2964_v41 = vadd.f32 1e-05, %v2951_v24 }
 0x723   :  { %6499 = vrsqrt.f32 %v2964_v41 }
 0x730   :  { %v6500_v46 = vpop.eup %6499 }
 0x731   :  { %v2967_v39 = vcombine.low %v6500_v46, %v6500_v46 }
 0x733   :  { %v2974_v54 = vrot.slane %v2967_v39, %v7782_v48 }
 0x735   :  { %v2981_v7 = vrot.slane %v2974_v54, %v7782_v48 }
 0x737   :  { %v2983_v60 = vmul.f32 %v2981_v7, %v2878_v21 }
 0x739   :  { %v2988_v33 = vrot.slane %v2983_v60, %v7784_v10  ;;  %v2992_v56 = vrot.slane %v2983_v60, %v7788_v31 }
 0x73b   :  { %v3000_v52 = vmul.f32 %v2992_v56, %v2961_v55  ;;  %v3002_v22 = vmul.f32 %v2992_v56, %v2963_v27  ;;  %v2999_v63 = vmul.f32 %v2988_v33, %v2960_v30  ;;  %v3001_v40 = vmul.f32 %v2988_v33, %v2962_v32 }
 0x73c   :  { %v2996_v18 = vmul.f32 %v2992_v56, %v2957_v5  ;;  %v2998_v53 = vmul.f32 %v2992_v56, %v2959_v9  ;;  %v2995_v25 = vmul.f32 %v2988_v33, %v2956_v57  ;;  %v2997_v61 = vmul.f32 %v2988_v33, %v2958_v59 }
 0x73d   :  { %v3019_v28 = vadd.f32 %v3011_v17, %v3000_v52  ;;  %v3021_v49 = vadd.f32 %v3011_v17, %v3002_v22  ;;  %v3018_v42 = vadd.f32 %v3007_v8, %v2999_v63  ;;  %v3020_v3 = vadd.f32 %v3007_v8, %v3001_v40 }
 0x73e   :  { %v3015_v45 = vadd.f32 %v3011_v17, %v2996_v18  ;;  %v3017_v23 = vadd.f32 %v3011_v17, %v2998_v53  ;;  %v3014_v16 = vadd.f32 %v3007_v8, %v2995_v25  ;;  %v3016_v11 = vadd.f32 %v3007_v8, %v2997_v61 }
 0x73f   :  { %v3027_v43 = vmul.f32 0.2, %v3019_v28  ;;  %v3029_v51 = vmul.f32 0.2, %v3021_v49  ;;  %v3026_v12 = vmul.f32 0.2, %v3018_v42 }
 0x740   :  { %v3028_v2 = vmul.f32 0.2, %v3020_v3  ;;  %v3023_v47 = vmul.f32 0.2, %v3015_v45  ;;  %v3025_v34 = vmul.f32 0.2, %v3017_v23 }
 0x741   :  { %v3035_v36 = vmax.f32 %v3019_v28, %v3027_v43  ;;  %v3037_v6 = vmax.f32 %v3021_v49, %v3029_v51  ;;  %v3034_v37 = vmax.f32 %v3018_v42, %v3026_v12  ;;  %v3022_v38 = vmul.f32 0.2, %v3014_v16 }
 0x742   :  { %v3036_v44 = vmax.f32 %v3020_v3, %v3028_v2  ;;  %v3031_v58 = vmax.f32 %v3015_v45, %v3023_v47  ;;  %v3033_v13 = vmax.f32 %v3017_v23, %v3025_v34  ;;  %v3024_v19 = vmul.f32 0.2, %v3016_v11 }
 0x743   :  { %v3041_v20 = vpack.c.bf16 %v3037_v6, %v3035_v36  ;;  %v3030_v26 = vmax.f32 %v3014_v16, %v3022_v38 }
 0x744   :  { %v3040_v0 = vpack.c.bf16 %v3036_v44, %v3034_v37  ;;  %v3032_v24 = vmax.f32 %v3016_v11, %v3024_v19  ;;  %v3039_v41 = vpack.c.bf16 %v3033_v13, %v3031_v58 }
 0x745   :  { %3095 = vmatprep.subr.bf16.mxu0 %v3041_v20 }
 0x746   :  { %3096 = vmatpush1.bf16.msra.mxu0 %v3040_v0  ;;  %v3038_v15 = vpack.c.bf16 %v3032_v24, %v3030_v26 }
 0x747   :  { %3097 = vmatprep.subr.bf16.mxu0 %v3039_v41 }
 0x74a   :  { %3098 = vmatpush1.bf16.msra.mxu0 %v3038_v15 }
 0x74d   :  { %5779 = vmatmul.mubr.msk.bf16.vlgmr.msra.gmra.mxu0 %vm3070_vm1, %v6495_v62 }
 0x74e   :  { %3125 = vmatprep.mubr.bf16.mxu0 %v8024_v35 }
 0x755   :  { %5780 = vmatmul.mubr.msk.bf16.gmra.mxu0 %vm3070_vm1, %v6496_v50 }
 0x756   :  { %3135 = vmatprep.mubr.bf16.mxu0 %v8024_v35 }
 0x75d   :  { %5781 = vmatmul.mubr.msk.bf16.gmra.mxu0 %vm3070_vm1, %v6497_v4 }
 0x75e   :  { %3145 = vmatprep.mubr.bf16.mxu0 %v8024_v35 }
 0x765   :  { %5782 = vmatmul.mubr.msk.bf16.gmra.mxu0 %vm3070_vm1, %v6498_v14 }
 0x80d   :  { %v7818_v46 = vpop.f32.mrf.mxu0 }
 0x80f   :  { %v3119_v39 = vpop.f32.mrf.mxu0 }
 0x811   :  { %v7820_v54 = vpop.f32.mrf.mxu0 }
 0x812   :  { %v3156_v1 = vpack.c.bf16 %v7820_v54, %v7818_v46 }
 0x813   :  { %v3123_v21 = vpop.f32.mrf.mxu0 }
 0x814   :  { %v3157_v29 = vpack.c.bf16 %v3123_v21, %v3119_v39 }
 0x815   :  { %v7824_v7 = vpop.f32.mrf.mxu0 }
 0x817   :  { %v3129_v60 = vpop.f32.mrf.mxu0 }
 0x819   :  { %v7826_v8 = vpop.f32.mrf.mxu0 }
 0x81a   :  { %v3158_v17 = vpack.c.bf16 %v7826_v8, %v7824_v7 }
 0x81b   :  { %v3133_v55 = vpop.f32.mrf.mxu0 }
 0x81c   :  { %v3159_v27 = vpack.c.bf16 %v3133_v55, %v3129_v60 }
 0x81d   :  { %v7830_v33 = vpop.f32.mrf.mxu0 }
 0x81f   :  { %v7832_v56 = vpop.f32.mrf.mxu0 }
 0x821   :  { %v7834_v30 = vpop.f32.mrf.mxu0 }
 0x822   :  { %v3160_v32 = vpack.c.bf16 %v7834_v30, %v7830_v33 }
 0x823   :  { %v7838_v5 = vpop.f32.mrf.mxu0 }
 0x824   :  { %v3161_v9 = vpack.c.bf16 %v7838_v5, %v7832_v56 }
 0x825   :  { %v7842_v57 = vpop.f32.mrf.mxu0 }
 0x827   :  { %v7844_v59 = vpop.f32.mrf.mxu0 }
 0x829   :  { %v7846_v52 = vpop.f32.mrf.mxu0 }
 0x82a   :  { %v3162_v22 = vpack.c.bf16 %v7846_v52, %v7842_v57 }
 0x82b   :  { %v7850_v63 = vpop.f32.mrf.mxu0 }
 0x82c   :  { %v3163_v40 = vpack.c.bf16 %v7850_v63, %v7844_v59 }
 0x82d   :  { %7074 = dma.done.wait [#allocation3 + $0x2], 16384 }
 0x82e   :  { %7075 = vsyncadd [#allocation3 + $0x2], 4294950912  ;;  %3966 = vmatprep.mubr.bf16.mxu1 %v3157_v29  ;;  %4009 = vmatprep.mubr.bf16.mxu0 %v3159_v27  ;;  %v6501_v18 = vld [vmem:[#allocation2 + $0x874] ss:$8 sps:$4 sm:$0xff]   ;;  %v6505_v25 = vld [vmem:[#allocation2 + $0x870] ss:$8 sps:$4 sm:$0xff]  }
 0x82f   :  { %v6503_v53 = vld [vmem:[#allocation2 + $0x974] ss:$8 sps:$4 sm:$0xff]   ;;  %3934 = vmatprep.subr.bf16.mxu1 %v6501_v18  ;;  %v6506_v61 = vld [vmem:[#allocation2 + $0x970] ss:$8 sps:$4 sm:$0xff]   ;;  %v6507_v28 = vld [vmem:[#allocation2 + $0x864] ss:$8 sps:$4 sm:$0xff]  }
 0x830   :  { %3977 = vmatprep.subr.bf16.mxu0 %v6503_v53  ;;  %3935 = vmatpush1.bf16.msra.mxu1 %v6505_v25  ;;  %v6509_v49 = vld [vmem:[#allocation2 + $0x964] ss:$8 sps:$4 sm:$0xff]   ;;  %v6511_v42 = vld [vmem:[#allocation2 + $0x860] ss:$8 sps:$4 sm:$0xff]   ;;  %v6513_v45 = vld [vmem:[#allocation2 + $0x854] ss:$8 sps:$4 sm:$0xff]  }
 0x831   :  { %3978 = vmatpush1.bf16.msra.mxu0 %v6506_v61  ;;  %3936 = vmatprep.subr.bf16.mxu1 %v6507_v28  ;;  %v6512_v3 = vld [vmem:[#allocation2 + $0x960] ss:$8 sps:$4 sm:$0xff]   ;;  %v6515_v23 = vld [vmem:[#allocation2 + $0x954] ss:$8 sps:$4 sm:$0xff]   ;;  %v6517_v16 = vld [vmem:[#allocation2 + $0x850] ss:$8 sps:$4 sm:$0xff]  }
 0x832   :  { %3979 = vmatprep.subr.bf16.mxu0 %v6509_v49  ;;  %v6518_v11 = vld [vmem:[#allocation2 + $0x950] ss:$8 sps:$4 sm:$0xff]   ;;  %v6519_v43 = vld [vmem:[#allocation2 + $0x844] ss:$8 sps:$4 sm:$0xff]   ;;  %v6523_v12 = vld [vmem:[#allocation2 + $0x840] ss:$8 sps:$4 sm:$0xff]  }
 0x833   :  { %v6521_v51 = vld [vmem:[#allocation2 + $0x944] ss:$8 sps:$4 sm:$0xff]   ;;  %v6524_v2 = vld [vmem:[#allocation2 + $0x940] ss:$8 sps:$4 sm:$0xff]   ;;  %v6525_v47 = vld [vmem:[#allocation2 + $0x834] ss:$8 sps:$4 sm:$0xff]  }
 0x834   :  { %3937 = vmatpush1.bf16.msra.mxu1 %v6511_v42  ;;  %v6527_v34 = vld [vmem:[#allocation2 + $0x934] ss:$8 sps:$4 sm:$0xff]   ;;  %v6529_v36 = vld [vmem:[#allocation2 + $0x830] ss:$8 sps:$4 sm:$0xff]   ;;  %v6531_v37 = vld [vmem:[#allocation2 + $0x824] ss:$8 sps:$4 sm:$0xff]  }
 0x835   :  { %3980 = vmatpush1.bf16.msra.mxu0 %v6512_v3  ;;  %3938 = vmatprep.subr.bf16.mxu1 %v6513_v45  ;;  %v6530_v6 = vld [vmem:[#allocation2 + $0x930] ss:$8 sps:$4 sm:$0xff]   ;;  %v6533_v38 = vld [vmem:[#allocation2 + $0x924] ss:$8 sps:$4 sm:$0xff]   ;;  %v6535_v44 = vld [vmem:[#allocation2 + $0x820] ss:$8 sps:$4 sm:$0xff]  }
 0x836   :  { %3981 = vmatprep.subr.bf16.mxu0 %v6515_v23  ;;  %v6536_v58 = vld [vmem:[#allocation2 + $0x920] ss:$8 sps:$4 sm:$0xff]   ;;  %v6537_v13 = vld [vmem:[#allocation2 + $0x814] ss:$8 sps:$4 sm:$0xff]   ;;  %v6541_v20 = vld [vmem:[#allocation2 + $0x810] ss:$8 sps:$4 sm:$0xff]  }
 0x837   :  { %v6539_v19 = vld [vmem:[#allocation2 + $0x914] ss:$8 sps:$4 sm:$0xff]   ;;  %v6542_v0 = vld [vmem:[#allocation2 + $0x910] ss:$8 sps:$4 sm:$0xff]   ;;  %v6543_v26 = vld [vmem:[#allocation2 + $0x804] ss:$8 sps:$4 sm:$0xff]  }
 0x838   :  { %3939 = vmatpush1.bf16.msra.mxu1 %v6517_v16  ;;  %v6545_v24 = vld [vmem:[#allocation2 + $0x904] ss:$8 sps:$4 sm:$0xff]   ;;  %v6547_v41 = vld [vmem:[#allocation2 + $0x800] ss:$8 sps:$4 sm:$0xff]   ;;  %v6549_v62 = vld [vmem:[#allocation2 + $0x8f4] ss:$8 sps:$4 sm:$0xff]  }
 0x839   :  { %3982 = vmatpush1.bf16.msra.mxu0 %v6518_v11  ;;  %3940 = vmatprep.subr.bf16.mxu1 %v6519_v43  ;;  %v6548_v15 = vld [vmem:[#allocation2 + $0x900] ss:$8 sps:$4 sm:$0xff]   ;;  %v6551_v50 = vld [vmem:[#allocation2 + $0x9f4] ss:$8 sps:$4 sm:$0xff]   ;;  %v6553_v4 = vld [vmem:[#allocation2 + $0x8f0] ss:$8 sps:$4 sm:$0xff]  }
 0x83a   :  { %3983 = vmatprep.subr.bf16.mxu0 %v6521_v51  ;;  %v6554_v14 = vld [vmem:[#allocation2 + $0x9f0] ss:$8 sps:$4 sm:$0xff]   ;;  %v6555_v39 = vld [vmem:[#allocation2 + $0x8e4] ss:$8 sps:$4 sm:$0xff]   ;;  %v6559_v29 = vld [vmem:[#allocation2 + $0x8e0] ss:$8 sps:$4 sm:$0xff]  }
 0x83b   :  { %v6557_v21 = vld [vmem:[#allocation2 + $0x9e4] ss:$8 sps:$4 sm:$0xff]   ;;  %v6560_v60 = vld [vmem:[#allocation2 + $0x9e0] ss:$8 sps:$4 sm:$0xff]   ;;  %v6561_v55 = vld [vmem:[#allocation2 + $0x8d4] ss:$8 sps:$4 sm:$0xff]  }
 0x83c   :  { %3941 = vmatpush1.bf16.msra.mxu1 %v6523_v12  ;;  %v6563_v27 = vld [vmem:[#allocation2 + $0x9d4] ss:$8 sps:$4 sm:$0xff]   ;;  %v6565_v18 = vld [vmem:[#allocation2 + $0x8d0] ss:$8 sps:$4 sm:$0xff]   ;;  %v6567_v25 = vld [vmem:[#allocation2 + $0x8c4] ss:$8 sps:$4 sm:$0xff]  }
 0x83d   :  { %3984 = vmatpush1.bf16.msra.mxu0 %v6524_v2  ;;  %3942 = vmatprep.subr.bf16.mxu1 %v6525_v47  ;;  %v6566_v53 = vld [vmem:[#allocation2 + $0x9d0] ss:$8 sps:$4 sm:$0xff]   ;;  %v6569_v61 = vld [vmem:[#allocation2 + $0x9c4] ss:$8 sps:$4 sm:$0xff]   ;;  %v6571_v28 = vld [vmem:[#allocation2 + $0x8c0] ss:$8 sps:$4 sm:$0xff]  }
 0x83e   :  { %3985 = vmatprep.subr.bf16.mxu0 %v6527_v34  ;;  %v6572_v49 = vld [vmem:[#allocation2 + $0x9c0] ss:$8 sps:$4 sm:$0xff]   ;;  %v6573_v42 = vld [vmem:[#allocation2 + $0x8b4] ss:$8 sps:$4 sm:$0xff]   ;;  %v6577_v45 = vld [vmem:[#allocation2 + $0x8b0] ss:$8 sps:$4 sm:$0xff]  }
 0x83f   :  { %v6575_v3 = vld [vmem:[#allocation2 + $0x9b4] ss:$8 sps:$4 sm:$0xff]   ;;  %v6578_v23 = vld [vmem:[#allocation2 + $0x9b0] ss:$8 sps:$4 sm:$0xff]   ;;  %v6579_v16 = vld [vmem:[#allocation2 + $0x8a4] ss:$8 sps:$4 sm:$0xff]  }
 0x840   :  { %3943 = vmatpush1.bf16.msra.mxu1 %v6529_v36  ;;  %v6581_v11 = vld [vmem:[#allocation2 + $0x9a4] ss:$8 sps:$4 sm:$0xff]   ;;  %v6583_v43 = vld [vmem:[#allocation2 + $0x8a0] ss:$8 sps:$4 sm:$0xff]   ;;  %v6585_v12 = vld [vmem:[#allocation2 + $0x894] ss:$8 sps:$4 sm:$0xff]  }
 0x841   :  { %3986 = vmatpush1.bf16.msra.mxu0 %v6530_v6  ;;  %3944 = vmatprep.subr.bf16.mxu1 %v6531_v37  ;;  %v6584_v51 = vld [vmem:[#allocation2 + $0x9a0] ss:$8 sps:$4 sm:$0xff]   ;;  %v6587_v2 = vld [vmem:[#allocation2 + $0x994] ss:$8 sps:$4 sm:$0xff]   ;;  %v6589_v47 = vld [vmem:[#allocation2 + $0x890] ss:$8 sps:$4 sm:$0xff]  }
 0x842   :  { %3987 = vmatprep.subr.bf16.mxu0 %v6533_v38  ;;  %v6590_v34 = vld [vmem:[#allocation2 + $0x990] ss:$8 sps:$4 sm:$0xff]   ;;  %v6591_v36 = vld [vmem:[#allocation2 + $0x884] ss:$8 sps:$4 sm:$0xff]   ;;  %v6595_v37 = vld [vmem:[#allocation2 + $0x880] ss:$8 sps:$4 sm:$0xff]  }
 0x843   :  { %v6593_v6 = vld [vmem:[#allocation2 + $0x984] ss:$8 sps:$4 sm:$0xff]   ;;  %v6596_v38 = vld [vmem:[#allocation2 + $0x980] ss:$8 sps:$4 sm:$0xff]   ;;  %v6609_v46 = vld [vmem:[#allocation2 + $0xa50] ss:$8 sps:$4 sm:$0xff]  }
 0x844   :  { %3945 = vmatpush1.bf16.msra.mxu1 %v6535_v44  ;;  %v6599_v44 = vld [vmem:[#allocation2 + $0xa74] ss:$8 sps:$4 sm:$0xff]   ;;  %v6612_v54 = vld [vmem:[#allocation2 + $0xb50] ss:$8 sps:$4 sm:$0xff]   ;;  %v6620_v7 = vld [vmem:[#allocation2 + $0xb44] ss:$8 sps:$4 sm:$0xff]  }
 0x845   :  { %3988 = vmatpush1.bf16.msra.mxu0 %v6536_v58  ;;  %3946 = vmatprep.subr.bf16.mxu1 %v6537_v13  ;;  %v6602_v58 = vld [vmem:[#allocation2 + $0xb74] ss:$8 sps:$4 sm:$0xff]   ;;  %v6597_v13 = vld [vmem:[#allocation2 + $0xa70] ss:$8 sps:$4 sm:$0xff]   ;;  %v6615_v8 = vld [vmem:[#allocation2 + $0xa40] ss:$8 sps:$4 sm:$0xff]  }
 0x846   :  { %3989 = vmatprep.subr.bf16.mxu0 %v6539_v19  ;;  %v6600_v19 = vld [vmem:[#allocation2 + $0xb70] ss:$8 sps:$4 sm:$0xff]   ;;  %v6626_v56 = vld [vmem:[#allocation2 + $0xb34] ss:$8 sps:$4 sm:$0xff]   ;;  %v6629_v59 = vld [vmem:[#allocation2 + $0xa24] ss:$8 sps:$4 sm:$0xff]  }
 0x847   :  { %v6621_v5 = vld [vmem:[#allocation2 + $0xa30] ss:$8 sps:$4 sm:$0xff]   ;;  %v6632_v63 = vld [vmem:[#allocation2 + $0xb24] ss:$8 sps:$4 sm:$0xff]   ;;  %vm4243_vm2 = vcmask 130048  }
 0x848   :  { %3947 = vmatpush1.bf16.msra.mxu1 %v6541_v20  ;;  %v6605_v20 = vld [vmem:[#allocation2 + $0xa64] ss:$8 sps:$4 sm:$0xff]  }
 0x849   :  { %3990 = vmatpush1.bf16.msra.mxu0 %v6542_v0  ;;  %3948 = vmatprep.subr.bf16.mxu1 %v6543_v26  ;;  %v6608_v0 = vld [vmem:[#allocation2 + $0xb64] ss:$8 sps:$4 sm:$0xff]   ;;  %v6603_v26 = vld [vmem:[#allocation2 + $0xa60] ss:$8 sps:$4 sm:$0xff]  }
 0x84a   :  { %3991 = vmatprep.subr.bf16.mxu0 %v6545_v24  ;;  %v6606_v24 = vld [vmem:[#allocation2 + $0xb60] ss:$8 sps:$4 sm:$0xff]  }
 0x84c   :  { %3949 = vmatpush1.bf16.msra.mxu1 %v6547_v41  ;;  %v6611_v41 = vld [vmem:[#allocation2 + $0xa54] ss:$8 sps:$4 sm:$0xff]  }
 0x84d   :  { %3992 = vmatpush1.bf16.msra.mxu0 %v6548_v15  ;;  %3950 = vmatprep.subr.bf16.mxu1 %v6549_v62  ;;  %v6614_v15 = vld [vmem:[#allocation2 + $0xb54] ss:$8 sps:$4 sm:$0xff]  }
 0x84e   :  { %3993 = vmatprep.subr.bf16.mxu0 %v6551_v50  ;;  %v6623_v62 = vld [vmem:[#allocation2 + $0xa34] ss:$8 sps:$4 sm:$0xff]   ;;  %v6630_v50 = vld [vmem:[#allocation2 + $0xb20] ss:$8 sps:$4 sm:$0xff]  }
 0x850   :  { %3951 = vmatpush2.bf16.msra.mxu1 %v6553_v4  ;;  %v6635_v4 = vld [vmem:[#allocation2 + $0xa14] ss:$8 sps:$4 sm:$0xff]  }
 0x851   :  { %3994 = vmatpush2.bf16.msra.mxu0 %v6554_v14  ;;  %3952 = vmatprep.subr.bf16.mxu1 %v6555_v39  ;;  %v6638_v14 = vld [vmem:[#allocation2 + $0xb14] ss:$8 sps:$4 sm:$0xff]   ;;  %v6633_v39 = vld [vmem:[#allocation2 + $0xa10] ss:$8 sps:$4 sm:$0xff]  }
 0x852   :  { %3995 = vmatprep.subr.bf16.mxu0 %v6557_v21  ;;  %v6636_v21 = vld [vmem:[#allocation2 + $0xb10] ss:$8 sps:$4 sm:$0xff]  }
 0x854   :  { %3953 = vmatpush2.bf16.msra.mxu1 %v6559_v29  ;;  %v6641_v29 = vld [vmem:[#allocation2 + $0xa04] ss:$8 sps:$4 sm:$0xff]  }
 0x855   :  { %3996 = vmatpush2.bf16.msra.mxu0 %v6560_v60  ;;  %3954 = vmatprep.subr.bf16.mxu1 %v6561_v55  ;;  %v6644_v60 = vld [vmem:[#allocation2 + $0xb04] ss:$8 sps:$4 sm:$0xff]   ;;  %v6639_v55 = vld [vmem:[#allocation2 + $0xa00] ss:$8 sps:$4 sm:$0xff]  }
 0x856   :  { %3997 = vmatprep.subr.bf16.mxu0 %v6563_v27  ;;  %v6642_v27 = vld [vmem:[#allocation2 + $0xb00] ss:$8 sps:$4 sm:$0xff]  }
 0x858   :  { %3955 = vmatpush2.bf16.msra.mxu1 %v6565_v18  ;;  %v6647_v18 = vld [vmem:[#allocation2 + $0xaf4] ss:$8 sps:$4 sm:$0xff]  }
 0x859   :  { %3998 = vmatpush2.bf16.msra.mxu0 %v6566_v53  ;;  %3956 = vmatprep.subr.bf16.mxu1 %v6567_v25  ;;  %v6650_v53 = vld [vmem:[#allocation2 + $0xbf4] ss:$8 sps:$4 sm:$0xff]   ;;  %v6645_v25 = vld [vmem:[#allocation2 + $0xaf0] ss:$8 sps:$4 sm:$0xff]  }
 0x85a   :  { %3999 = vmatprep.subr.bf16.mxu0 %v6569_v61  ;;  %v6648_v61 = vld [vmem:[#allocation2 + $0xbf0] ss:$8 sps:$4 sm:$0xff]  }
 0x85c   :  { %3957 = vmatpush2.bf16.msra.mxu1 %v6571_v28  ;;  %v6653_v28 = vld [vmem:[#allocation2 + $0xae4] ss:$8 sps:$4 sm:$0xff]  }
 0x85d   :  { %4000 = vmatpush2.bf16.msra.mxu0 %v6572_v49  ;;  %3958 = vmatprep.subr.bf16.mxu1 %v6573_v42  ;;  %v6656_v49 = vld [vmem:[#allocation2 + $0xbe4] ss:$8 sps:$4 sm:$0xff]   ;;  %v6651_v42 = vld [vmem:[#allocation2 + $0xae0] ss:$8 sps:$4 sm:$0xff]  }
 0x85e   :  { %4001 = vmatprep.subr.bf16.mxu0 %v6575_v3  ;;  %v6654_v3 = vld [vmem:[#allocation2 + $0xbe0] ss:$8 sps:$4 sm:$0xff]  }
 0x860   :  { %3959 = vmatpush2.bf16.msra.mxu1 %v6577_v45  ;;  %v6659_v45 = vld [vmem:[#allocation2 + $0xad4] ss:$8 sps:$4 sm:$0xff]  }
 0x861   :  { %4002 = vmatpush2.bf16.msra.mxu0 %v6578_v23  ;;  %3960 = vmatprep.subr.bf16.mxu1 %v6579_v16  ;;  %v6662_v23 = vld [vmem:[#allocation2 + $0xbd4] ss:$8 sps:$4 sm:$0xff]   ;;  %v6657_v16 = vld [vmem:[#allocation2 + $0xad0] ss:$8 sps:$4 sm:$0xff]  }
 0x862   :  { %4003 = vmatprep.subr.bf16.mxu0 %v6581_v11  ;;  %v6660_v11 = vld [vmem:[#allocation2 + $0xbd0] ss:$8 sps:$4 sm:$0xff]  }
 0x864   :  { %3961 = vmatpush2.bf16.msra.mxu1 %v6583_v43  ;;  %v6665_v43 = vld [vmem:[#allocation2 + $0xac4] ss:$8 sps:$4 sm:$0xff]  }
 0x865   :  { %4004 = vmatpush2.bf16.msra.mxu0 %v6584_v51  ;;  %3962 = vmatprep.subr.bf16.mxu1 %v6585_v12  ;;  %v6668_v51 = vld [vmem:[#allocation2 + $0xbc4] ss:$8 sps:$4 sm:$0xff]   ;;  %v6663_v12 = vld [vmem:[#allocation2 + $0xac0] ss:$8 sps:$4 sm:$0xff]  }
 0x866   :  { %4005 = vmatprep.subr.bf16.mxu0 %v6587_v2  ;;  %v6666_v2 = vld [vmem:[#allocation2 + $0xbc0] ss:$8 sps:$4 sm:$0xff]  }
 0x868   :  { %3963 = vmatpush2.bf16.msra.mxu1 %v6589_v47  ;;  %v6671_v47 = vld [vmem:[#allocation2 + $0xab4] ss:$8 sps:$4 sm:$0xff]  }
 0x869   :  { %4006 = vmatpush2.bf16.msra.mxu0 %v6590_v34  ;;  %3964 = vmatprep.subr.bf16.mxu1 %v6591_v36  ;;  %v6674_v34 = vld [vmem:[#allocation2 + $0xbb4] ss:$8 sps:$4 sm:$0xff]   ;;  %v6669_v36 = vld [vmem:[#allocation2 + $0xab0] ss:$8 sps:$4 sm:$0xff]  }
 0x86a   :  { %4007 = vmatprep.subr.bf16.mxu0 %v6593_v6  ;;  %v6672_v6 = vld [vmem:[#allocation2 + $0xbb0] ss:$8 sps:$4 sm:$0xff]  }
 0x86c   :  { %3965 = vmatpush2.bf16.msra.mxu1 %v6595_v37  ;;  %v6677_v37 = vld [vmem:[#allocation2 + $0xaa4] ss:$8 sps:$4 sm:$0xff]  }
 0x86d   :  { %4008 = vmatpush2.bf16.msra.mxu0 %v6596_v38  ;;  %4020 = vmatprep.subr.bf16.mxu1 %v6599_v44  ;;  %v6680_v38 = vld [vmem:[#allocation2 + $0xba4] ss:$8 sps:$4 sm:$0xff]   ;;  %v6675_v44 = vld [vmem:[#allocation2 + $0xaa0] ss:$8 sps:$4 sm:$0xff]  }
 0x86e   :  { %4063 = vmatprep.subr.bf16.mxu0 %v6602_v58  ;;  %v6678_v58 = vld [vmem:[#allocation2 + $0xba0] ss:$8 sps:$4 sm:$0xff]  }
 0x86f   :  { %3967 = vmatmul.mubr.bf16.vlgmr.msra.gmra.mxu1 %v3156_v1  ;;  %v6617_v1 = vld [vmem:[#allocation2 + $0xa44] ss:$8 sps:$4 sm:$0xff]  }
 0x870   :  { %4010 = vmatmul.mubr.bf16.vlgmr.msra.gmra.mxu0 %v3158_v17  ;;  %4021 = vmatpush1.bf16.msra.mxu1 %v6597_v13  ;;  %v6618_v17 = vld [vmem:[#allocation2 + $0xb40] ss:$8 sps:$4 sm:$0xff]   ;;  %v6683_v13 = vld [vmem:[#allocation2 + $0xa94] ss:$8 sps:$4 sm:$0xff]  }
 0x871   :  { %4064 = vmatpush1.bf16.msra.mxu0 %v6600_v19  ;;  %4022 = vmatprep.subr.bf16.mxu1 %v6605_v20  ;;  %v6686_v19 = vld [vmem:[#allocation2 + $0xb94] ss:$8 sps:$4 sm:$0xff]   ;;  %v6681_v20 = vld [vmem:[#allocation2 + $0xa90] ss:$8 sps:$4 sm:$0xff]  }
 0x872   :  { %4065 = vmatprep.subr.bf16.mxu0 %v6608_v0  ;;  %4052 = vmatprep.mubr.bf16.mxu1 %v3161_v9  ;;  %v6624_v9 = vld [vmem:[#allocation2 + $0xb30] ss:$8 sps:$4 sm:$0xff]  }
 0x873   :  { %4095 = vmatprep.mubr.bf16.mxu0 %v3163_v40  ;;  %v6627_v40 = vld [vmem:[#allocation2 + $0xa20] ss:$8 sps:$4 sm:$0xff]   ;;  %v6684_v0 = vld [vmem:[#allocation2 + $0xb90] ss:$8 sps:$4 sm:$0xff]  }
 0x874   :  { %4023 = vmatpush1.bf16.msra.mxu1 %v6603_v26  ;;  %v6689_v26 = vld [vmem:[#allocation2 + $0xa84] ss:$8 sps:$4 sm:$0xff]  }
 0x875   :  { %4066 = vmatpush1.bf16.msra.mxu0 %v6606_v24  ;;  %4024 = vmatprep.subr.bf16.mxu1 %v6611_v41  ;;  %v6692_v24 = vld [vmem:[#allocation2 + $0xb84] ss:$8 sps:$4 sm:$0xff]   ;;  %v6687_v41 = vld [vmem:[#allocation2 + $0xa80] ss:$8 sps:$4 sm:$0xff]  }
 0x876   :  { %4067 = vmatprep.subr.bf16.mxu0 %v6614_v15  ;;  %v6690_v15 = vld [vmem:[#allocation2 + $0xb80] ss:$8 sps:$4 sm:$0xff]  }
 0x878   :  { %4025 = vmatpush1.bf16.msra.mxu1 %v6609_v46 }
 0x879   :  { %4068 = vmatpush1.bf16.msra.mxu0 %v6612_v54  ;;  %4026 = vmatprep.subr.bf16.mxu1 %v6617_v1 }
 0x87a   :  { %4069 = vmatprep.subr.bf16.mxu0 %v6620_v7 }
 0x87c   :  { %4027 = vmatpush1.bf16.msra.mxu1 %v6615_v8 }
 0x87d   :  { %4070 = vmatpush1.bf16.msra.mxu0 %v6618_v17  ;;  %4028 = vmatprep.subr.bf16.mxu1 %v6623_v62 }
 0x87e   :  { %4071 = vmatprep.subr.bf16.mxu0 %v6626_v56 }
 0x880   :  { %4029 = vmatpush1.bf16.msra.mxu1 %v6621_v5 }
 0x881   :  { %4072 = vmatpush1.bf16.msra.mxu0 %v6624_v9  ;;  %4030 = vmatprep.subr.bf16.mxu1 %v6629_v59 }
 0x882   :  { %4073 = vmatprep.subr.bf16.mxu0 %v6632_v63 }
 0x884   :  { %4031 = vmatpush1.bf16.msra.mxu1 %v6627_v40 }
 0x885   :  { %4074 = vmatpush1.bf16.msra.mxu0 %v6630_v50  ;;  %4032 = vmatprep.subr.bf16.mxu1 %v6635_v4 }
 0x886   :  { %4075 = vmatprep.subr.bf16.mxu0 %v6638_v14 }
 0x888   :  { %4033 = vmatpush1.bf16.msra.mxu1 %v6633_v39 }
 0x889   :  { %4076 = vmatpush1.bf16.msra.mxu0 %v6636_v21  ;;  %4034 = vmatprep.subr.bf16.mxu1 %v6641_v29 }
 0x88a   :  { %4077 = vmatprep.subr.bf16.mxu0 %v6644_v60 }
 0x88c   :  { %4035 = vmatpush1.bf16.msra.mxu1 %v6639_v55 }
 0x88d   :  { %4078 = vmatpush1.bf16.msra.mxu0 %v6642_v27  ;;  %4036 = vmatprep.subr.bf16.mxu1 %v6647_v18 }
 0x88e   :  { %4079 = vmatprep.subr.bf16.mxu0 %v6650_v53 }
 0x890   :  { %4037 = vmatpush2.bf16.msra.mxu1 %v6645_v25 }
 0x891   :  { %4080 = vmatpush2.bf16.msra.mxu0 %v6648_v61  ;;  %4038 = vmatprep.subr.bf16.mxu1 %v6653_v28 }
 0x892   :  { %4081 = vmatprep.subr.bf16.mxu0 %v6656_v49 }
 0x894   :  { %4039 = vmatpush2.bf16.msra.mxu1 %v6651_v42 }
 0x895   :  { %4082 = vmatpush2.bf16.msra.mxu0 %v6654_v3  ;;  %4040 = vmatprep.subr.bf16.mxu1 %v6659_v45 }
 0x896   :  { %4083 = vmatprep.subr.bf16.mxu0 %v6662_v23 }
 0x898   :  { %4041 = vmatpush2.bf16.msra.mxu1 %v6657_v16 }
 0x899   :  { %4084 = vmatpush2.bf16.msra.mxu0 %v6660_v11  ;;  %4042 = vmatprep.subr.bf16.mxu1 %v6665_v43 }
 0x89a   :  { %4085 = vmatprep.subr.bf16.mxu0 %v6668_v51 }
 0x89c   :  { %4043 = vmatpush2.bf16.msra.mxu1 %v6663_v12 }
 0x89d   :  { %4086 = vmatpush2.bf16.msra.mxu0 %v6666_v2  ;;  %4044 = vmatprep.subr.bf16.mxu1 %v6671_v47 }
 0x89e   :  { %4087 = vmatprep.subr.bf16.mxu0 %v6674_v34 }
 0x8a0   :  { %4045 = vmatpush2.bf16.msra.mxu1 %v6669_v36 }
 0x8a1   :  { %4088 = vmatpush2.bf16.msra.mxu0 %v6672_v6  ;;  %4046 = vmatprep.subr.bf16.mxu1 %v6677_v37 }
 0x8a2   :  { %4089 = vmatprep.subr.bf16.mxu0 %v6680_v38 }
 0x8a4   :  { %4047 = vmatpush2.bf16.msra.mxu1 %v6675_v44 }
 0x8a5   :  { %4090 = vmatpush2.bf16.msra.mxu0 %v6678_v58  ;;  %4048 = vmatprep.subr.bf16.mxu1 %v6683_v13 }
 0x8a6   :  { %4091 = vmatprep.subr.bf16.mxu0 %v6686_v19 }
 0x8a8   :  { %4049 = vmatpush2.bf16.msra.mxu1 %v6681_v20 }
 0x8a9   :  { %4092 = vmatpush2.bf16.msra.mxu0 %v6684_v0  ;;  %4050 = vmatprep.subr.bf16.mxu1 %v6689_v26 }
 0x8aa   :  { %4093 = vmatprep.subr.bf16.mxu0 %v6692_v24 }
 0x8ac   :  { %4051 = vmatpush2.bf16.msra.mxu1 %v6687_v41 }
 0x8ad   :  { %4094 = vmatpush2.bf16.msra.mxu0 %v6690_v15 }
 0x8af   :  { %4053 = vmatmul.mubr.bf16.vlgmr.msra.gmra.mxu1 %v3160_v32 }
 0x8b0   :  { %4096 = vmatmul.mubr.bf16.vlgmr.msra.gmra.mxu0 %v3162_v22  ;;  %4282 = vmatprep.mubr.bf16.mxu1 %v8024_v35 }
 0x92f   :  { %v3968_v46 = vpop.f32.mrf.mxu1 }
 0x930   :  { %v4011_v54 = vpop.f32.mrf.mxu0 }
 0x931   :  { %v3970_v1 = vpop.f32.mrf.mxu1  ;;  %v4012_v5 = vadd.f32 %v4011_v54, %v3968_v46 }
 0x932   :  { %v4013_v7 = vpop.f32.mrf.mxu0 }
 0x933   :  { %v3972_v8 = vpop.f32.mrf.mxu1  ;;  %v4014_v63 = vadd.f32 %v4013_v7, %v3970_v1 }
 0x934   :  { %v4015_v17 = vpop.f32.mrf.mxu0 }
 0x935   :  { %v3974_v62 = vpop.f32.mrf.mxu1  ;;  %v4016_v40 = vadd.f32 %v4015_v17, %v3972_v8 }
 0x936   :  { %v4017_v56 = vpop.f32.mrf.mxu0 }
 0x937   :  { %v4018_v50 = vadd.f32 %v4017_v56, %v3974_v62 }
 0x96f   :  { %v4054_v9 = vpop.f32.mrf.mxu1 }
 0x970   :  { %v4097_v59 = vpop.f32.mrf.mxu0  ;;  %v4055_v33 = vadd.f32 %v4054_v9, %v4012_v5 }
 0x971   :  { %v4056_v30 = vpop.f32.mrf.mxu1 }
 0x972   :  { %v4099_v32 = vpop.f32.mrf.mxu0  ;;  %v4057_v57 = vadd.f32 %v4056_v30, %v4014_v63  ;;  %v7873_v4 = vadd.f32 %v4097_v59, %v4055_v33 }
 0x973   :  { %v4058_v52 = vpop.f32.mrf.mxu1 }
 0x974   :  { %v4101_v22 = vpop.f32.mrf.mxu0  ;;  %v4059_v14 = vadd.f32 %v4058_v52, %v4016_v40  ;;  %v7875_v39 = vadd.f32 %v4099_v32, %v4057_v57  ;;  %v4124_v27 = vmul.f32 %v7873_v4, %v7873_v4 }
 0x975   :  { %v4060_v21 = vpop.f32.mrf.mxu1 }
 0x976   :  { %v7877_v29 = vadd.f32 %v4101_v22, %v4059_v14  ;;  %v4061_v60 = vadd.f32 %v4060_v21, %v4018_v50  ;;  %v4103_v55 = vpop.f32.mrf.mxu0  ;;  %v4125_v61 = vmul.f32 %v7875_v39, %v7875_v39  ;;  %v4107_v14 = vld [vmem:[#allocation6 + $0x2] ss:$8 sm:$0x3] }
 0x978   :  { %v4110_v18 = vadd.f32 %v7877_v29, %v7873_v4  ;;  %v4126_v53 = vmul.f32 %v7877_v29, %v7877_v29  ;;  %v7885_v25 = vadd.f32 %v4103_v55, %v4061_v60  ;;  %v4109_v60 = vld [vmem:[#allocation6 + $0x3] ss:$8 sm:$0x3] }
 0x97a   :  { %v4111_v28 = vrot.slane %v4110_v18, 4  ;;  %v4128_v49 = vadd.f32 %v4126_v53, %v4124_v27  ;;  %v4117_v42 = vadd.f32 %v7885_v25, %v7875_v39  ;;  %v4127_v3 = vmul.f32 %v7885_v25, %v7885_v25 }
 0x97b   :  { %v4208_v53 = vrot.slane %v4109_v60, %v7784_v10 }
 0x97c   :  { %v4112_v45 = vadd.f32 %v4111_v28, %v4110_v18  ;;  %v4129_v23 = vrot.slane %v4128_v49, 4  ;;  %v4118_v16 = vrot.slane %v4117_v42, 4  ;;  %v4135_v11 = vadd.f32 %v4127_v3, %v4125_v61 }
 0x97d   :  { %v4212_v61 = vrot.slane %v4109_v60, %v7788_v31 }
 0x97e   :  { %v4119_v43 = vadd.f32 %v4118_v16, %v4117_v42  ;;  %v4136_v51 = vrot.slane %v4135_v11, 4  ;;  %v4113_v12 = vrot.slane %v4112_v45, 2  ;;  %v4130_v2 = vadd.f32 %v4129_v23, %v4128_v49 }
 0x980   :  { %v4114_v47 = vadd.f32 %v4113_v12, %v4112_v45  ;;  %v4120_v34 = vrot.slane %v4119_v43, 2  ;;  %v4131_v36 = vrot.slane %v4130_v2, 2  ;;  %v4137_v6 = vadd.f32 %v4136_v51, %v4135_v11 }
 0x982   :  { %v4115_v37 = vrot.slane %v4114_v47, 1  ;;  %v4121_v38 = vadd.f32 %v4120_v34, %v4119_v43  ;;  %v4132_v44 = vadd.f32 %v4131_v36, %v4130_v2  ;;  %v4138_v58 = vrot.slane %v4137_v6, 2 }
 0x984   :  { %v4122_v13 = vrot.slane %v4121_v38, 1  ;;  %v4139_v19 = vadd.f32 %v4138_v58, %v4137_v6  ;;  %v4116_v20 = vadd.f32 %v4115_v37, %v4114_v47  ;;  %v4133_v26 = vrot.slane %v4132_v44, 1  ;;  %v6694_v58 = vld [vmem:[%s7980_s4 + $0x8] sm:$0xff]  }
 0x986   :  { %v4123_v0 = vadd.f32 %v4122_v13, %v4121_v38  ;;  %v4140_v24 = vrot.slane %v4139_v19, 1  ;;  %v4134_v46 = vadd.f32 %v4133_v26, %v4132_v44  ;;  %v6693_v44 = vld [vmem:[%s7980_s4] sm:$0xff]  }
 0x988   :  { %v4142_v41 = vadd.f32 %v4123_v0, %v4116_v20  ;;  %v4141_v15 = vadd.f32 %v4140_v24, %v4139_v19 }
 0x98a   :  { %4143 = vrot.lane.b32.xlu0 %v4142_v41, %s7080_s17  ;;  %v4150_v54 = vadd.f32 %v4141_v15, %v4134_v46 }
 0x98e   :  { %4151 = vrot.lane.b32.xlu0 %v4150_v54, %s7080_s17 }
 0x9fc   :  { %v4144_v1 = vpop.permute.xlu0 %4143 }
 0x9fd   :  { %v4145_v7 = vadd.f32 %v4144_v1, %v4142_v41 }
 0x9ff   :  { %4146 = vrot.lane.b32.xlu1 %v4145_v7, %s7089_s2 }
 0xa00   :  { %v4152_v8 = vpop.permute.xlu0 %4151 }
 0xa01   :  { %v4153_v17 = vadd.f32 %v4152_v8, %v4150_v54 }
 0xa03   :  { %4154 = vrot.lane.b32.xlu1 %v4153_v17, %s7089_s2 }
 0xa71   :  { %v4147_v62 = vpop.permute.xlu1 %4146 }
 0xa72   :  { %v4148_v56 = vadd.f32 %v4147_v62, %v4145_v7 }
 0xa74   :  { %v4149_v5 = vmul.f32 0.0078125, %v4148_v56 }
 0xa75   :  { %v4155_v9 = vpop.permute.xlu1 %4154 }
 0xa76   :  { %v4156_v59 = vadd.f32 %v4155_v9, %v4153_v17  ;;  %v4158_v63 = vmul.f32 %v4149_v5, %v4149_v5  ;;  %v4164_v50 = vrot.slane %v4149_v5, %v7784_v10 }
 0xa78   :  { %v4157_v33 = vmul.f32 0.0078125, %v4156_v59  ;;  %v4165_v27 = vsub.f32 %v7873_v4, %v4164_v50  ;;  %v4166_v18 = vsub.f32 %v7875_v39, %v4164_v50  ;;  %v4167_v28 = vsub.f32 %v7877_v29, %v4164_v50 }
 0xa79   :  { %v4168_v49 = vsub.f32 %v7885_v25, %v4164_v50 }
 0xa7a   :  { %v4159_v30 = vsub.f32 %v4157_v33, %v4158_v63 }
 0xa7c   :  { %v4160_v32 = vmax.f32 %v4159_v30, 0.0 }
 0xa7e   :  { %v4169_v40 = vadd.f32 1e-05, %v4160_v32 }
 0xa80   :  { %6695 = vrsqrt.f32 %v4169_v40 }
 0xa8d   :  { %v6696_v57 = vpop.eup %6695 }
 0xa8e   :  { %v4172_v52 = vcombine.low %v6696_v57, %v6696_v57 }
 0xa90   :  { %v4179_v22 = vrot.slane %v4172_v52, %v7782_v48 }
 0xa92   :  { %v4186_v21 = vrot.slane %v4179_v22, %v7782_v48 }
 0xa94   :  { %v4188_v55 = vmul.f32 %v4186_v21, %v4107_v14 }
 0xa96   :  { %v4193_v42 = vrot.slane %v4188_v55, %v7784_v10  ;;  %v4197_v3 = vrot.slane %v4188_v55, %v7788_v31 }
 0xa98   :  { %v4201_v45 = vmul.f32 %v4197_v3, %v4166_v18  ;;  %v4203_v23 = vmul.f32 %v4197_v3, %v4168_v49  ;;  %v4200_v16 = vmul.f32 %v4193_v42, %v4165_v27  ;;  %v4202_v11 = vmul.f32 %v4193_v42, %v4167_v28 }
 0xa9a   :  { %v4216_v43 = vadd.f32 %v4212_v61, %v4201_v45  ;;  %v4218_v4 = vadd.f32 %v4212_v61, %v4203_v23  ;;  %v4215_v51 = vadd.f32 %v4208_v53, %v4200_v16  ;;  %v4217_v39 = vadd.f32 %v4208_v53, %v4202_v11 }
 0xa9c   :  { %v4220_v12 = vmul.f32 0.2, %v4216_v43  ;;  %v4222_v2 = vmul.f32 0.2, %v4218_v4  ;;  %v4219_v47 = vmul.f32 0.2, %v4215_v51 }
 0xa9d   :  { %v4221_v34 = vmul.f32 0.2, %v4217_v39 }
 0xa9e   :  { %v4224_v36 = vmax.f32 %v4216_v43, %v4220_v12  ;;  %v4226_v29 = vmax.f32 %v4218_v4, %v4222_v2  ;;  %v4223_v6 = vmax.f32 %v4215_v51, %v4219_v47 }
 0xa9f   :  { %v4225_v25 = vmax.f32 %v4217_v39, %v4221_v34 }
 0xaa0   :  { %v4228_v37 = vpack.c.bf16 %v4226_v29, %v4224_v36 }
 0xaa1   :  { %v4227_v38 = vpack.c.bf16 %v4225_v25, %v4223_v6 }
 0xaa2   :  { %4264 = vmatprep.subr.bf16.mxu1 %v4228_v37 }
 0xaa3   :  { %4265 = vmatpush1.bf16.msra.mxu1 %v4227_v38 }
 0xaa6   :  { %5913 = vmatmul.mubr.msk.bf16.vlgmr.msra.gmra.mxu1 %vm4243_vm2, %v6693_v44 }
 0xaa7   :  { %4292 = vmatprep.mubr.bf16.mxu1 %v8024_v35 }
 0xaae   :  { %5914 = vmatmul.mubr.msk.bf16.gmra.mxu1 %vm4243_vm2, %v6694_v58 }
 0xb66   :  { %v7915_v13 = vpop.f32.mrf.mxu1 }
 0xb67   :  { %v4303_v19 = vpack.c.bf16 %v7915_v13, %v7915_v13 }
 0xb68   :  { %v4286_v20 = vpop.f32.mrf.mxu1 }
 0xb69   :  { %v4304_v0 = vpack.c.bf16 %v4286_v20, %v4286_v20 }
 0xb6a   :  { %v7919_v26 = vpop.f32.mrf.mxu1 }
 0xb6b   :  { %v4305_v24 = vpack.c.bf16 %v7919_v26, %v7919_v26 }
 0xb6c   :  { %v4290_v41 = vpop.f32.mrf.mxu1 }
 0xb6d   :  { %v4306_v15 = vpack.c.bf16 %v4290_v41, %v4290_v41 }
 0xb6e   :  { %v7923_v35 = vpop.f32.mrf.mxu1 }
 0xb6f   :  { %v4307_v46 = vpack.c.bf16 %v7923_v35, %v7923_v35 }
 0xb70   :  { %v7927_v54 = vpop.f32.mrf.mxu1 }
 0xb71   :  { %v4308_v1 = vpack.c.bf16 %v7927_v54, %v7927_v54 }
 0xb72   :  { %v7931_v7 = vpop.f32.mrf.mxu1 }
 0xb73   :  { %v4309_v8 = vpack.c.bf16 %v7931_v7, %v7931_v7 }
 0xb74   :  { %v7935_v17 = vpop.f32.mrf.mxu1 }
 0xb75   :  { %v4310_v62 = vpack.c.bf16 %v7935_v17, %v7935_v17 }
 0xb76   :  { %7076 = dma.done.wait [#allocation3 + $0x3], 16384 }
 0xb77   :  { %7077 = vsyncadd [#allocation3 + $0x3], 4294950912  ;;  %5113 = vmatprep.mubr.bf16.mxu1 %v4304_v0  ;;  %5154 = vmatprep.mubr.bf16.mxu0 %v4306_v15  ;;  %v6697_v56 = vld [vmem:[#allocation2 + $0xc74] ss:$8 sps:$4 sm:$0xff]   ;;  %v6701_v9 = vld [vmem:[#allocation2 + $0xc70] ss:$8 sps:$4 sm:$0xff]  }
 0xb78   :  { %v6699_v5 = vld [vmem:[#allocation2 + $0xd74] ss:$8 sps:$4 sm:$0xff]   ;;  %5081 = vmatprep.subr.bf16.mxu1 %v6697_v56  ;;  %v6702_v59 = vld [vmem:[#allocation2 + $0xd70] ss:$8 sps:$4 sm:$0xff]   ;;  %v6703_v63 = vld [vmem:[#allocation2 + $0xc64] ss:$8 sps:$4 sm:$0xff]  }
 0xb79   :  { %5122 = vmatprep.subr.bf16.mxu0 %v6699_v5  ;;  %5082 = vmatpush1.bf16.msra.mxu1 %v6701_v9  ;;  %v6705_v33 = vld [vmem:[#allocation2 + $0xd64] ss:$8 sps:$4 sm:$0xff]   ;;  %v6707_v30 = vld [vmem:[#allocation2 + $0xc60] ss:$8 sps:$4 sm:$0xff]   ;;  %v6709_v40 = vld [vmem:[#allocation2 + $0xc54] ss:$8 sps:$4 sm:$0xff]  }
 0xb7a   :  { %5123 = vmatpush1.bf16.msra.mxu0 %v6702_v59  ;;  %5083 = vmatprep.subr.bf16.mxu1 %v6703_v63  ;;  %v6708_v32 = vld [vmem:[#allocation2 + $0xd60] ss:$8 sps:$4 sm:$0xff]   ;;  %v6711_v57 = vld [vmem:[#allocation2 + $0xd54] ss:$8 sps:$4 sm:$0xff]   ;;  %v6713_v52 = vld [vmem:[#allocation2 + $0xc50] ss:$8 sps:$4 sm:$0xff]  }
 0xb7b   :  { %5124 = vmatprep.subr.bf16.mxu0 %v6705_v33  ;;  %v6714_v22 = vld [vmem:[#allocation2 + $0xd50] ss:$8 sps:$4 sm:$0xff]   ;;  %v6715_v50 = vld [vmem:[#allocation2 + $0xc44] ss:$8 sps:$4 sm:$0xff]   ;;  %v6719_v21 = vld [vmem:[#allocation2 + $0xc40] ss:$8 sps:$4 sm:$0xff]  }
 0xb7c   :  { %v6717_v14 = vld [vmem:[#allocation2 + $0xd44] ss:$8 sps:$4 sm:$0xff]   ;;  %v6720_v60 = vld [vmem:[#allocation2 + $0xd40] ss:$8 sps:$4 sm:$0xff]   ;;  %v6721_v55 = vld [vmem:[#allocation2 + $0xc34] ss:$8 sps:$4 sm:$0xff]  }
 0xb7d   :  { %5084 = vmatpush1.bf16.msra.mxu1 %v6707_v30  ;;  %v6723_v27 = vld [vmem:[#allocation2 + $0xd34] ss:$8 sps:$4 sm:$0xff]   ;;  %v6725_v18 = vld [vmem:[#allocation2 + $0xc30] ss:$8 sps:$4 sm:$0xff]   ;;  %v6727_v61 = vld [vmem:[#allocation2 + $0xc24] ss:$8 sps:$4 sm:$0xff]  }
 0xb7e   :  { %5125 = vmatpush1.bf16.msra.mxu0 %v6708_v32  ;;  %5085 = vmatprep.subr.bf16.mxu1 %v6709_v40  ;;  %v6726_v53 = vld [vmem:[#allocation2 + $0xd30] ss:$8 sps:$4 sm:$0xff]   ;;  %v6729_v28 = vld [vmem:[#allocation2 + $0xd24] ss:$8 sps:$4 sm:$0xff]   ;;  %v6731_v49 = vld [vmem:[#allocation2 + $0xc20] ss:$8 sps:$4 sm:$0xff]  }
 0xb7f   :  { %5126 = vmatprep.subr.bf16.mxu0 %v6711_v57  ;;  %v6732_v42 = vld [vmem:[#allocation2 + $0xd20] ss:$8 sps:$4 sm:$0xff]   ;;  %v6733_v3 = vld [vmem:[#allocation2 + $0xc14] ss:$8 sps:$4 sm:$0xff]   ;;  %v6737_v23 = vld [vmem:[#allocation2 + $0xc10] ss:$8 sps:$4 sm:$0xff]  }
 0xb80   :  { %v6735_v45 = vld [vmem:[#allocation2 + $0xd14] ss:$8 sps:$4 sm:$0xff]   ;;  %v6738_v16 = vld [vmem:[#allocation2 + $0xd10] ss:$8 sps:$4 sm:$0xff]   ;;  %v6739_v11 = vld [vmem:[#allocation2 + $0xc04] ss:$8 sps:$4 sm:$0xff]  }
 0xb81   :  { %5086 = vmatpush1.bf16.msra.mxu1 %v6713_v52  ;;  %v6741_v43 = vld [vmem:[#allocation2 + $0xd04] ss:$8 sps:$4 sm:$0xff]   ;;  %v6743_v4 = vld [vmem:[#allocation2 + $0xc00] ss:$8 sps:$4 sm:$0xff]   ;;  %v6745_v39 = vld [vmem:[#allocation2 + $0xcf4] ss:$8 sps:$4 sm:$0xff]  }
 0xb82   :  { %5127 = vmatpush1.bf16.msra.mxu0 %v6714_v22  ;;  %5087 = vmatprep.subr.bf16.mxu1 %v6715_v50  ;;  %v6744_v51 = vld [vmem:[#allocation2 + $0xd00] ss:$8 sps:$4 sm:$0xff]   ;;  %v6747_v12 = vld [vmem:[#allocation2 + $0xdf4] ss:$8 sps:$4 sm:$0xff]   ;;  %v6749_v2 = vld [vmem:[#allocation2 + $0xcf0] ss:$8 sps:$4 sm:$0xff]  }
 0xb83   :  { %5128 = vmatprep.subr.bf16.mxu0 %v6717_v14  ;;  %v6750_v47 = vld [vmem:[#allocation2 + $0xdf0] ss:$8 sps:$4 sm:$0xff]   ;;  %v6751_v34 = vld [vmem:[#allocation2 + $0xce4] ss:$8 sps:$4 sm:$0xff]   ;;  %v6755_v29 = vld [vmem:[#allocation2 + $0xce0] ss:$8 sps:$4 sm:$0xff]  }
 0xb84   :  { %v6753_v36 = vld [vmem:[#allocation2 + $0xde4] ss:$8 sps:$4 sm:$0xff]   ;;  %v6756_v6 = vld [vmem:[#allocation2 + $0xde0] ss:$8 sps:$4 sm:$0xff]   ;;  %v6757_v25 = vld [vmem:[#allocation2 + $0xcd4] ss:$8 sps:$4 sm:$0xff]  }
 0xb85   :  { %5088 = vmatpush1.bf16.msra.mxu1 %v6719_v21  ;;  %v6759_v37 = vld [vmem:[#allocation2 + $0xdd4] ss:$8 sps:$4 sm:$0xff]   ;;  %v6761_v38 = vld [vmem:[#allocation2 + $0xcd0] ss:$8 sps:$4 sm:$0xff]   ;;  %v6763_v58 = vld [vmem:[#allocation2 + $0xcc4] ss:$8 sps:$4 sm:$0xff]  }
 0xb86   :  { %5129 = vmatpush1.bf16.msra.mxu0 %v6720_v60  ;;  %5089 = vmatprep.subr.bf16.mxu1 %v6721_v55  ;;  %v6762_v44 = vld [vmem:[#allocation2 + $0xdd0] ss:$8 sps:$4 sm:$0xff]   ;;  %v6765_v20 = vld [vmem:[#allocation2 + $0xdc4] ss:$8 sps:$4 sm:$0xff]   ;;  %v6767_v0 = vld [vmem:[#allocation2 + $0xcc0] ss:$8 sps:$4 sm:$0xff]  }
 0xb87   :  { %5130 = vmatprep.subr.bf16.mxu0 %v6723_v27  ;;  %v6768_v41 = vld [vmem:[#allocation2 + $0xdc0] ss:$8 sps:$4 sm:$0xff]   ;;  %v6769_v15 = vld [vmem:[#allocation2 + $0xcb4] ss:$8 sps:$4 sm:$0xff]   ;;  %v6773_v5 = vld [vmem:[#allocation2 + $0xcb0] ss:$8 sps:$4 sm:$0xff]  }
 0xb88   :  { %v6771_v56 = vld [vmem:[#allocation2 + $0xdb4] ss:$8 sps:$4 sm:$0xff]   ;;  %v6774_v9 = vld [vmem:[#allocation2 + $0xdb0] ss:$8 sps:$4 sm:$0xff]   ;;  %v6775_v59 = vld [vmem:[#allocation2 + $0xca4] ss:$8 sps:$4 sm:$0xff]  }
 0xb89   :  { %5090 = vmatpush1.bf16.msra.mxu1 %v6725_v18  ;;  %v6777_v63 = vld [vmem:[#allocation2 + $0xda4] ss:$8 sps:$4 sm:$0xff]   ;;  %v6779_v33 = vld [vmem:[#allocation2 + $0xca0] ss:$8 sps:$4 sm:$0xff]   ;;  %v6781_v32 = vld [vmem:[#allocation2 + $0xc94] ss:$8 sps:$4 sm:$0xff]  }
 0xb8a   :  { %5131 = vmatpush1.bf16.msra.mxu0 %v6726_v53  ;;  %5091 = vmatprep.subr.bf16.mxu1 %v6727_v61  ;;  %v6780_v30 = vld [vmem:[#allocation2 + $0xda0] ss:$8 sps:$4 sm:$0xff]   ;;  %v6783_v40 = vld [vmem:[#allocation2 + $0xd94] ss:$8 sps:$4 sm:$0xff]   ;;  %v6785_v57 = vld [vmem:[#allocation2 + $0xc90] ss:$8 sps:$4 sm:$0xff]  }
 0xb8b   :  { %5132 = vmatprep.subr.bf16.mxu0 %v6729_v28  ;;  %v6786_v52 = vld [vmem:[#allocation2 + $0xd90] ss:$8 sps:$4 sm:$0xff]   ;;  %v6787_v22 = vld [vmem:[#allocation2 + $0xc84] ss:$8 sps:$4 sm:$0xff]   ;;  %v6791_v14 = vld [vmem:[#allocation2 + $0xc80] ss:$8 sps:$4 sm:$0xff]  }
 0xb8c   :  { %v6789_v50 = vld [vmem:[#allocation2 + $0xd84] ss:$8 sps:$4 sm:$0xff]   ;;  %v6792_v21 = vld [vmem:[#allocation2 + $0xd80] ss:$8 sps:$4 sm:$0xff]   ;;  %v6795_v60 = vld [vmem:[#allocation2 + $0xe74] ss:$8 sps:$4 sm:$0xff]  }
 0xb8d   :  { %5092 = vmatpush1.bf16.msra.mxu1 %v6731_v49  ;;  %v6798_v55 = vld [vmem:[#allocation2 + $0xf74] ss:$8 sps:$4 sm:$0xff]   ;;  %v6793_v27 = vld [vmem:[#allocation2 + $0xe70] ss:$8 sps:$4 sm:$0xff]   ;;  %v6801_v53 = vld [vmem:[#allocation2 + $0xe64] ss:$8 sps:$4 sm:$0xff]  }
 0xb8e   :  { %5133 = vmatpush1.bf16.msra.mxu0 %v6732_v42  ;;  %5093 = vmatprep.subr.bf16.mxu1 %v6733_v3  ;;  %v6796_v18 = vld [vmem:[#allocation2 + $0xf70] ss:$8 sps:$4 sm:$0xff]   ;;  %v6804_v61 = vld [vmem:[#allocation2 + $0xf64] ss:$8 sps:$4 sm:$0xff]   ;;  %v6799_v28 = vld [vmem:[#allocation2 + $0xe60] ss:$8 sps:$4 sm:$0xff]  }
 0xb8f   :  { %5134 = vmatprep.subr.bf16.mxu0 %v6735_v45  ;;  %v6802_v49 = vld [vmem:[#allocation2 + $0xf60] ss:$8 sps:$4 sm:$0xff]   ;;  %v6807_v42 = vld [vmem:[#allocation2 + $0xe54] ss:$8 sps:$4 sm:$0xff]   ;;  %v6805_v13 = vld [vmem:[#allocation2 + $0xe50] ss:$8 sps:$4 sm:$0xff]  }
 0xb90   :  { %v6810_v3 = vld [vmem:[#allocation2 + $0xf54] ss:$8 sps:$4 sm:$0xff]   ;;  %v6813_v26 = vld [vmem:[#allocation2 + $0xe44] ss:$8 sps:$4 sm:$0xff]   ;;  %v6811_v45 = vld [vmem:[#allocation2 + $0xe40] ss:$8 sps:$4 sm:$0xff]  }
 0xb91   :  { %5094 = vmatpush1.bf16.msra.mxu1 %v6737_v23  ;;  %v6814_v23 = vld [vmem:[#allocation2 + $0xf40] ss:$8 sps:$4 sm:$0xff]   ;;  %v6822_v54 = vld [vmem:[#allocation2 + $0xf34] ss:$8 sps:$4 sm:$0xff]   ;;  %v6825_v17 = vld [vmem:[#allocation2 + $0xe24] ss:$8 sps:$4 sm:$0xff]  }
 0xb92   :  { %5135 = vmatpush1.bf16.msra.mxu0 %v6738_v16  ;;  %5095 = vmatprep.subr.bf16.mxu1 %v6739_v11  ;;  %v6819_v16 = vld [vmem:[#allocation2 + $0xe34] ss:$8 sps:$4 sm:$0xff]   ;;  %v6820_v11 = vld [vmem:[#allocation2 + $0xf30] ss:$8 sps:$4 sm:$0xff]   ;;  %vm5349_vm3 = vcmask 64512   ;;  %vm5424_vm4 = vcmask 1041408  }
 0xb93   :  { %5136 = vmatprep.subr.bf16.mxu0 %v6741_v43  ;;  %v6823_v43 = vld [vmem:[#allocation2 + $0xe20] ss:$8 sps:$4 sm:$0xff]  }
 0xb95   :  { %5096 = vmatpush1.bf16.msra.mxu1 %v6743_v4  ;;  %v6826_v4 = vld [vmem:[#allocation2 + $0xf20] ss:$8 sps:$4 sm:$0xff]  }
 0xb96   :  { %5137 = vmatpush1.bf16.msra.mxu0 %v6744_v51  ;;  %5097 = vmatprep.subr.bf16.mxu1 %v6745_v39  ;;  %v6831_v51 = vld [vmem:[#allocation2 + $0xe14] ss:$8 sps:$4 sm:$0xff]  }
 0xb97   :  { %5138 = vmatprep.subr.bf16.mxu0 %v6747_v12  ;;  %v6834_v39 = vld [vmem:[#allocation2 + $0xf14] ss:$8 sps:$4 sm:$0xff]   ;;  %v6829_v12 = vld [vmem:[#allocation2 + $0xe10] ss:$8 sps:$4 sm:$0xff]  }
 0xb99   :  { %5098 = vmatpush2.bf16.msra.mxu1 %v6749_v2  ;;  %v6832_v2 = vld [vmem:[#allocation2 + $0xf10] ss:$8 sps:$4 sm:$0xff]  }
 0xb9a   :  { %5139 = vmatpush2.bf16.msra.mxu0 %v6750_v47  ;;  %5099 = vmatprep.subr.bf16.mxu1 %v6751_v34  ;;  %v6837_v47 = vld [vmem:[#allocation2 + $0xe04] ss:$8 sps:$4 sm:$0xff]  }
 0xb9b   :  { %5140 = vmatprep.subr.bf16.mxu0 %v6753_v36  ;;  %v6840_v34 = vld [vmem:[#allocation2 + $0xf04] ss:$8 sps:$4 sm:$0xff]   ;;  %v6835_v36 = vld [vmem:[#allocation2 + $0xe00] ss:$8 sps:$4 sm:$0xff]  }
 0xb9d   :  { %5100 = vmatpush2.bf16.msra.mxu1 %v6755_v29  ;;  %v6838_v29 = vld [vmem:[#allocation2 + $0xf00] ss:$8 sps:$4 sm:$0xff]  }
 0xb9e   :  { %5141 = vmatpush2.bf16.msra.mxu0 %v6756_v6  ;;  %5101 = vmatprep.subr.bf16.mxu1 %v6757_v25  ;;  %v6843_v6 = vld [vmem:[#allocation2 + $0xef4] ss:$8 sps:$4 sm:$0xff]  }
 0xb9f   :  { %5142 = vmatprep.subr.bf16.mxu0 %v6759_v37  ;;  %v6846_v25 = vld [vmem:[#allocation2 + $0xff4] ss:$8 sps:$4 sm:$0xff]   ;;  %v6841_v37 = vld [vmem:[#allocation2 + $0xef0] ss:$8 sps:$4 sm:$0xff]  }
 0xba1   :  { %5102 = vmatpush2.bf16.msra.mxu1 %v6761_v38  ;;  %v6844_v38 = vld [vmem:[#allocation2 + $0xff0] ss:$8 sps:$4 sm:$0xff]  }
 0xba2   :  { %5143 = vmatpush2.bf16.msra.mxu0 %v6762_v44  ;;  %5103 = vmatprep.subr.bf16.mxu1 %v6763_v58  ;;  %v6849_v44 = vld [vmem:[#allocation2 + $0xee4] ss:$8 sps:$4 sm:$0xff]  }
 0xba3   :  { %5144 = vmatprep.subr.bf16.mxu0 %v6765_v20  ;;  %v6852_v58 = vld [vmem:[#allocation2 + $0xfe4] ss:$8 sps:$4 sm:$0xff]   ;;  %v6847_v20 = vld [vmem:[#allocation2 + $0xee0] ss:$8 sps:$4 sm:$0xff]  }
 0xba5   :  { %5104 = vmatpush2.bf16.msra.mxu1 %v6767_v0  ;;  %v6850_v0 = vld [vmem:[#allocation2 + $0xfe0] ss:$8 sps:$4 sm:$0xff]  }
 0xba6   :  { %5145 = vmatpush2.bf16.msra.mxu0 %v6768_v41  ;;  %5105 = vmatprep.subr.bf16.mxu1 %v6769_v15  ;;  %v6855_v41 = vld [vmem:[#allocation2 + $0xed4] ss:$8 sps:$4 sm:$0xff]  }
 0xba7   :  { %5146 = vmatprep.subr.bf16.mxu0 %v6771_v56  ;;  %v6858_v15 = vld [vmem:[#allocation2 + $0xfd4] ss:$8 sps:$4 sm:$0xff]   ;;  %v6853_v56 = vld [vmem:[#allocation2 + $0xed0] ss:$8 sps:$4 sm:$0xff]  }
 0xba9   :  { %5106 = vmatpush2.bf16.msra.mxu1 %v6773_v5  ;;  %v6856_v5 = vld [vmem:[#allocation2 + $0xfd0] ss:$8 sps:$4 sm:$0xff]  }
 0xbaa   :  { %5147 = vmatpush2.bf16.msra.mxu0 %v6774_v9  ;;  %5107 = vmatprep.subr.bf16.mxu1 %v6775_v59  ;;  %v6861_v9 = vld [vmem:[#allocation2 + $0xec4] ss:$8 sps:$4 sm:$0xff]  }
 0xbab   :  { %5148 = vmatprep.subr.bf16.mxu0 %v6777_v63  ;;  %v6864_v59 = vld [vmem:[#allocation2 + $0xfc4] ss:$8 sps:$4 sm:$0xff]   ;;  %v6859_v63 = vld [vmem:[#allocation2 + $0xec0] ss:$8 sps:$4 sm:$0xff]  }
 0xbad   :  { %5108 = vmatpush2.bf16.msra.mxu1 %v6779_v33  ;;  %v6862_v33 = vld [vmem:[#allocation2 + $0xfc0] ss:$8 sps:$4 sm:$0xff]  }
 0xbae   :  { %5149 = vmatpush2.bf16.msra.mxu0 %v6780_v30  ;;  %5109 = vmatprep.subr.bf16.mxu1 %v6781_v32  ;;  %v6867_v30 = vld [vmem:[#allocation2 + $0xeb4] ss:$8 sps:$4 sm:$0xff]  }
 0xbaf   :  { %5150 = vmatprep.subr.bf16.mxu0 %v6783_v40  ;;  %v6870_v32 = vld [vmem:[#allocation2 + $0xfb4] ss:$8 sps:$4 sm:$0xff]   ;;  %v6865_v40 = vld [vmem:[#allocation2 + $0xeb0] ss:$8 sps:$4 sm:$0xff]  }
 0xbb1   :  { %5110 = vmatpush2.bf16.msra.mxu1 %v6785_v57  ;;  %v6868_v57 = vld [vmem:[#allocation2 + $0xfb0] ss:$8 sps:$4 sm:$0xff]  }
 0xbb2   :  { %5151 = vmatpush2.bf16.msra.mxu0 %v6786_v52  ;;  %5111 = vmatprep.subr.bf16.mxu1 %v6787_v22  ;;  %v6873_v52 = vld [vmem:[#allocation2 + $0xea4] ss:$8 sps:$4 sm:$0xff]  }
 0xbb3   :  { %5152 = vmatprep.subr.bf16.mxu0 %v6789_v50  ;;  %v6876_v22 = vld [vmem:[#allocation2 + $0xfa4] ss:$8 sps:$4 sm:$0xff]   ;;  %v6871_v50 = vld [vmem:[#allocation2 + $0xea0] ss:$8 sps:$4 sm:$0xff]  }
 0xbb5   :  { %5112 = vmatpush2.bf16.msra.mxu1 %v6791_v14  ;;  %v6874_v14 = vld [vmem:[#allocation2 + $0xfa0] ss:$8 sps:$4 sm:$0xff]  }
 0xbb6   :  { %5153 = vmatpush2.bf16.msra.mxu0 %v6792_v21  ;;  %5163 = vmatprep.subr.bf16.mxu1 %v6795_v60  ;;  %v6879_v21 = vld [vmem:[#allocation2 + $0xe94] ss:$8 sps:$4 sm:$0xff]  }
 0xbb7   :  { %5204 = vmatprep.subr.bf16.mxu0 %v6798_v55  ;;  %v6882_v60 = vld [vmem:[#allocation2 + $0xf94] ss:$8 sps:$4 sm:$0xff]   ;;  %v6877_v55 = vld [vmem:[#allocation2 + $0xe90] ss:$8 sps:$4 sm:$0xff]  }
 0xbb8   :  { %5114 = vmatmul.mubr.bf16.vlgmr.msra.gmra.mxu1 %v4303_v19  ;;  %v6808_v19 = vld [vmem:[#allocation2 + $0xf50] ss:$8 sps:$4 sm:$0xff]  }
 0xbb9   :  { %5155 = vmatmul.mubr.bf16.vlgmr.msra.gmra.mxu0 %v4305_v24  ;;  %5164 = vmatpush1.bf16.msra.mxu1 %v6793_v27  ;;  %v6816_v24 = vld [vmem:[#allocation2 + $0xf44] ss:$8 sps:$4 sm:$0xff]   ;;  %v6880_v27 = vld [vmem:[#allocation2 + $0xf90] ss:$8 sps:$4 sm:$0xff]  }
 0xbba   :  { %5205 = vmatpush1.bf16.msra.mxu0 %v6796_v18  ;;  %5165 = vmatprep.subr.bf16.mxu1 %v6801_v53  ;;  %v6885_v18 = vld [vmem:[#allocation2 + $0xe84] ss:$8 sps:$4 sm:$0xff]  }
 0xbbb   :  { %5206 = vmatprep.subr.bf16.mxu0 %v6804_v61  ;;  %5195 = vmatprep.mubr.bf16.mxu1 %v4308_v1  ;;  %v6817_v1 = vld [vmem:[#allocation2 + $0xe30] ss:$8 sps:$4 sm:$0xff]   ;;  %v6888_v53 = vld [vmem:[#allocation2 + $0xf84] ss:$8 sps:$4 sm:$0xff]   ;;  %v6883_v61 = vld [vmem:[#allocation2 + $0xe80] ss:$8 sps:$4 sm:$0xff]  }
 0xbbc   :  { %5236 = vmatprep.mubr.bf16.mxu0 %v4310_v62  ;;  %v6828_v62 = vld [vmem:[#allocation2 + $0xf24] ss:$8 sps:$4 sm:$0xff]  }
 0xbbd   :  { %5166 = vmatpush1.bf16.msra.mxu1 %v6799_v28  ;;  %v6886_v28 = vld [vmem:[#allocation2 + $0xf80] ss:$8 sps:$4 sm:$0xff]  }
 0xbbe   :  { %5207 = vmatpush1.bf16.msra.mxu0 %v6802_v49  ;;  %5167 = vmatprep.subr.bf16.mxu1 %v6807_v42 }
 0xbbf   :  { %5208 = vmatprep.subr.bf16.mxu0 %v6810_v3 }
 0xbc1   :  { %5168 = vmatpush1.bf16.msra.mxu1 %v6805_v13 }
 0xbc2   :  { %5209 = vmatpush1.bf16.msra.mxu0 %v6808_v19  ;;  %5169 = vmatprep.subr.bf16.mxu1 %v6813_v26 }
 0xbc3   :  { %5210 = vmatprep.subr.bf16.mxu0 %v6816_v24 }
 0xbc5   :  { %5170 = vmatpush1.bf16.msra.mxu1 %v6811_v45 }
 0xbc6   :  { %5211 = vmatpush1.bf16.msra.mxu0 %v6814_v23  ;;  %5171 = vmatprep.subr.bf16.mxu1 %v6819_v16 }
 0xbc7   :  { %5212 = vmatprep.subr.bf16.mxu0 %v6822_v54 }
 0xbc9   :  { %5172 = vmatpush1.bf16.msra.mxu1 %v6817_v1 }
 0xbca   :  { %5213 = vmatpush1.bf16.msra.mxu0 %v6820_v11  ;;  %5173 = vmatprep.subr.bf16.mxu1 %v6825_v17 }
 0xbcb   :  { %5214 = vmatprep.subr.bf16.mxu0 %v6828_v62 }
 0xbcd   :  { %5174 = vmatpush1.bf16.msra.mxu1 %v6823_v43 }
 0xbce   :  { %5215 = vmatpush1.bf16.msra.mxu0 %v6826_v4  ;;  %5175 = vmatprep.subr.bf16.mxu1 %v6831_v51 }
 0xbcf   :  { %5216 = vmatprep.subr.bf16.mxu0 %v6834_v39 }
 0xbd1   :  { %5176 = vmatpush1.bf16.msra.mxu1 %v6829_v12 }
 0xbd2   :  { %5217 = vmatpush1.bf16.msra.mxu0 %v6832_v2  ;;  %5177 = vmatprep.subr.bf16.mxu1 %v6837_v47 }
 0xbd3   :  { %5218 = vmatprep.subr.bf16.mxu0 %v6840_v34 }
 0xbd5   :  { %5178 = vmatpush1.bf16.msra.mxu1 %v6835_v36 }
 0xbd6   :  { %5219 = vmatpush1.bf16.msra.mxu0 %v6838_v29  ;;  %5179 = vmatprep.subr.bf16.mxu1 %v6843_v6 }
 0xbd7   :  { %5220 = vmatprep.subr.bf16.mxu0 %v6846_v25 }
 0xbd9   :  { %5180 = vmatpush2.bf16.msra.mxu1 %v6841_v37 }
 0xbda   :  { %5221 = vmatpush2.bf16.msra.mxu0 %v6844_v38  ;;  %5181 = vmatprep.subr.bf16.mxu1 %v6849_v44 }
 0xbdb   :  { %5222 = vmatprep.subr.bf16.mxu0 %v6852_v58 }
 0xbdd   :  { %5182 = vmatpush2.bf16.msra.mxu1 %v6847_v20 }
 0xbde   :  { %5223 = vmatpush2.bf16.msra.mxu0 %v6850_v0  ;;  %5183 = vmatprep.subr.bf16.mxu1 %v6855_v41 }
 0xbdf   :  { %5224 = vmatprep.subr.bf16.mxu0 %v6858_v15 }
 0xbe1   :  { %5184 = vmatpush2.bf16.msra.mxu1 %v6853_v56 }
 0xbe2   :  { %5225 = vmatpush2.bf16.msra.mxu0 %v6856_v5  ;;  %5185 = vmatprep.subr.bf16.mxu1 %v6861_v9 }
 0xbe3   :  { %5226 = vmatprep.subr.bf16.mxu0 %v6864_v59 }
 0xbe5   :  { %5186 = vmatpush2.bf16.msra.mxu1 %v6859_v63 }
 0xbe6   :  { %5227 = vmatpush2.bf16.msra.mxu0 %v6862_v33  ;;  %5187 = vmatprep.subr.bf16.mxu1 %v6867_v30 }
 0xbe7   :  { %5228 = vmatprep.subr.bf16.mxu0 %v6870_v32 }
 0xbe9   :  { %5188 = vmatpush2.bf16.msra.mxu1 %v6865_v40 }
 0xbea   :  { %5229 = vmatpush2.bf16.msra.mxu0 %v6868_v57  ;;  %5189 = vmatprep.subr.bf16.mxu1 %v6873_v52 }
 0xbeb   :  { %5230 = vmatprep.subr.bf16.mxu0 %v6876_v22  ;;  %v7092_v22 = vmov 0.0  }
 0xbed   :  { %5190 = vmatpush2.bf16.msra.mxu1 %v6871_v50 }
 0xbee   :  { %5231 = vmatpush2.bf16.msra.mxu0 %v6874_v14  ;;  %5191 = vmatprep.subr.bf16.mxu1 %v6879_v21 }
 0xbef   :  { %5232 = vmatprep.subr.bf16.mxu0 %v6882_v60 }
 0xbf1   :  { %5192 = vmatpush2.bf16.msra.mxu1 %v6877_v55 }
 0xbf2   :  { %5233 = vmatpush2.bf16.msra.mxu0 %v6880_v27  ;;  %5193 = vmatprep.subr.bf16.mxu1 %v6885_v18 }
 0xbf3   :  { %5234 = vmatprep.subr.bf16.mxu0 %v6888_v53 }
 0xbf5   :  { %5194 = vmatpush2.bf16.msra.mxu1 %v6883_v61 }
 0xbf6   :  { %5235 = vmatpush2.bf16.msra.mxu0 %v6886_v28 }
 0xbf8   :  { %5196 = vmatmul.mubr.bf16.vlgmr.msra.gmra.mxu1 %v4307_v46 }
 0xbf9   :  { %5237 = vmatmul.mubr.bf16.vlgmr.msra.gmra.mxu0 %v4309_v8  ;;  %5417 = vmatprep.mubr.f32.mxu1 %v7092_v22 }
 0xc78   :  { %v5115_v49 = vpop.f32.mrf.mxu1 }
 0xc79   :  { %v5156_v42 = vpop.f32.mrf.mxu0 }
 0xc7a   :  { %v5157_v3 = vadd.f32 %v5156_v42, %v5115_v49  ;;  %v5117_v13 = vpop.f32.mrf.mxu1 }
 0xc7b   :  { %v5158_v19 = vpop.f32.mrf.mxu0 }
 0xc7c   :  { %v5119_v26 = vpop.f32.mrf.mxu1  ;;  %v5159_v1 = vadd.f32 %v5158_v19, %v5117_v13  ;;  %v5246_v13 = vld [vmem:[#allocation6 + $0x4] ss:$8 sm:$0x3] }
 0xc7d   :  { %v5160_v24 = vpop.f32.mrf.mxu0 }
 0xc7e   :  { %v5120_v45 = vpop.f32.mrf.mxu1  ;;  %v5248_v24 = vld [vmem:[#allocation6 + $0x5] ss:$8 sm:$0x3] }
 0xc7f   :  { %v5161_v23 = vpop.f32.mrf.mxu0 }
 0xc80   :  { %v5331_v23 = vrot.slane %v5248_v24, %v7784_v10 }
 0xcb8   :  { %v5197_v16 = vpop.f32.mrf.mxu1 }
 0xcb9   :  { %v5238_v54 = vpop.f32.mrf.mxu0  ;;  %v5198_v11 = vadd.f32 %v5197_v16, %v5157_v3  ;;  %v5335_v16 = vrot.slane %v5248_v24, %v7788_v31 }
 0xcba   :  { %v5199_v17 = vpop.f32.mrf.mxu1 }
 0xcbb   :  { %v5240_v35 = vpop.f32.mrf.mxu0  ;;  %v7957_v46 = vadd.f32 %v5238_v54, %v5198_v11  ;;  %v5200_v62 = vadd.f32 %v5199_v17, %v5159_v1 }
 0xcbc   :  { %v5201_v7 = vpop.f32.mrf.mxu1 }
 0xcbd   :  { %v5242_v8 = vpop.f32.mrf.mxu0  ;;  %v5249_v43 = vrot.slane %v7957_v46, 4  ;;  %v5261_v4 = vmul.f32 %v7957_v46, %v7957_v46  ;;  %v5241_v51 = vadd.f32 %v5240_v35, %v5200_v62 }
 0xcbe   :  { %v5202_v39 = vpop.f32.mrf.mxu1 }
 0xcbf   :  { %v5243_v12 = vpop.f32.mrf.mxu0  ;;  %v5255_v2 = vrot.slane %v5241_v51, 4  ;;  %v5262_v47 = vmul.f32 %v5241_v51, %v5241_v51  ;;  %v5250_v34 = vadd.f32 %v5249_v43, %v7957_v46  ;;  %v5263_v36 = vrot.slane %v5261_v4, 4  ;;  %v5344_v39 = vld [vmem:[#allocation8] sm:$0xff] }
 0xcc1   :  { %v5251_v29 = vrot.slane %v5250_v34, 2  ;;  %v5256_v6 = vadd.f32 %v5255_v2, %v5241_v51  ;;  %v5264_v25 = vadd.f32 %v5263_v36, %v5261_v4  ;;  %v5269_v37 = vrot.slane %v5262_v47, 4  ;;  %v5348_v36 = vld [vmem:[#allocation9] sm:$0x3] }
 0xcc3   :  { %v5252_v38 = vadd.f32 %v5251_v29, %v5250_v34  ;;  %v5257_v44 = vrot.slane %v5256_v6, 2  ;;  %v5265_v58 = vrot.slane %v5264_v25, 2  ;;  %v5270_v20 = vadd.f32 %v5269_v37, %v5262_v47 }
 0xcc5   :  { %v5253_v0 = vrot.slane %v5252_v38, 1  ;;  %v5258_v41 = vadd.f32 %v5257_v44, %v5256_v6  ;;  %v5266_v15 = vadd.f32 %v5265_v58, %v5264_v25  ;;  %v5271_v56 = vrot.slane %v5270_v20, 2 }
 0xcc7   :  { %v5259_v5 = vrot.slane %v5258_v41, 1  ;;  %v5272_v9 = vadd.f32 %v5271_v56, %v5270_v20  ;;  %v5254_v59 = vadd.f32 %v5253_v0, %v5252_v38  ;;  %v5267_v33 = vrot.slane %v5266_v15, 1 }
 0xcc9   :  { %v5260_v63 = vadd.f32 %v5259_v5, %v5258_v41  ;;  %v5273_v30 = vrot.slane %v5272_v9, 1  ;;  %v5268_v57 = vadd.f32 %v5267_v33, %v5266_v15 }
 0xccb   :  { %v5275_v32 = vadd.f32 %v5260_v63, %v5254_v59  ;;  %v5274_v40 = vadd.f32 %v5273_v30, %v5272_v9 }
 0xccd   :  { %5276 = vrot.lane.b32.xlu0 %v5275_v32, %s7080_s17  ;;  %v5280_v52 = vadd.f32 %v5274_v40, %v5268_v57 }
 0xcd1   :  { %5281 = vrot.lane.b32.xlu0 %v5280_v52, %s7080_s17 }
 0xd3f   :  { %v5277_v50 = vpop.permute.xlu0 %5276 }
 0xd40   :  { %v5278_v14 = vadd.f32 %v5277_v50, %v5275_v32 }
 0xd42   :  { %v5279_v21 = vmul.f32 0.03125, %v5278_v14 }
 0xd43   :  { %v5282_v60 = vpop.permute.xlu0 %5281 }
 0xd44   :  { %v5283_v55 = vadd.f32 %v5282_v60, %v5280_v52  ;;  %v5285_v27 = vmul.f32 %v5279_v21, %v5279_v21  ;;  %v5291_v19 = vrot.slane %v5279_v21, %v7784_v10 }
 0xd46   :  { %v5284_v18 = vmul.f32 0.03125, %v5283_v55  ;;  %v5292_v54 = vsub.f32 %v7957_v46, %v5291_v19  ;;  %v5293_v1 = vsub.f32 %v5241_v51, %v5291_v19 }
 0xd48   :  { %v5286_v53 = vsub.f32 %v5284_v18, %v5285_v27 }
 0xd4a   :  { %v5287_v61 = vmax.f32 %v5286_v53, 0.0 }
 0xd4c   :  { %v5294_v28 = vadd.f32 1e-05, %v5287_v61 }
 0xd4e   :  { %6889 = vrsqrt.f32 %v5294_v28 }
 0xd5b   :  { %v6890_v49 = vpop.eup %6889 }
 0xd5c   :  { %v5297_v42 = vcombine.low %v6890_v49, %v6890_v49 }
 0xd5e   :  { %v5304_v3 = vrot.slane %v5297_v42, %v7782_v48 }
 0xd60   :  { %v5311_v26 = vrot.slane %v5304_v3, %v7782_v48  ;;  %v5345_v48 = vld [vmem:[#allocation8 + $0x8] sm:$0xff] }
 0xd62   :  { %v5313_v45 = vmul.f32 %v5311_v26, %v5246_v13 }
 0xd64   :  { %v5318_v11 = vrot.slane %v5313_v45, %v7784_v10  ;;  %v5322_v17 = vrot.slane %v5313_v45, %v7788_v31 }
 0xd66   :  { %v5326_v35 = vmul.f32 %v5322_v17, %v5293_v1  ;;  %v5325_v62 = vmul.f32 %v5318_v11, %v5292_v54 }
 0xd68   :  { %v5339_v7 = vadd.f32 %v5335_v16, %v5326_v35  ;;  %v5338_v8 = vadd.f32 %v5331_v23, %v5325_v62 }
 0xd6a   :  { %v5341_v43 = vmul.f32 0.2, %v5339_v7  ;;  %v5340_v4 = vmul.f32 0.2, %v5338_v8 }
 0xd6c   :  { %v5343_v12 = vmax.f32 %v5339_v7, %v5341_v43  ;;  %v5342_v2 = vmax.f32 %v5338_v8, %v5340_v4 }
 0xd6e   :  { %v5347_v47 = vmul.f32 %v5345_v48, %v5343_v12  ;;  %v5346_v34 = vmul.f32 %v5344_v39, %v5342_v2 }
 0xd70   :  { %5383 = vmatprep.subr.mxu1 %v5347_v47 }
 0xd71   :  { %5384 = vmatpush1.msra.mxu1 %v5346_v34 }
 0xd72   :  { %6043 = vmatmul.mubr.msk.f32.vlgmr.msra.gmra.mxu1 %vm5349_vm3, %v5348_v36 }
 0xe32   :  { %v5419_v10 = vpop.f32.mrf.mxu1 }
 0xe33   :  { %v5425_v46 = vsel %vm5424_vm4, %v5419_v10, 0.0 }
 0xe34   :  { %v5421_v31 = vpop.f32.mrf.mxu1 }
 0xe35   :  { %v5426_v51 = vsel %vm5424_vm4, %v5421_v31, 0.0 }
 0xe36   :  { %v5427_v29 = vadd.f32 %v5426_v51, %v5425_v46 }
 0xe38   :  { %5428 = vadd.xlane.f32.xlu1 %v5427_v29 }
 0xec1   :  { %v5429_v6 = vpop.xlane.xlu1 %5428 }
 0xec2   :  { %v5430_v25 = vsub.f32 0.0, %v5429_v6 }
 0xec4   :  { %v5431_v37 = vmul.f32 1.442695, %v5430_v25 }
 0xec6   :  { %6891 = vpow2.f32 %v5431_v37 }
 0xed3   :  { %v6892_v38 = vpop.eup %6891 }
 0xed4   :  { %v5433_v44 = vadd.f32 1.0, %v6892_v38 }
 0xed6   :  { %6893 = vrcp.f32 %v5433_v44 }
 0xee3   :  { %v6894_v58 = vpop.eup %6893 }
 0xee4   :  { %5436 = vst [vmem:[%s7985_s9] sm:$0x3] %v6894_v58 }
 0xee5   :  { %5441 = vsyncpa [#allocation5], 1 }
 0xee6   :  { %5442 = vsyncpa [#allocation7], 1 }
 0xee7   :  { %5443 = vsyncpa [#allocation10], 1 }
 0xee8   :  { %5444 = vsyncmov [#allocation3] }
 0xeeb   :  { %s5445_s0 = vpop.sfrf %5444 }
 0xeec   :  { %p6044_p12 = scmp.ne.s32.totalorder %s5445_s0, 0 }
 0xeee   :  { %5449 = shalt.err (%p6044_p12)  }
 0xeef   :  { %5451 = vsyncmov [#allocation3 + $0x1] }
 0xef2   :  { %s5452_s14 = vpop.sfrf %5451 }
 0xef3   :  { %p6045_p13 = scmp.ne.s32.totalorder %s5452_s14, 0 }
 0xef5   :  { %5456 = shalt.err (%p6045_p13)  }
 0xef6   :  { %5458 = vsyncmov [#allocation3 + $0x2] }
 0xef9   :  { %s5459_s15 = vpop.sfrf %5458 }
 0xefa   :  { %p6046_p0 = scmp.ne.s32.totalorder %s5459_s15, 0 }
 0xefc   :  { %5463 = shalt.err (%p6046_p0)  }
 0xefd   :  { %5465 = vsyncmov [#allocation3 + $0x3] }
 0xf00   :  { %s5466_s16 = vpop.sfrf %5465 }
 0xf01   :  { %p6047_p1 = scmp.ne.s32.totalorder %s5466_s16, 0 }
 0xf03   :  { %5470 = shalt.err (%p6047_p1)  }

</bundles_post_ra>
